<compile_context>
chip_gen: v7x
topology: tpu7x:2x2x1
jax: 0.10.0
libtpu: 0.0.40
codegen_flags: <defaults>
</compile_context>

<pallas_src>
import functools

import jax
import jax.numpy as jnp
from jax.experimental import pallas as pl
from jax.experimental.pallas import tpu as pltpu


def _largest_divisor_leq(n, cap):
    d = max(1, min(n, cap))
    while n % d:
        d -= 1
    return d


# ----------------------------------------------------------------------------
# fused kernel: channel sum/max pooling (accumulated across C blocks)
#               + kxk conv (2->1, no bias) + sigmoid
# ----------------------------------------------------------------------------
def _spatial_attn_kernel(w_ref, x_ref, o_ref, sum_s, max_s, *,
                         ksize, pad, sub_c):
    # w_ref : SMEM (2*k*k,) f32 conv weights, [channel, ky, kx] flattened; the
    #         mean-channel weights are pre-scaled by 1/C on the host.
    # x_ref : VMEM (Ct, H, W) channel slab of one image, native dtype.
    # o_ref : VMEM (H, W) attention map (written at the last channel block).
    # sum_s, max_s : VMEM (H+2p, W+2p) f32 scratch; border zeros implement the
    #         conv's zero padding; the interior accumulates channel sum / max.
    c_idx = pl.program_id(1)
    n_cblk = pl.num_programs(1)
    ct, H, W = x_ref.shape
    kk = ksize * ksize

    # ---- channel pooling over this (Ct, H, W) slab, in small sub-chunks ----
    def _chunk(off):
        xs = x_ref[pl.ds(off, sub_c)].astype(jnp.float32)    # (sub_c, H, W)
        return jnp.sum(xs, axis=0), jnp.max(xs, axis=0)

    s, m = _chunk(0)
    n_chunks = ct // sub_c
    if n_chunks > 1:
        def body(i, carry):
            cs, cm = carry
            off = pl.multiple_of(i * sub_c, sub_c)
            si, mi = _chunk(off)
            return cs + si, jnp.maximum(cm, mi)
        s, m = jax.lax.fori_loop(1, n_chunks, body, (s, m),
                                 unroll=min(4, n_chunks - 1))

    # ---- accumulate into the padded scratch planes ----
    @pl.when(c_idx == 0)
    def _init():
        # Scratch is uninitialized and persists across grid steps: zero the
        # whole planes (the border zeros are the conv's zero padding), then
        # write the interior with this block's partial sum / max.
        sum_s[...] = jnp.zeros_like(sum_s)
        max_s[...] = jnp.zeros_like(max_s)
        sum_s[pl.ds(pad, H), pl.ds(pad, W)] = s
        max_s[pl.ds(pad, H), pl.ds(pad, W)] = m

    @pl.when(c_idx > 0)
    def _accum():
        sum_s[pl.ds(pad, H), pl.ds(pad, W)] += s
        max_s[pl.ds(pad, H), pl.ds(pad, W)] = jnp.maximum(
            max_s[pl.ds(pad, H), pl.ds(pad, W)], m)

    # ---- kxk conv over the two pooled planes + sigmoid (last block only) ----
    @pl.when(c_idx == n_cblk - 1)
    def _finish():
        avg_p = sum_s[...]          # (Hp, Wp); 1/C is folded into the weights
        max_p = max_s[...]
        n_acc = 4                   # break the serial f32 add chain
        accs = [jnp.zeros((H, W), jnp.float32) for _ in range(n_acc)]
        t = 0
        for kx in range(ksize):
            # hoist the lane (kx) shift out of the k*k tap loop: one
            # lane-offset slice per kx per channel; only sublane (ky) slices
            # remain in the inner loop.
            a_sh = avg_p[:, kx:kx + W]                       # (Hp, W)
            m_sh = max_p[:, kx:kx + W]
            for ky in range(ksize):
                wa = w_ref[ky * ksize + kx]        # mean-channel tap (scaled)
                wm = w_ref[kk + ky * ksize + kx]   # max-channel tap
                accs[t % n_acc] = (accs[t % n_acc]
                                   + wa * a_sh[ky:ky + H, :]
                                   + wm * m_sh[ky:ky + H, :])
                t += 1
        acc = (accs[0] + accs[1]) + (accs[2] + accs[3])
        o_ref[...] = jax.nn.sigmoid(acc).astype(o_ref.dtype)


# ----------------------------------------------------------------------------
# wrapper
# ----------------------------------------------------------------------------
def spatial_attention(x_nchw, weight, kernel_size=7):
    """x_nchw: (N, C, H, W). weight: (1, 2, k, k) (PyTorch conv layout, no bias)."""
    assert kernel_size in (3, 7), "kernel size must be 3 or 7"
    pad = 3 if kernel_size == 7 else 1
    N, C, H, W = x_nchw.shape
    Hp, Wp = H + 2 * pad, W + 2 * pad

    # Fold the 1/C of the channel mean into the mean-channel conv weights so
    # the scratch can hold the raw channel sum (host-side, 2*k*k scalars only).
    w = jnp.asarray(weight, jnp.float32)
    w = w.at[:, 0, :, :].multiply(1.0 / C)
    w_flat = w.reshape(-1)                                   # (2*k*k,)

    # --- tile the channel axis so the input block is VMEM-safe everywhere ---
    itemsize = jnp.dtype(x_nchw.dtype).itemsize
    hpad8 = -(-H // 8) * 8
    wpad128 = -(-W // 128) * 128
    per_chan_bytes = hpad8 * wpad128 * itemsize              # VMEM layout size
    block_budget = 6 * 1024 * 1024      # per input block (Pallas double-buffers)
    ct = _largest_divisor_leq(C, max(1, block_budget // per_chan_bytes))
    n_cblk = C // ct
    # sub-chunk size for the in-kernel reduction, bounded by vreg pressure
    vregs_per_plane = (-(-H // 8)) * (-(-W // 128))
    sub_cap = max(1, min(8, (48 - 2 * vregs_per_plane) // vregs_per_plane))
    sub_c = _largest_divisor_leq(ct, sub_cap)

    kernel = functools.partial(_spatial_attn_kernel, ksize=kernel_size,
                               pad=pad, sub_c=sub_c)
    out = pl.pallas_call(
        kernel,
        out_shape=jax.ShapeDtypeStruct((N, H, W), x_nchw.dtype),
        grid_spec=pltpu.PrefetchScalarGridSpec(
            num_scalar_prefetch=0,
            grid=(N, n_cblk),                 # channel-reduction axis last
            in_specs=[
                # tiny conv weights live in SMEM (scalar reads in the kernel)
                pl.BlockSpec(memory_space=pltpu.MemorySpace.SMEM),
                # unpadded (Ct, H, W) channel slab, native dtype, batch squeezed
                pl.BlockSpec((None, ct, H, W), lambda n, c: (n, c, 0, 0)),
            ],
            out_specs=pl.BlockSpec((None, H, W), lambda n, c: (n, 0, 0)),
            scratch_shapes=[pltpu.VMEM((Hp, Wp), jnp.float32),   # channel sum
                            pltpu.VMEM((Hp, Wp), jnp.float32)],  # channel max
        ),
        compiler_params=pltpu.CompilerParams(
            dimension_semantics=("parallel", "arbitrary"),
            vmem_limit_bytes=32 * 1024 * 1024),
    )(w_flat, x_nchw)

    return out.reshape(N, 1, H, W)


# ----------------------------------------------------------------------------
# plain-JAX reference (for the correctness assert in __main__)
# ----------------------------------------------------------------------------
def spatial_attention_ref(x, weight, kernel_size=7):
    pad = 3 if kernel_size == 7 else 1
    avg = jnp.mean(x, axis=1, keepdims=True)
    mx = jnp.max(x, axis=1, keepdims=True)
    pooled = jnp.concatenate([avg, mx], axis=1).astype(jnp.float32)
    out = jax.lax.conv_general_dilated(
        pooled, jnp.asarray(weight, jnp.float32), window_strides=(1, 1),
        padding=((pad, pad), (pad, pad)),
        dimension_numbers=("NCHW", "OIHW", "NCHW"))
    return jax.nn.sigmoid(out)


# ----------------------------------------------------------------------------
if __name__ == "__main__":
    N, C, H, W = 2, 4, 16, 16
    ksize = 7

    k1, k2 = jax.random.split(jax.random.PRNGKey(0))
    x = jax.random.normal(k1, (N, C, H, W), jnp.float32)
    fan_in = 2 * ksize * ksize
    w = jax.random.normal(k2, (1, 2, ksize, ksize), jnp.float32) * (2.0 / fan_in) ** 0.5

    fwd = jax.jit(functools.partial(spatial_attention, kernel_size=ksize))
    out = jax.block_until_ready(fwd(x, w))

    assert out.shape == (N, 1, H, W)
    assert bool(jnp.all(jnp.isfinite(out)))
    ref = spatial_attention_ref(x, w, ksize)
    err = float(jnp.max(jnp.abs(out - ref)))
    assert err < 5e-5, err

    print("KERNEL_OK")
</pallas_src>

<mosaic_0001>
module attributes {stable_mosaic.version = 11 : i64} {
  func.func @_spatial_attn_kernel(%arg0: i32, %arg1: i32, %arg2: memref<98xf32, #tpu.memory_space<smem>>, %arg3: memref<1x4x16x16xf32, #tpu.memory_space<vmem>>, %arg4: memref<1x16x16xf32, #tpu.memory_space<vmem>>, %arg5: memref<22x22xf32, #tpu.memory_space<vmem>>, %arg6: memref<22x22xf32, #tpu.memory_space<vmem>>) attributes {dimension_semantics = [#tpu.dimension_semantics<parallel>, #tpu.dimension_semantics<arbitrary>], iteration_bounds = array<i64: 2, 1>, scalar_prefetch = 0 : i64, scratch_operands = 2 : i64, tpu.core_type = #tpu.core_type<tc>, window_params = [{transform_indices = @transform_0, window_bounds = array<i64: 98>}, {transform_indices = @transform_1, window_bounds = array<i64: 1, 4, 16, 16>}, {transform_indices = @transform_2, window_bounds = array<i64: 1, 16, 16>}]} {
    %c0 = arith.constant 0 : index
    %c0_0 = arith.constant 0 : index
    %c0_1 = arith.constant 0 : index
    %c0_2 = arith.constant 0 : index
    %0 = vector.load %arg3[%c0, %c0_0, %c0_1, %c0_2] : memref<1x4x16x16xf32, #tpu.memory_space<vmem>>, vector<1x4x16x16xf32>
    %1 = vector.shape_cast %0 : vector<1x4x16x16xf32> to vector<4x16x16xf32>
    %cst = arith.constant dense<0.000000e+00> : vector<16x16xf32>
    %2 = vector.multi_reduction <add>, %1, %cst [0] : vector<4x16x16xf32> to vector<16x16xf32>
    %cst_3 = arith.constant dense<0xFF800000> : vector<16x16xf32>
    %3 = vector.multi_reduction <maximumf>, %1, %cst_3 [0] : vector<4x16x16xf32> to vector<16x16xf32>
    %c0_i32 = arith.constant 0 : i32
    %4 = arith.cmpi eq, %arg1, %c0_i32 : i32
    %5 = arith.extui %4 : i1 to i32
    %c0_i32_4 = arith.constant 0 : i32
    %6 = arith.cmpi ne, %5, %c0_i32_4 : i32
    scf.if %6 {
      %cst_9 = arith.constant 0.000000e+00 : f32
      %13 = vector.broadcast %cst_9 : f32 to vector<22x22xf32>
      %c0_10 = arith.constant 0 : index
      %c0_11 = arith.constant 0 : index
      %14 = vector.load %arg5[%c0_10, %c0_11] : memref<22x22xf32, #tpu.memory_space<vmem>>, vector<22x22xf32>
      tpu.vector_store %arg5[%c0_10, %c0_11], %13 {strides = array<i32>} : memref<22x22xf32, #tpu.memory_space<vmem>>, vector<22x22xf32>,
      %cst_12 = arith.constant 0.000000e+00 : f32
      %15 = vector.broadcast %cst_12 : f32 to vector<22x22xf32>
      %c0_13 = arith.constant 0 : index
      %c0_14 = arith.constant 0 : index
      %16 = vector.load %arg6[%c0_13, %c0_14] : memref<22x22xf32, #tpu.memory_space<vmem>>, vector<22x22xf32>
      tpu.vector_store %arg6[%c0_13, %c0_14], %15 {strides = array<i32>} : memref<22x22xf32, #tpu.memory_space<vmem>>, vector<22x22xf32>,
      %c3 = arith.constant 3 : index
      %c3_15 = arith.constant 3 : index
      %17 = vector.load %arg5[%c3, %c3_15] : memref<22x22xf32, #tpu.memory_space<vmem>>, vector<16x16xf32>
      tpu.vector_store %arg5[%c3, %c3_15], %2 {strides = array<i32>} : memref<22x22xf32, #tpu.memory_space<vmem>>, vector<16x16xf32>,
      %c3_16 = arith.constant 3 : index
      %c3_17 = arith.constant 3 : index
      %18 = vector.load %arg6[%c3_16, %c3_17] : memref<22x22xf32, #tpu.memory_space<vmem>>, vector<16x16xf32>
      tpu.vector_store %arg6[%c3_16, %c3_17], %3 {strides = array<i32>} : memref<22x22xf32, #tpu.memory_space<vmem>>, vector<16x16xf32>,
    } else {
    }
    %c0_i32_5 = arith.constant 0 : i32
    %7 = arith.cmpi sgt, %arg1, %c0_i32_5 : i32
    %8 = arith.extui %7 : i1 to i32
    %c0_i32_6 = arith.constant 0 : i32
    %9 = arith.cmpi ne, %8, %c0_i32_6 : i32
    scf.if %9 {
      %c3 = arith.constant 3 : index
      %c3_9 = arith.constant 3 : index
      %13 = vector.load %arg5[%c3, %c3_9] : memref<22x22xf32, #tpu.memory_space<vmem>>, vector<16x16xf32>
      %14 = arith.addf %13, %2 : vector<16x16xf32>
      %c3_10 = arith.constant 3 : index
      %c3_11 = arith.constant 3 : index
      %15 = vector.load %arg5[%c3_10, %c3_11] : memref<22x22xf32, #tpu.memory_space<vmem>>, vector<16x16xf32>
      tpu.vector_store %arg5[%c3_10, %c3_11], %14 {strides = array<i32>} : memref<22x22xf32, #tpu.memory_space<vmem>>, vector<16x16xf32>,
      %c3_12 = arith.constant 3 : index
      %c3_13 = arith.constant 3 : index
      %16 = vector.load %arg6[%c3_12, %c3_13] : memref<22x22xf32, #tpu.memory_space<vmem>>, vector<16x16xf32>
      %17 = arith.maximumf %16, %3 : vector<16x16xf32>
      %c3_14 = arith.constant 3 : index
      %c3_15 = arith.constant 3 : index
      %18 = vector.load %arg6[%c3_14, %c3_15] : memref<22x22xf32, #tpu.memory_space<vmem>>, vector<16x16xf32>
      tpu.vector_store %arg6[%c3_14, %c3_15], %17 {strides = array<i32>} : memref<22x22xf32, #tpu.memory_space<vmem>>, vector<16x16xf32>,
    } else {
    }
    %c0_i32_7 = arith.constant 0 : i32
    %10 = arith.cmpi eq, %arg1, %c0_i32_7 : i32
    %11 = arith.extui %10 : i1 to i32
    %c0_i32_8 = arith.constant 0 : i32
    %12 = arith.cmpi ne, %11, %c0_i32_8 : i32
    scf.if %12 {
      %c0_9 = arith.constant 0 : index
      %c0_10 = arith.constant 0 : index
      %13 = vector.load %arg5[%c0_9, %c0_10] : memref<22x22xf32, #tpu.memory_space<vmem>>, vector<22x22xf32>
      %c0_11 = arith.constant 0 : index
      %c0_12 = arith.constant 0 : index
      %14 = vector.load %arg6[%c0_11, %c0_12] : memref<22x22xf32, #tpu.memory_space<vmem>>, vector<22x22xf32>
      %cst_13 = arith.constant 0.000000e+00 : f32
      %15 = vector.broadcast %cst_13 : f32 to vector<16x16xf32>
      %cst_14 = arith.constant 0.000000e+00 : f32
      %16 = vector.broadcast %cst_14 : f32 to vector<16x16xf32>
      %cst_15 = arith.constant 0.000000e+00 : f32
      %17 = vector.broadcast %cst_15 : f32 to vector<16x16xf32>
      %cst_16 = arith.constant 0.000000e+00 : f32
      %18 = vector.broadcast %cst_16 : f32 to vector<16x16xf32>
      %19 = vector.extract_strided_slice %13 {offsets = [0, 0], sizes = [22, 16], strides = [1, 1]} : vector<22x22xf32> to vector<22x16xf32>
      %20 = vector.extract_strided_slice %14 {offsets = [0, 0], sizes = [22, 16], strides = [1, 1]} : vector<22x22xf32> to vector<22x16xf32>
      %c0_17 = arith.constant 0 : index
      %21 = memref.load %arg2[%c0_17] : memref<98xf32, #tpu.memory_space<smem>>
      %c49 = arith.constant 49 : index
      %22 = memref.load %arg2[%c49] : memref<98xf32, #tpu.memory_space<smem>>
      %23 = vector.extract_strided_slice %19 {offsets = [0, 0], sizes = [16, 16], strides = [1, 1]} : vector<22x16xf32> to vector<16x16xf32>
      %24 = vector.broadcast %21 : f32 to vector<16x16xf32>
      %25 = arith.mulf %24, %23 : vector<16x16xf32>
      %26 = arith.addf %15, %25 : vector<16x16xf32>
      %27 = vector.extract_strided_slice %20 {offsets = [0, 0], sizes = [16, 16], strides = [1, 1]} : vector<22x16xf32> to vector<16x16xf32>
      %28 = vector.broadcast %22 : f32 to vector<16x16xf32>
      %29 = arith.mulf %28, %27 : vector<16x16xf32>
      %30 = arith.addf %26, %29 : vector<16x16xf32>
      %c7 = arith.constant 7 : index
      %31 = memref.load %arg2[%c7] : memref<98xf32, #tpu.memory_space<smem>>
      %c56 = arith.constant 56 : index
      %32 = memref.load %arg2[%c56] : memref<98xf32, #tpu.memory_space<smem>>
      %33 = vector.extract_strided_slice %19 {offsets = [1, 0], sizes = [16, 16], strides = [1, 1]} : vector<22x16xf32> to vector<16x16xf32>
      %34 = vector.broadcast %31 : f32 to vector<16x16xf32>
      %35 = arith.mulf %34, %33 : vector<16x16xf32>
      %36 = arith.addf %16, %35 : vector<16x16xf32>
      %37 = vector.extract_strided_slice %20 {offsets = [1, 0], sizes = [16, 16], strides = [1, 1]} : vector<22x16xf32> to vector<16x16xf32>
      %38 = vector.broadcast %32 : f32 to vector<16x16xf32>
      %39 = arith.mulf %38, %37 : vector<16x16xf32>
      %40 = arith.addf %36, %39 : vector<16x16xf32>
      %c14 = arith.constant 14 : index
      %41 = memref.load %arg2[%c14] : memref<98xf32, #tpu.memory_space<smem>>
      %c63 = arith.constant 63 : index
      %42 = memref.load %arg2[%c63] : memref<98xf32, #tpu.memory_space<smem>>
      %43 = vector.extract_strided_slice %19 {offsets = [2, 0], sizes = [16, 16], strides = [1, 1]} : vector<22x16xf32> to vector<16x16xf32>
      %44 = vector.broadcast %41 : f32 to vector<16x16xf32>
      %45 = arith.mulf %44, %43 : vector<16x16xf32>
      %46 = arith.addf %17, %45 : vector<16x16xf32>
      %47 = vector.extract_strided_slice %20 {offsets = [2, 0], sizes = [16, 16], strides = [1, 1]} : vector<22x16xf32> to vector<16x16xf32>
      %48 = vector.broadcast %42 : f32 to vector<16x16xf32>
      %49 = arith.mulf %48, %47 : vector<16x16xf32>
      %50 = arith.addf %46, %49 : vector<16x16xf32>
      %c21 = arith.constant 21 : index
      %51 = memref.load %arg2[%c21] : memref<98xf32, #tpu.memory_space<smem>>
      %c70 = arith.constant 70 : index
      %52 = memref.load %arg2[%c70] : memref<98xf32, #tpu.memory_space<smem>>
      %53 = vector.extract_strided_slice %19 {offsets = [3, 0], sizes = [16, 16], strides = [1, 1]} : vector<22x16xf32> to vector<16x16xf32>
      %54 = vector.broadcast %51 : f32 to vector<16x16xf32>
      %55 = arith.mulf %54, %53 : vector<16x16xf32>
      %56 = arith.addf %18, %55 : vector<16x16xf32>
      %57 = vector.extract_strided_slice %20 {offsets = [3, 0], sizes = [16, 16], strides = [1, 1]} : vector<22x16xf32> to vector<16x16xf32>
      %58 = vector.broadcast %52 : f32 to vector<16x16xf32>
      %59 = arith.mulf %58, %57 : vector<16x16xf32>
      %60 = arith.addf %56, %59 : vector<16x16xf32>
      %c28 = arith.constant 28 : index
      %61 = memref.load %arg2[%c28] : memref<98xf32, #tpu.memory_space<smem>>
      %c77 = arith.constant 77 : index
      %62 = memref.load %arg2[%c77] : memref<98xf32, #tpu.memory_space<smem>>
      %63 = vector.extract_strided_slice %19 {offsets = [4, 0], sizes = [16, 16], strides = [1, 1]} : vector<22x16xf32> to vector<16x16xf32>
      %64 = vector.broadcast %61 : f32 to vector<16x16xf32>
      %65 = arith.mulf %64, %63 : vector<16x16xf32>
      %66 = arith.addf %30, %65 : vector<16x16xf32>
      %67 = vector.extract_strided_slice %20 {offsets = [4, 0], sizes = [16, 16], strides = [1, 1]} : vector<22x16xf32> to vector<16x16xf32>
      %68 = vector.broadcast %62 : f32 to vector<16x16xf32>
      %69 = arith.mulf %68, %67 : vector<16x16xf32>
      %70 = arith.addf %66, %69 : vector<16x16xf32>
      %c35 = arith.constant 35 : index
      %71 = memref.load %arg2[%c35] : memref<98xf32, #tpu.memory_space<smem>>
      %c84 = arith.constant 84 : index
      %72 = memref.load %arg2[%c84] : memref<98xf32, #tpu.memory_space<smem>>
      %73 = vector.extract_strided_slice %19 {offsets = [5, 0], sizes = [16, 16], strides = [1, 1]} : vector<22x16xf32> to vector<16x16xf32>
      %74 = vector.broadcast %71 : f32 to vector<16x16xf32>
      %75 = arith.mulf %74, %73 : vector<16x16xf32>
      %76 = arith.addf %40, %75 : vector<16x16xf32>
      %77 = vector.extract_strided_slice %20 {offsets = [5, 0], sizes = [16, 16], strides = [1, 1]} : vector<22x16xf32> to vector<16x16xf32>
      %78 = vector.broadcast %72 : f32 to vector<16x16xf32>
      %79 = arith.mulf %78, %77 : vector<16x16xf32>
      %80 = arith.addf %76, %79 : vector<16x16xf32>
      %c42 = arith.constant 42 : index
      %81 = memref.load %arg2[%c42] : memref<98xf32, #tpu.memory_space<smem>>
      %c91 = arith.constant 91 : index
      %82 = memref.load %arg2[%c91] : memref<98xf32, #tpu.memory_space<smem>>
      %83 = vector.extract_strided_slice %19 {offsets = [6, 0], sizes = [16, 16], strides = [1, 1]} : vector<22x16xf32> to vector<16x16xf32>
      %84 = vector.broadcast %81 : f32 to vector<16x16xf32>
      %85 = arith.mulf %84, %83 : vector<16x16xf32>
      %86 = arith.addf %50, %85 : vector<16x16xf32>
      %87 = vector.extract_strided_slice %20 {offsets = [6, 0], sizes = [16, 16], strides = [1, 1]} : vector<22x16xf32> to vector<16x16xf32>
      %88 = vector.broadcast %82 : f32 to vector<16x16xf32>
      %89 = arith.mulf %88, %87 : vector<16x16xf32>
      %90 = arith.addf %86, %89 : vector<16x16xf32>
      %91 = vector.extract_strided_slice %13 {offsets = [0, 1], sizes = [22, 16], strides = [1, 1]} : vector<22x22xf32> to vector<22x16xf32>
      %92 = vector.extract_strided_slice %14 {offsets = [0, 1], sizes = [22, 16], strides = [1, 1]} : vector<22x22xf32> to vector<22x16xf32>
      %c1 = arith.constant 1 : index
      %93 = memref.load %arg2[%c1] : memref<98xf32, #tpu.memory_space<smem>>
      %c50 = arith.constant 50 : index
      %94 = memref.load %arg2[%c50] : memref<98xf32, #tpu.memory_space<smem>>
      %95 = vector.extract_strided_slice %91 {offsets = [0, 0], sizes = [16, 16], strides = [1, 1]} : vector<22x16xf32> to vector<16x16xf32>
      %96 = vector.broadcast %93 : f32 to vector<16x16xf32>
      %97 = arith.mulf %96, %95 : vector<16x16xf32>
      %98 = arith.addf %60, %97 : vector<16x16xf32>
      %99 = vector.extract_strided_slice %92 {offsets = [0, 0], sizes = [16, 16], strides = [1, 1]} : vector<22x16xf32> to vector<16x16xf32>
      %100 = vector.broadcast %94 : f32 to vector<16x16xf32>
      %101 = arith.mulf %100, %99 : vector<16x16xf32>
      %102 = arith.addf %98, %101 : vector<16x16xf32>
      %c8 = arith.constant 8 : index
      %103 = memref.load %arg2[%c8] : memref<98xf32, #tpu.memory_space<smem>>
      %c57 = arith.constant 57 : index
      %104 = memref.load %arg2[%c57] : memref<98xf32, #tpu.memory_space<smem>>
      %105 = vector.extract_strided_slice %91 {offsets = [1, 0], sizes = [16, 16], strides = [1, 1]} : vector<22x16xf32> to vector<16x16xf32>
      %106 = vector.broadcast %103 : f32 to vector<16x16xf32>
      %107 = arith.mulf %106, %105 : vector<16x16xf32>
      %108 = arith.addf %70, %107 : vector<16x16xf32>
      %109 = vector.extract_strided_slice %92 {offsets = [1, 0], sizes = [16, 16], strides = [1, 1]} : vector<22x16xf32> to vector<16x16xf32>
      %110 = vector.broadcast %104 : f32 to vector<16x16xf32>
      %111 = arith.mulf %110, %109 : vector<16x16xf32>
      %112 = arith.addf %108, %111 : vector<16x16xf32>
      %c15 = arith.constant 15 : index
      %113 = memref.load %arg2[%c15] : memref<98xf32, #tpu.memory_space<smem>>
      %c64 = arith.constant 64 : index
      %114 = memref.load %arg2[%c64] : memref<98xf32, #tpu.memory_space<smem>>
      %115 = vector.extract_strided_slice %91 {offsets = [2, 0], sizes = [16, 16], strides = [1, 1]} : vector<22x16xf32> to vector<16x16xf32>
      %116 = vector.broadcast %113 : f32 to vector<16x16xf32>
      %117 = arith.mulf %116, %115 : vector<16x16xf32>
      %118 = arith.addf %80, %117 : vector<16x16xf32>
      %119 = vector.extract_strided_slice %92 {offsets = [2, 0], sizes = [16, 16], strides = [1, 1]} : vector<22x16xf32> to vector<16x16xf32>
      %120 = vector.broadcast %114 : f32 to vector<16x16xf32>
      %121 = arith.mulf %120, %119 : vector<16x16xf32>
      %122 = arith.addf %118, %121 : vector<16x16xf32>
      %c22 = arith.constant 22 : index
      %123 = memref.load %arg2[%c22] : memref<98xf32, #tpu.memory_space<smem>>
      %c71 = arith.constant 71 : index
      %124 = memref.load %arg2[%c71] : memref<98xf32, #tpu.memory_space<smem>>
      %125 = vector.extract_strided_slice %91 {offsets = [3, 0], sizes = [16, 16], strides = [1, 1]} : vector<22x16xf32> to vector<16x16xf32>
      %126 = vector.broadcast %123 : f32 to vector<16x16xf32>
      %127 = arith.mulf %126, %125 : vector<16x16xf32>
      %128 = arith.addf %90, %127 : vector<16x16xf32>
      %129 = vector.extract_strided_slice %92 {offsets = [3, 0], sizes = [16, 16], strides = [1, 1]} : vector<22x16xf32> to vector<16x16xf32>
      %130 = vector.broadcast %124 : f32 to vector<16x16xf32>
      %131 = arith.mulf %130, %129 : vector<16x16xf32>
      %132 = arith.addf %128, %131 : vector<16x16xf32>
      %c29 = arith.constant 29 : index
      %133 = memref.load %arg2[%c29] : memref<98xf32, #tpu.memory_space<smem>>
      %c78 = arith.constant 78 : index
      %134 = memref.load %arg2[%c78] : memref<98xf32, #tpu.memory_space<smem>>
      %135 = vector.extract_strided_slice %91 {offsets = [4, 0], sizes = [16, 16], strides = [1, 1]} : vector<22x16xf32> to vector<16x16xf32>
      %136 = vector.broadcast %133 : f32 to vector<16x16xf32>
      %137 = arith.mulf %136, %135 : vector<16x16xf32>
      %138 = arith.addf %102, %137 : vector<16x16xf32>
      %139 = vector.extract_strided_slice %92 {offsets = [4, 0], sizes = [16, 16], strides = [1, 1]} : vector<22x16xf32> to vector<16x16xf32>
      %140 = vector.broadcast %134 : f32 to vector<16x16xf32>
      %141 = arith.mulf %140, %139 : vector<16x16xf32>
      %142 = arith.addf %138, %141 : vector<16x16xf32>
      %c36 = arith.constant 36 : index
      %143 = memref.load %arg2[%c36] : memref<98xf32, #tpu.memory_space<smem>>
      %c85 = arith.constant 85 : index
      %144 = memref.load %arg2[%c85] : memref<98xf32, #tpu.memory_space<smem>>
      %145 = vector.extract_strided_slice %91 {offsets = [5, 0], sizes = [16, 16], strides = [1, 1]} : vector<22x16xf32> to vector<16x16xf32>
      %146 = vector.broadcast %143 : f32 to vector<16x16xf32>
      %147 = arith.mulf %146, %145 : vector<16x16xf32>
      %148 = arith.addf %112, %147 : vector<16x16xf32>
      %149 = vector.extract_strided_slice %92 {offsets = [5, 0], sizes = [16, 16], strides = [1, 1]} : vector<22x16xf32> to vector<16x16xf32>
      %150 = vector.broadcast %144 : f32 to vector<16x16xf32>
      %151 = arith.mulf %150, %149 : vector<16x16xf32>
      %152 = arith.addf %148, %151 : vector<16x16xf32>
      %c43 = arith.constant 43 : index
      %153 = memref.load %arg2[%c43] : memref<98xf32, #tpu.memory_space<smem>>
      %c92 = arith.constant 92 : index
      %154 = memref.load %arg2[%c92] : memref<98xf32, #tpu.memory_space<smem>>
      %155 = vector.extract_strided_slice %91 {offsets = [6, 0], sizes = [16, 16], strides = [1, 1]} : vector<22x16xf32> to vector<16x16xf32>
      %156 = vector.broadcast %153 : f32 to vector<16x16xf32>
      %157 = arith.mulf %156, %155 : vector<16x16xf32>
      %158 = arith.addf %122, %157 : vector<16x16xf32>
      %159 = vector.extract_strided_slice %92 {offsets = [6, 0], sizes = [16, 16], strides = [1, 1]} : vector<22x16xf32> to vector<16x16xf32>
      %160 = vector.broadcast %154 : f32 to vector<16x16xf32>
      %161 = arith.mulf %160, %159 : vector<16x16xf32>
      %162 = arith.addf %158, %161 : vector<16x16xf32>
      %163 = vector.extract_strided_slice %13 {offsets = [0, 2], sizes = [22, 16], strides = [1, 1]} : vector<22x22xf32> to vector<22x16xf32>
      %164 = vector.extract_strided_slice %14 {offsets = [0, 2], sizes = [22, 16], strides = [1, 1]} : vector<22x22xf32> to vector<22x16xf32>
      %c2 = arith.constant 2 : index
      %165 = memref.load %arg2[%c2] : memref<98xf32, #tpu.memory_space<smem>>
      %c51 = arith.constant 51 : index
      %166 = memref.load %arg2[%c51] : memref<98xf32, #tpu.memory_space<smem>>
      %167 = vector.extract_strided_slice %163 {offsets = [0, 0], sizes = [16, 16], strides = [1, 1]} : vector<22x16xf32> to vector<16x16xf32>
      %168 = vector.broadcast %165 : f32 to vector<16x16xf32>
      %169 = arith.mulf %168, %167 : vector<16x16xf32>
      %170 = arith.addf %132, %169 : vector<16x16xf32>
      %171 = vector.extract_strided_slice %164 {offsets = [0, 0], sizes = [16, 16], strides = [1, 1]} : vector<22x16xf32> to vector<16x16xf32>
      %172 = vector.broadcast %166 : f32 to vector<16x16xf32>
      %173 = arith.mulf %172, %171 : vector<16x16xf32>
      %174 = arith.addf %170, %173 : vector<16x16xf32>
      %c9 = arith.constant 9 : index
      %175 = memref.load %arg2[%c9] : memref<98xf32, #tpu.memory_space<smem>>
      %c58 = arith.constant 58 : index
      %176 = memref.load %arg2[%c58] : memref<98xf32, #tpu.memory_space<smem>>
      %177 = vector.extract_strided_slice %163 {offsets = [1, 0], sizes = [16, 16], strides = [1, 1]} : vector<22x16xf32> to vector<16x16xf32>
      %178 = vector.broadcast %175 : f32 to vector<16x16xf32>
      %179 = arith.mulf %178, %177 : vector<16x16xf32>
      %180 = arith.addf %142, %179 : vector<16x16xf32>
      %181 = vector.extract_strided_slice %164 {offsets = [1, 0], sizes = [16, 16], strides = [1, 1]} : vector<22x16xf32> to vector<16x16xf32>
      %182 = vector.broadcast %176 : f32 to vector<16x16xf32>
      %183 = arith.mulf %182, %181 : vector<16x16xf32>
      %184 = arith.addf %180, %183 : vector<16x16xf32>
      %c16 = arith.constant 16 : index
      %185 = memref.load %arg2[%c16] : memref<98xf32, #tpu.memory_space<smem>>
      %c65 = arith.constant 65 : index
      %186 = memref.load %arg2[%c65] : memref<98xf32, #tpu.memory_space<smem>>
      %187 = vector.extract_strided_slice %163 {offsets = [2, 0], sizes = [16, 16], strides = [1, 1]} : vector<22x16xf32> to vector<16x16xf32>
      %188 = vector.broadcast %185 : f32 to vector<16x16xf32>
      %189 = arith.mulf %188, %187 : vector<16x16xf32>
      %190 = arith.addf %152, %189 : vector<16x16xf32>
      %191 = vector.extract_strided_slice %164 {offsets = [2, 0], sizes = [16, 16], strides = [1, 1]} : vector<22x16xf32> to vector<16x16xf32>
      %192 = vector.broadcast %186 : f32 to vector<16x16xf32>
      %193 = arith.mulf %192, %191 : vector<16x16xf32>
      %194 = arith.addf %190, %193 : vector<16x16xf32>
      %c23 = arith.constant 23 : index
      %195 = memref.load %arg2[%c23] : memref<98xf32, #tpu.memory_space<smem>>
      %c72 = arith.constant 72 : index
      %196 = memref.load %arg2[%c72] : memref<98xf32, #tpu.memory_space<smem>>
      %197 = vector.extract_strided_slice %163 {offsets = [3, 0], sizes = [16, 16], strides = [1, 1]} : vector<22x16xf32> to vector<16x16xf32>
      %198 = vector.broadcast %195 : f32 to vector<16x16xf32>
      %199 = arith.mulf %198, %197 : vector<16x16xf32>
      %200 = arith.addf %162, %199 : vector<16x16xf32>
      %201 = vector.extract_strided_slice %164 {offsets = [3, 0], sizes = [16, 16], strides = [1, 1]} : vector<22x16xf32> to vector<16x16xf32>
      %202 = vector.broadcast %196 : f32 to vector<16x16xf32>
      %203 = arith.mulf %202, %201 : vector<16x16xf32>
      %204 = arith.addf %200, %203 : vector<16x16xf32>
      %c30 = arith.constant 30 : index
      %205 = memref.load %arg2[%c30] : memref<98xf32, #tpu.memory_space<smem>>
      %c79 = arith.constant 79 : index
      %206 = memref.load %arg2[%c79] : memref<98xf32, #tpu.memory_space<smem>>
      %207 = vector.extract_strided_slice %163 {offsets = [4, 0], sizes = [16, 16], strides = [1, 1]} : vector<22x16xf32> to vector<16x16xf32>
      %208 = vector.broadcast %205 : f32 to vector<16x16xf32>
      %209 = arith.mulf %208, %207 : vector<16x16xf32>
      %210 = arith.addf %174, %209 : vector<16x16xf32>
      %211 = vector.extract_strided_slice %164 {offsets = [4, 0], sizes = [16, 16], strides = [1, 1]} : vector<22x16xf32> to vector<16x16xf32>
      %212 = vector.broadcast %206 : f32 to vector<16x16xf32>
      %213 = arith.mulf %212, %211 : vector<16x16xf32>
      %214 = arith.addf %210, %213 : vector<16x16xf32>
      %c37 = arith.constant 37 : index
      %215 = memref.load %arg2[%c37] : memref<98xf32, #tpu.memory_space<smem>>
      %c86 = arith.constant 86 : index
      %216 = memref.load %arg2[%c86] : memref<98xf32, #tpu.memory_space<smem>>
      %217 = vector.extract_strided_slice %163 {offsets = [5, 0], sizes = [16, 16], strides = [1, 1]} : vector<22x16xf32> to vector<16x16xf32>
      %218 = vector.broadcast %215 : f32 to vector<16x16xf32>
      %219 = arith.mulf %218, %217 : vector<16x16xf32>
      %220 = arith.addf %184, %219 : vector<16x16xf32>
      %221 = vector.extract_strided_slice %164 {offsets = [5, 0], sizes = [16, 16], strides = [1, 1]} : vector<22x16xf32> to vector<16x16xf32>
      %222 = vector.broadcast %216 : f32 to vector<16x16xf32>
      %223 = arith.mulf %222, %221 : vector<16x16xf32>
      %224 = arith.addf %220, %223 : vector<16x16xf32>
      %c44 = arith.constant 44 : index
      %225 = memref.load %arg2[%c44] : memref<98xf32, #tpu.memory_space<smem>>
      %c93 = arith.constant 93 : index
      %226 = memref.load %arg2[%c93] : memref<98xf32, #tpu.memory_space<smem>>
      %227 = vector.extract_strided_slice %163 {offsets = [6, 0], sizes = [16, 16], strides = [1, 1]} : vector<22x16xf32> to vector<16x16xf32>
      %228 = vector.broadcast %225 : f32 to vector<16x16xf32>
      %229 = arith.mulf %228, %227 : vector<16x16xf32>
      %230 = arith.addf %194, %229 : vector<16x16xf32>
      %231 = vector.extract_strided_slice %164 {offsets = [6, 0], sizes = [16, 16], strides = [1, 1]} : vector<22x16xf32> to vector<16x16xf32>
      %232 = vector.broadcast %226 : f32 to vector<16x16xf32>
      %233 = arith.mulf %232, %231 : vector<16x16xf32>
      %234 = arith.addf %230, %233 : vector<16x16xf32>
      %235 = vector.extract_strided_slice %13 {offsets = [0, 3], sizes = [22, 16], strides = [1, 1]} : vector<22x22xf32> to vector<22x16xf32>
      %236 = vector.extract_strided_slice %14 {offsets = [0, 3], sizes = [22, 16], strides = [1, 1]} : vector<22x22xf32> to vector<22x16xf32>
      %c3 = arith.constant 3 : index
      %237 = memref.load %arg2[%c3] : memref<98xf32, #tpu.memory_space<smem>>
      %c52 = arith.constant 52 : index
      %238 = memref.load %arg2[%c52] : memref<98xf32, #tpu.memory_space<smem>>
      %239 = vector.extract_strided_slice %235 {offsets = [0, 0], sizes = [16, 16], strides = [1, 1]} : vector<22x16xf32> to vector<16x16xf32>
      %240 = vector.broadcast %237 : f32 to vector<16x16xf32>
      %241 = arith.mulf %240, %239 : vector<16x16xf32>
      %242 = arith.addf %204, %241 : vector<16x16xf32>
      %243 = vector.extract_strided_slice %236 {offsets = [0, 0], sizes = [16, 16], strides = [1, 1]} : vector<22x16xf32> to vector<16x16xf32>
      %244 = vector.broadcast %238 : f32 to vector<16x16xf32>
      %245 = arith.mulf %244, %243 : vector<16x16xf32>
      %246 = arith.addf %242, %245 : vector<16x16xf32>
      %c10 = arith.constant 10 : index
      %247 = memref.load %arg2[%c10] : memref<98xf32, #tpu.memory_space<smem>>
      %c59 = arith.constant 59 : index
      %248 = memref.load %arg2[%c59] : memref<98xf32, #tpu.memory_space<smem>>
      %249 = vector.extract_strided_slice %235 {offsets = [1, 0], sizes = [16, 16], strides = [1, 1]} : vector<22x16xf32> to vector<16x16xf32>
      %250 = vector.broadcast %247 : f32 to vector<16x16xf32>
      %251 = arith.mulf %250, %249 : vector<16x16xf32>
      %252 = arith.addf %214, %251 : vector<16x16xf32>
      %253 = vector.extract_strided_slice %236 {offsets = [1, 0], sizes = [16, 16], strides = [1, 1]} : vector<22x16xf32> to vector<16x16xf32>
      %254 = vector.broadcast %248 : f32 to vector<16x16xf32>
      %255 = arith.mulf %254, %253 : vector<16x16xf32>
      %256 = arith.addf %252, %255 : vector<16x16xf32>
      %c17 = arith.constant 17 : index
      %257 = memref.load %arg2[%c17] : memref<98xf32, #tpu.memory_space<smem>>
      %c66 = arith.constant 66 : index
      %258 = memref.load %arg2[%c66] : memref<98xf32, #tpu.memory_space<smem>>
      %259 = vector.extract_strided_slice %235 {offsets = [2, 0], sizes = [16, 16], strides = [1, 1]} : vector<22x16xf32> to vector<16x16xf32>
      %260 = vector.broadcast %257 : f32 to vector<16x16xf32>
      %261 = arith.mulf %260, %259 : vector<16x16xf32>
      %262 = arith.addf %224, %261 : vector<16x16xf32>
      %263 = vector.extract_strided_slice %236 {offsets = [2, 0], sizes = [16, 16], strides = [1, 1]} : vector<22x16xf32> to vector<16x16xf32>
      %264 = vector.broadcast %258 : f32 to vector<16x16xf32>
      %265 = arith.mulf %264, %263 : vector<16x16xf32>
      %266 = arith.addf %262, %265 : vector<16x16xf32>
      %c24 = arith.constant 24 : index
      %267 = memref.load %arg2[%c24] : memref<98xf32, #tpu.memory_space<smem>>
      %c73 = arith.constant 73 : index
      %268 = memref.load %arg2[%c73] : memref<98xf32, #tpu.memory_space<smem>>
      %269 = vector.extract_strided_slice %235 {offsets = [3, 0], sizes = [16, 16], strides = [1, 1]} : vector<22x16xf32> to vector<16x16xf32>
      %270 = vector.broadcast %267 : f32 to vector<16x16xf32>
      %271 = arith.mulf %270, %269 : vector<16x16xf32>
      %272 = arith.addf %234, %271 : vector<16x16xf32>
      %273 = vector.extract_strided_slice %236 {offsets = [3, 0], sizes = [16, 16], strides = [1, 1]} : vector<22x16xf32> to vector<16x16xf32>
      %274 = vector.broadcast %268 : f32 to vector<16x16xf32>
      %275 = arith.mulf %274, %273 : vector<16x16xf32>
      %276 = arith.addf %272, %275 : vector<16x16xf32>
      %c31 = arith.constant 31 : index
      %277 = memref.load %arg2[%c31] : memref<98xf32, #tpu.memory_space<smem>>
      %c80 = arith.constant 80 : index
      %278 = memref.load %arg2[%c80] : memref<98xf32, #tpu.memory_space<smem>>
      %279 = vector.extract_strided_slice %235 {offsets = [4, 0], sizes = [16, 16], strides = [1, 1]} : vector<22x16xf32> to vector<16x16xf32>
      %280 = vector.broadcast %277 : f32 to vector<16x16xf32>
      %281 = arith.mulf %280, %279 : vector<16x16xf32>
      %282 = arith.addf %246, %281 : vector<16x16xf32>
      %283 = vector.extract_strided_slice %236 {offsets = [4, 0], sizes = [16, 16], strides = [1, 1]} : vector<22x16xf32> to vector<16x16xf32>
      %284 = vector.broadcast %278 : f32 to vector<16x16xf32>
      %285 = arith.mulf %284, %283 : vector<16x16xf32>
      %286 = arith.addf %282, %285 : vector<16x16xf32>
      %c38 = arith.constant 38 : index
      %287 = memref.load %arg2[%c38] : memref<98xf32, #tpu.memory_space<smem>>
      %c87 = arith.constant 87 : index
      %288 = memref.load %arg2[%c87] : memref<98xf32, #tpu.memory_space<smem>>
      %289 = vector.extract_strided_slice %235 {offsets = [5, 0], sizes = [16, 16], strides = [1, 1]} : vector<22x16xf32> to vector<16x16xf32>
      %290 = vector.broadcast %287 : f32 to vector<16x16xf32>
      %291 = arith.mulf %290, %289 : vector<16x16xf32>
      %292 = arith.addf %256, %291 : vector<16x16xf32>
      %293 = vector.extract_strided_slice %236 {offsets = [5, 0], sizes = [16, 16], strides = [1, 1]} : vector<22x16xf32> to vector<16x16xf32>
      %294 = vector.broadcast %288 : f32 to vector<16x16xf32>
      %295 = arith.mulf %294, %293 : vector<16x16xf32>
      %296 = arith.addf %292, %295 : vector<16x16xf32>
      %c45 = arith.constant 45 : index
      %297 = memref.load %arg2[%c45] : memref<98xf32, #tpu.memory_space<smem>>
      %c94 = arith.constant 94 : index
      %298 = memref.load %arg2[%c94] : memref<98xf32, #tpu.memory_space<smem>>
      %299 = vector.extract_strided_slice %235 {offsets = [6, 0], sizes = [16, 16], strides = [1, 1]} : vector<22x16xf32> to vector<16x16xf32>
      %300 = vector.broadcast %297 : f32 to vector<16x16xf32>
      %301 = arith.mulf %300, %299 : vector<16x16xf32>
      %302 = arith.addf %266, %301 : vector<16x16xf32>
      %303 = vector.extract_strided_slice %236 {offsets = [6, 0], sizes = [16, 16], strides = [1, 1]} : vector<22x16xf32> to vector<16x16xf32>
      %304 = vector.broadcast %298 : f32 to vector<16x16xf32>
      %305 = arith.mulf %304, %303 : vector<16x16xf32>
      %306 = arith.addf %302, %305 : vector<16x16xf32>
      %307 = vector.extract_strided_slice %13 {offsets = [0, 4], sizes = [22, 16], strides = [1, 1]} : vector<22x22xf32> to vector<22x16xf32>
      %308 = vector.extract_strided_slice %14 {offsets = [0, 4], sizes = [22, 16], strides = [1, 1]} : vector<22x22xf32> to vector<22x16xf32>
      %c4 = arith.constant 4 : index
      %309 = memref.load %arg2[%c4] : memref<98xf32, #tpu.memory_space<smem>>
      %c53 = arith.constant 53 : index
      %310 = memref.load %arg2[%c53] : memref<98xf32, #tpu.memory_space<smem>>
      %311 = vector.extract_strided_slice %307 {offsets = [0, 0], sizes = [16, 16], strides = [1, 1]} : vector<22x16xf32> to vector<16x16xf32>
      %312 = vector.broadcast %309 : f32 to vector<16x16xf32>
      %313 = arith.mulf %312, %311 : vector<16x16xf32>
      %314 = arith.addf %276, %313 : vector<16x16xf32>
      %315 = vector.extract_strided_slice %308 {offsets = [0, 0], sizes = [16, 16], strides = [1, 1]} : vector<22x16xf32> to vector<16x16xf32>
      %316 = vector.broadcast %310 : f32 to vector<16x16xf32>
      %317 = arith.mulf %316, %315 : vector<16x16xf32>
      %318 = arith.addf %314, %317 : vector<16x16xf32>
      %c11 = arith.constant 11 : index
      %319 = memref.load %arg2[%c11] : memref<98xf32, #tpu.memory_space<smem>>
      %c60 = arith.constant 60 : index
      %320 = memref.load %arg2[%c60] : memref<98xf32, #tpu.memory_space<smem>>
      %321 = vector.extract_strided_slice %307 {offsets = [1, 0], sizes = [16, 16], strides = [1, 1]} : vector<22x16xf32> to vector<16x16xf32>
      %322 = vector.broadcast %319 : f32 to vector<16x16xf32>
      %323 = arith.mulf %322, %321 : vector<16x16xf32>
      %324 = arith.addf %286, %323 : vector<16x16xf32>
      %325 = vector.extract_strided_slice %308 {offsets = [1, 0], sizes = [16, 16], strides = [1, 1]} : vector<22x16xf32> to vector<16x16xf32>
      %326 = vector.broadcast %320 : f32 to vector<16x16xf32>
      %327 = arith.mulf %326, %325 : vector<16x16xf32>
      %328 = arith.addf %324, %327 : vector<16x16xf32>
      %c18 = arith.constant 18 : index
      %329 = memref.load %arg2[%c18] : memref<98xf32, #tpu.memory_space<smem>>
      %c67 = arith.constant 67 : index
      %330 = memref.load %arg2[%c67] : memref<98xf32, #tpu.memory_space<smem>>
      %331 = vector.extract_strided_slice %307 {offsets = [2, 0], sizes = [16, 16], strides = [1, 1]} : vector<22x16xf32> to vector<16x16xf32>
      %332 = vector.broadcast %329 : f32 to vector<16x16xf32>
      %333 = arith.mulf %332, %331 : vector<16x16xf32>
      %334 = arith.addf %296, %333 : vector<16x16xf32>
      %335 = vector.extract_strided_slice %308 {offsets = [2, 0], sizes = [16, 16], strides = [1, 1]} : vector<22x16xf32> to vector<16x16xf32>
      %336 = vector.broadcast %330 : f32 to vector<16x16xf32>
      %337 = arith.mulf %336, %335 : vector<16x16xf32>
      %338 = arith.addf %334, %337 : vector<16x16xf32>
      %c25 = arith.constant 25 : index
      %339 = memref.load %arg2[%c25] : memref<98xf32, #tpu.memory_space<smem>>
      %c74 = arith.constant 74 : index
      %340 = memref.load %arg2[%c74] : memref<98xf32, #tpu.memory_space<smem>>
      %341 = vector.extract_strided_slice %307 {offsets = [3, 0], sizes = [16, 16], strides = [1, 1]} : vector<22x16xf32> to vector<16x16xf32>
      %342 = vector.broadcast %339 : f32 to vector<16x16xf32>
      %343 = arith.mulf %342, %341 : vector<16x16xf32>
      %344 = arith.addf %306, %343 : vector<16x16xf32>
      %345 = vector.extract_strided_slice %308 {offsets = [3, 0], sizes = [16, 16], strides = [1, 1]} : vector<22x16xf32> to vector<16x16xf32>
      %346 = vector.broadcast %340 : f32 to vector<16x16xf32>
      %347 = arith.mulf %346, %345 : vector<16x16xf32>
      %348 = arith.addf %344, %347 : vector<16x16xf32>
      %c32 = arith.constant 32 : index
      %349 = memref.load %arg2[%c32] : memref<98xf32, #tpu.memory_space<smem>>
      %c81 = arith.constant 81 : index
      %350 = memref.load %arg2[%c81] : memref<98xf32, #tpu.memory_space<smem>>
      %351 = vector.extract_strided_slice %307 {offsets = [4, 0], sizes = [16, 16], strides = [1, 1]} : vector<22x16xf32> to vector<16x16xf32>
      %352 = vector.broadcast %349 : f32 to vector<16x16xf32>
      %353 = arith.mulf %352, %351 : vector<16x16xf32>
      %354 = arith.addf %318, %353 : vector<16x16xf32>
      %355 = vector.extract_strided_slice %308 {offsets = [4, 0], sizes = [16, 16], strides = [1, 1]} : vector<22x16xf32> to vector<16x16xf32>
      %356 = vector.broadcast %350 : f32 to vector<16x16xf32>
      %357 = arith.mulf %356, %355 : vector<16x16xf32>
      %358 = arith.addf %354, %357 : vector<16x16xf32>
      %c39 = arith.constant 39 : index
      %359 = memref.load %arg2[%c39] : memref<98xf32, #tpu.memory_space<smem>>
      %c88 = arith.constant 88 : index
      %360 = memref.load %arg2[%c88] : memref<98xf32, #tpu.memory_space<smem>>
      %361 = vector.extract_strided_slice %307 {offsets = [5, 0], sizes = [16, 16], strides = [1, 1]} : vector<22x16xf32> to vector<16x16xf32>
      %362 = vector.broadcast %359 : f32 to vector<16x16xf32>
      %363 = arith.mulf %362, %361 : vector<16x16xf32>
      %364 = arith.addf %328, %363 : vector<16x16xf32>
      %365 = vector.extract_strided_slice %308 {offsets = [5, 0], sizes = [16, 16], strides = [1, 1]} : vector<22x16xf32> to vector<16x16xf32>
      %366 = vector.broadcast %360 : f32 to vector<16x16xf32>
      %367 = arith.mulf %366, %365 : vector<16x16xf32>
      %368 = arith.addf %364, %367 : vector<16x16xf32>
      %c46 = arith.constant 46 : index
      %369 = memref.load %arg2[%c46] : memref<98xf32, #tpu.memory_space<smem>>
      %c95 = arith.constant 95 : index
      %370 = memref.load %arg2[%c95] : memref<98xf32, #tpu.memory_space<smem>>
      %371 = vector.extract_strided_slice %307 {offsets = [6, 0], sizes = [16, 16], strides = [1, 1]} : vector<22x16xf32> to vector<16x16xf32>
      %372 = vector.broadcast %369 : f32 to vector<16x16xf32>
      %373 = arith.mulf %372, %371 : vector<16x16xf32>
      %374 = arith.addf %338, %373 : vector<16x16xf32>
      %375 = vector.extract_strided_slice %308 {offsets = [6, 0], sizes = [16, 16], strides = [1, 1]} : vector<22x16xf32> to vector<16x16xf32>
      %376 = vector.broadcast %370 : f32 to vector<16x16xf32>
      %377 = arith.mulf %376, %375 : vector<16x16xf32>
      %378 = arith.addf %374, %377 : vector<16x16xf32>
      %379 = vector.extract_strided_slice %13 {offsets = [0, 5], sizes = [22, 16], strides = [1, 1]} : vector<22x22xf32> to vector<22x16xf32>
      %380 = vector.extract_strided_slice %14 {offsets = [0, 5], sizes = [22, 16], strides = [1, 1]} : vector<22x22xf32> to vector<22x16xf32>
      %c5 = arith.constant 5 : index
      %381 = memref.load %arg2[%c5] : memref<98xf32, #tpu.memory_space<smem>>
      %c54 = arith.constant 54 : index
      %382 = memref.load %arg2[%c54] : memref<98xf32, #tpu.memory_space<smem>>
      %383 = vector.extract_strided_slice %379 {offsets = [0, 0], sizes = [16, 16], strides = [1, 1]} : vector<22x16xf32> to vector<16x16xf32>
      %384 = vector.broadcast %381 : f32 to vector<16x16xf32>
      %385 = arith.mulf %384, %383 : vector<16x16xf32>
      %386 = arith.addf %348, %385 : vector<16x16xf32>
      %387 = vector.extract_strided_slice %380 {offsets = [0, 0], sizes = [16, 16], strides = [1, 1]} : vector<22x16xf32> to vector<16x16xf32>
      %388 = vector.broadcast %382 : f32 to vector<16x16xf32>
      %389 = arith.mulf %388, %387 : vector<16x16xf32>
      %390 = arith.addf %386, %389 : vector<16x16xf32>
      %c12 = arith.constant 12 : index
      %391 = memref.load %arg2[%c12] : memref<98xf32, #tpu.memory_space<smem>>
      %c61 = arith.constant 61 : index
      %392 = memref.load %arg2[%c61] : memref<98xf32, #tpu.memory_space<smem>>
      %393 = vector.extract_strided_slice %379 {offsets = [1, 0], sizes = [16, 16], strides = [1, 1]} : vector<22x16xf32> to vector<16x16xf32>
      %394 = vector.broadcast %391 : f32 to vector<16x16xf32>
      %395 = arith.mulf %394, %393 : vector<16x16xf32>
      %396 = arith.addf %358, %395 : vector<16x16xf32>
      %397 = vector.extract_strided_slice %380 {offsets = [1, 0], sizes = [16, 16], strides = [1, 1]} : vector<22x16xf32> to vector<16x16xf32>
      %398 = vector.broadcast %392 : f32 to vector<16x16xf32>
      %399 = arith.mulf %398, %397 : vector<16x16xf32>
      %400 = arith.addf %396, %399 : vector<16x16xf32>
      %c19 = arith.constant 19 : index
      %401 = memref.load %arg2[%c19] : memref<98xf32, #tpu.memory_space<smem>>
      %c68 = arith.constant 68 : index
      %402 = memref.load %arg2[%c68] : memref<98xf32, #tpu.memory_space<smem>>
      %403 = vector.extract_strided_slice %379 {offsets = [2, 0], sizes = [16, 16], strides = [1, 1]} : vector<22x16xf32> to vector<16x16xf32>
      %404 = vector.broadcast %401 : f32 to vector<16x16xf32>
      %405 = arith.mulf %404, %403 : vector<16x16xf32>
      %406 = arith.addf %368, %405 : vector<16x16xf32>
      %407 = vector.extract_strided_slice %380 {offsets = [2, 0], sizes = [16, 16], strides = [1, 1]} : vector<22x16xf32> to vector<16x16xf32>
      %408 = vector.broadcast %402 : f32 to vector<16x16xf32>
      %409 = arith.mulf %408, %407 : vector<16x16xf32>
      %410 = arith.addf %406, %409 : vector<16x16xf32>
      %c26 = arith.constant 26 : index
      %411 = memref.load %arg2[%c26] : memref<98xf32, #tpu.memory_space<smem>>
      %c75 = arith.constant 75 : index
      %412 = memref.load %arg2[%c75] : memref<98xf32, #tpu.memory_space<smem>>
      %413 = vector.extract_strided_slice %379 {offsets = [3, 0], sizes = [16, 16], strides = [1, 1]} : vector<22x16xf32> to vector<16x16xf32>
      %414 = vector.broadcast %411 : f32 to vector<16x16xf32>
      %415 = arith.mulf %414, %413 : vector<16x16xf32>
      %416 = arith.addf %378, %415 : vector<16x16xf32>
      %417 = vector.extract_strided_slice %380 {offsets = [3, 0], sizes = [16, 16], strides = [1, 1]} : vector<22x16xf32> to vector<16x16xf32>
      %418 = vector.broadcast %412 : f32 to vector<16x16xf32>
      %419 = arith.mulf %418, %417 : vector<16x16xf32>
      %420 = arith.addf %416, %419 : vector<16x16xf32>
      %c33 = arith.constant 33 : index
      %421 = memref.load %arg2[%c33] : memref<98xf32, #tpu.memory_space<smem>>
      %c82 = arith.constant 82 : index
      %422 = memref.load %arg2[%c82] : memref<98xf32, #tpu.memory_space<smem>>
      %423 = vector.extract_strided_slice %379 {offsets = [4, 0], sizes = [16, 16], strides = [1, 1]} : vector<22x16xf32> to vector<16x16xf32>
      %424 = vector.broadcast %421 : f32 to vector<16x16xf32>
      %425 = arith.mulf %424, %423 : vector<16x16xf32>
      %426 = arith.addf %390, %425 : vector<16x16xf32>
      %427 = vector.extract_strided_slice %380 {offsets = [4, 0], sizes = [16, 16], strides = [1, 1]} : vector<22x16xf32> to vector<16x16xf32>
      %428 = vector.broadcast %422 : f32 to vector<16x16xf32>
      %429 = arith.mulf %428, %427 : vector<16x16xf32>
      %430 = arith.addf %426, %429 : vector<16x16xf32>
      %c40 = arith.constant 40 : index
      %431 = memref.load %arg2[%c40] : memref<98xf32, #tpu.memory_space<smem>>
      %c89 = arith.constant 89 : index
      %432 = memref.load %arg2[%c89] : memref<98xf32, #tpu.memory_space<smem>>
      %433 = vector.extract_strided_slice %379 {offsets = [5, 0], sizes = [16, 16], strides = [1, 1]} : vector<22x16xf32> to vector<16x16xf32>
      %434 = vector.broadcast %431 : f32 to vector<16x16xf32>
      %435 = arith.mulf %434, %433 : vector<16x16xf32>
      %436 = arith.addf %400, %435 : vector<16x16xf32>
      %437 = vector.extract_strided_slice %380 {offsets = [5, 0], sizes = [16, 16], strides = [1, 1]} : vector<22x16xf32> to vector<16x16xf32>
      %438 = vector.broadcast %432 : f32 to vector<16x16xf32>
      %439 = arith.mulf %438, %437 : vector<16x16xf32>
      %440 = arith.addf %436, %439 : vector<16x16xf32>
      %c47 = arith.constant 47 : index
      %441 = memref.load %arg2[%c47] : memref<98xf32, #tpu.memory_space<smem>>
      %c96 = arith.constant 96 : index
      %442 = memref.load %arg2[%c96] : memref<98xf32, #tpu.memory_space<smem>>
      %443 = vector.extract_strided_slice %379 {offsets = [6, 0], sizes = [16, 16], strides = [1, 1]} : vector<22x16xf32> to vector<16x16xf32>
      %444 = vector.broadcast %441 : f32 to vector<16x16xf32>
      %445 = arith.mulf %444, %443 : vector<16x16xf32>
      %446 = arith.addf %410, %445 : vector<16x16xf32>
      %447 = vector.extract_strided_slice %380 {offsets = [6, 0], sizes = [16, 16], strides = [1, 1]} : vector<22x16xf32> to vector<16x16xf32>
      %448 = vector.broadcast %442 : f32 to vector<16x16xf32>
      %449 = arith.mulf %448, %447 : vector<16x16xf32>
      %450 = arith.addf %446, %449 : vector<16x16xf32>
      %451 = vector.extract_strided_slice %13 {offsets = [0, 6], sizes = [22, 16], strides = [1, 1]} : vector<22x22xf32> to vector<22x16xf32>
      %452 = vector.extract_strided_slice %14 {offsets = [0, 6], sizes = [22, 16], strides = [1, 1]} : vector<22x22xf32> to vector<22x16xf32>
      %c6 = arith.constant 6 : index
      %453 = memref.load %arg2[%c6] : memref<98xf32, #tpu.memory_space<smem>>
      %c55 = arith.constant 55 : index
      %454 = memref.load %arg2[%c55] : memref<98xf32, #tpu.memory_space<smem>>
      %455 = vector.extract_strided_slice %451 {offsets = [0, 0], sizes = [16, 16], strides = [1, 1]} : vector<22x16xf32> to vector<16x16xf32>
      %456 = vector.broadcast %453 : f32 to vector<16x16xf32>
      %457 = arith.mulf %456, %455 : vector<16x16xf32>
      %458 = arith.addf %420, %457 : vector<16x16xf32>
      %459 = vector.extract_strided_slice %452 {offsets = [0, 0], sizes = [16, 16], strides = [1, 1]} : vector<22x16xf32> to vector<16x16xf32>
      %460 = vector.broadcast %454 : f32 to vector<16x16xf32>
      %461 = arith.mulf %460, %459 : vector<16x16xf32>
      %462 = arith.addf %458, %461 : vector<16x16xf32>
      %c13 = arith.constant 13 : index
      %463 = memref.load %arg2[%c13] : memref<98xf32, #tpu.memory_space<smem>>
      %c62 = arith.constant 62 : index
      %464 = memref.load %arg2[%c62] : memref<98xf32, #tpu.memory_space<smem>>
      %465 = vector.extract_strided_slice %451 {offsets = [1, 0], sizes = [16, 16], strides = [1, 1]} : vector<22x16xf32> to vector<16x16xf32>
      %466 = vector.broadcast %463 : f32 to vector<16x16xf32>
      %467 = arith.mulf %466, %465 : vector<16x16xf32>
      %468 = arith.addf %430, %467 : vector<16x16xf32>
      %469 = vector.extract_strided_slice %452 {offsets = [1, 0], sizes = [16, 16], strides = [1, 1]} : vector<22x16xf32> to vector<16x16xf32>
      %470 = vector.broadcast %464 : f32 to vector<16x16xf32>
      %471 = arith.mulf %470, %469 : vector<16x16xf32>
      %472 = arith.addf %468, %471 : vector<16x16xf32>
      %c20 = arith.constant 20 : index
      %473 = memref.load %arg2[%c20] : memref<98xf32, #tpu.memory_space<smem>>
      %c69 = arith.constant 69 : index
      %474 = memref.load %arg2[%c69] : memref<98xf32, #tpu.memory_space<smem>>
      %475 = vector.extract_strided_slice %451 {offsets = [2, 0], sizes = [16, 16], strides = [1, 1]} : vector<22x16xf32> to vector<16x16xf32>
      %476 = vector.broadcast %473 : f32 to vector<16x16xf32>
      %477 = arith.mulf %476, %475 : vector<16x16xf32>
      %478 = arith.addf %440, %477 : vector<16x16xf32>
      %479 = vector.extract_strided_slice %452 {offsets = [2, 0], sizes = [16, 16], strides = [1, 1]} : vector<22x16xf32> to vector<16x16xf32>
      %480 = vector.broadcast %474 : f32 to vector<16x16xf32>
      %481 = arith.mulf %480, %479 : vector<16x16xf32>
      %482 = arith.addf %478, %481 : vector<16x16xf32>
      %c27 = arith.constant 27 : index
      %483 = memref.load %arg2[%c27] : memref<98xf32, #tpu.memory_space<smem>>
      %c76 = arith.constant 76 : index
      %484 = memref.load %arg2[%c76] : memref<98xf32, #tpu.memory_space<smem>>
      %485 = vector.extract_strided_slice %451 {offsets = [3, 0], sizes = [16, 16], strides = [1, 1]} : vector<22x16xf32> to vector<16x16xf32>
      %486 = vector.broadcast %483 : f32 to vector<16x16xf32>
      %487 = arith.mulf %486, %485 : vector<16x16xf32>
      %488 = arith.addf %450, %487 : vector<16x16xf32>
      %489 = vector.extract_strided_slice %452 {offsets = [3, 0], sizes = [16, 16], strides = [1, 1]} : vector<22x16xf32> to vector<16x16xf32>
      %490 = vector.broadcast %484 : f32 to vector<16x16xf32>
      %491 = arith.mulf %490, %489 : vector<16x16xf32>
      %492 = arith.addf %488, %491 : vector<16x16xf32>
      %c34 = arith.constant 34 : index
      %493 = memref.load %arg2[%c34] : memref<98xf32, #tpu.memory_space<smem>>
      %c83 = arith.constant 83 : index
      %494 = memref.load %arg2[%c83] : memref<98xf32, #tpu.memory_space<smem>>
      %495 = vector.extract_strided_slice %451 {offsets = [4, 0], sizes = [16, 16], strides = [1, 1]} : vector<22x16xf32> to vector<16x16xf32>
      %496 = vector.broadcast %493 : f32 to vector<16x16xf32>
      %497 = arith.mulf %496, %495 : vector<16x16xf32>
      %498 = arith.addf %462, %497 : vector<16x16xf32>
      %499 = vector.extract_strided_slice %452 {offsets = [4, 0], sizes = [16, 16], strides = [1, 1]} : vector<22x16xf32> to vector<16x16xf32>
      %500 = vector.broadcast %494 : f32 to vector<16x16xf32>
      %501 = arith.mulf %500, %499 : vector<16x16xf32>
      %502 = arith.addf %498, %501 : vector<16x16xf32>
      %c41 = arith.constant 41 : index
      %503 = memref.load %arg2[%c41] : memref<98xf32, #tpu.memory_space<smem>>
      %c90 = arith.constant 90 : index
      %504 = memref.load %arg2[%c90] : memref<98xf32, #tpu.memory_space<smem>>
      %505 = vector.extract_strided_slice %451 {offsets = [5, 0], sizes = [16, 16], strides = [1, 1]} : vector<22x16xf32> to vector<16x16xf32>
      %506 = vector.broadcast %503 : f32 to vector<16x16xf32>
      %507 = arith.mulf %506, %505 : vector<16x16xf32>
      %508 = arith.addf %472, %507 : vector<16x16xf32>
      %509 = vector.extract_strided_slice %452 {offsets = [5, 0], sizes = [16, 16], strides = [1, 1]} : vector<22x16xf32> to vector<16x16xf32>
      %510 = vector.broadcast %504 : f32 to vector<16x16xf32>
      %511 = arith.mulf %510, %509 : vector<16x16xf32>
      %512 = arith.addf %508, %511 : vector<16x16xf32>
      %c48 = arith.constant 48 : index
      %513 = memref.load %arg2[%c48] : memref<98xf32, #tpu.memory_space<smem>>
      %c97 = arith.constant 97 : index
      %514 = memref.load %arg2[%c97] : memref<98xf32, #tpu.memory_space<smem>>
      %515 = vector.extract_strided_slice %451 {offsets = [6, 0], sizes = [16, 16], strides = [1, 1]} : vector<22x16xf32> to vector<16x16xf32>
      %516 = vector.broadcast %513 : f32 to vector<16x16xf32>
      %517 = arith.mulf %516, %515 : vector<16x16xf32>
      %518 = arith.addf %482, %517 : vector<16x16xf32>
      %519 = vector.extract_strided_slice %452 {offsets = [6, 0], sizes = [16, 16], strides = [1, 1]} : vector<22x16xf32> to vector<16x16xf32>
      %520 = vector.broadcast %514 : f32 to vector<16x16xf32>
      %521 = arith.mulf %520, %519 : vector<16x16xf32>
      %522 = arith.addf %518, %521 : vector<16x16xf32>
      %523 = arith.addf %522, %492 : vector<16x16xf32>
      %524 = arith.addf %502, %512 : vector<16x16xf32>
      %525 = arith.addf %523, %524 : vector<16x16xf32>
      %526 = arith.negf %525 : vector<16x16xf32>
      %527 = math.exp %526 : vector<16x16xf32>
      %cst_18 = arith.constant 1.000000e+00 : f32
      %528 = vector.broadcast %cst_18 : f32 to vector<16x16xf32>
      %529 = arith.addf %528, %527 : vector<16x16xf32>
      %530 = arith.divf %528, %529 : vector<16x16xf32>
      %c0_19 = arith.constant 0 : index
      %c0_20 = arith.constant 0 : index
      %c0_21 = arith.constant 0 : index
      %531 = vector.load %arg4[%c0_19, %c0_20, %c0_21] : memref<1x16x16xf32, #tpu.memory_space<vmem>>, vector<1x16x16xf32>
      %532 = vector.shape_cast %531 : vector<1x16x16xf32> to vector<16x16xf32>
      %533 = vector.shape_cast %530 : vector<16x16xf32> to vector<1x16x16xf32>
      tpu.vector_store %arg4[%c0_19, %c0_20, %c0_21], %533 {strides = array<i32>} : memref<1x16x16xf32, #tpu.memory_space<vmem>>, vector<1x16x16xf32>,
    } else {
    }
    return
  }
  func.func @transform_0(%arg0: i32, %arg1: i32) -> i32 {
    %c0_i32 = arith.constant 0 : i32
    %c0_i32_0 = arith.constant 0 : i32
    return %c0_i32 : i32
  }
  func.func @transform_1(%arg0: i32, %arg1: i32) -> (i32, i32, i32, i32) {
    %c0_i32 = arith.constant 0 : i32
    %c0_i32_0 = arith.constant 0 : i32
    %c0_i32_1 = arith.constant 0 : i32
    return %arg0, %arg1, %c0_i32, %c0_i32_0 : i32, i32, i32, i32
  }
  func.func @transform_2(%arg0: i32, %arg1: i32) -> (i32, i32, i32) {
    %c0_i32 = arith.constant 0 : i32
    %c0_i32_0 = arith.constant 0 : i32
    %c0_i32_1 = arith.constant 0 : i32
    return %arg0, %c0_i32, %c0_i32_0 : i32, i32, i32
  }
}

</mosaic_0001>

<bundles_post_ra>
// kernel: spatial_attention.1
= control target key start
LH: loop header
LB: loop body
LE: loop exit
PB: predicated region body
PF: predicated region fallthrough
CT: control target
= control target key end

     0   :  { %7 = vsyncpa [#allocation7], 0  ;;  %s5068_s0 = inlined_call_operand.vmem [shape: f32[98], index: 0, kind: input, shape index: {}]   ;;  %s5069_s1 = inlined_call_operand.hbm [shape: f32[2,4,16,16], index: 1, kind: input, shape index: {}]   ;;  %s5070_s2 = inlined_call_operand.hbm [shape: f32[2,16,16], index: 2, kind: output, shape index: {}]  }
   0x1   :  { %8 = vsyncpa [#allocation5], 0 }
   0x2   :  { %10 = vsyncpa [#allocation5 + $0x1], 0 }
   0x3   :  { %11 = vsyncpa [#allocation6], 0 }
   0x4   :  { %13 = vsyncpa [#allocation6 + $0x1], 0  ;;  %s2959_s9 = smov 0   ;;  %s2961_s10 = smov 0  }
   0x5   :  { %s2963_s11 = smov 0   ;;  %s2965_s12 = smov 0  }
   0x6   :  { %s2967_s13 = smov 0   ;;  %s2969_s14 = smov 0  }
   0x7 LB: > { %s2573_s15 = sadd.s32 4294967295, %s2927_s14   ;;  %s2574_s16 = sadd.s32 4294967294, %s2927_s14   ;;  %s2927_s14 = sphi %s2969_s14, %s19_s14   ;;  %s2923_s13 = sphi %s2967_s13, %s5352_s13   ;;  %s2919_s12 = sphi %s2965_s12, %s5351_s12   ;;  %s2915_s11 = sphi %s2963_s11, %s5350_s11   ;;  %s2911_s10 = sphi %s2961_s10, %s5349_s10   ;;  %s2907_s9 = sphi %s2959_s9, %s5348_s9  }
   0x8   : > { %s61_s17 = sadd.s32 1, %s2915_s11  ;;  %p68_p0 = scmp.ne.s32.totalorder %s2915_s11, %s2911_s10 }
   0x9   : > { %p69_p1 = scmp.eq.s32.totalorder %s2927_s14, 0  ;;  %p74_p2 = scmp.ne.s32.totalorder %s2911_s10, %s2907_s9 }
   0xa   : > { %p2997_p3 = scmp.eq.s32.totalorder %s2573_s15, 0  ;;  %p98_p4 = scmp.eq.s32.totalorder %s2573_s15, 1 }
   0xb   : > { %p3001_p5 = por %p69_p1, %p68_p0  ;;  %p104_p6 = scmp.eq.s32.totalorder %s2574_s16, 1 }
   0xc   : > { %s5080_s18 = scalar_select %p2997_p3, 1, 0 }
   0xd   : > { %p3007_p7 = por %p2997_p3, %p74_p2  ;;  %p3011_p8 = por %p98_p4, %p68_p0 }
   0xe   : > { %p3015_p9 = por %p104_p6, %p74_p2  ;;  %p2575_p10 = scmp.ge.s32.totalorder %s2927_s14, 1 }
   0xf   : > { %s5082_s20 = scalar_select %p3007_p7, 1, 0 }
  0x10   : > { %s5083_s21 = scalar_select %p3011_p8, 1, 0 }
  0x11   : > { %s5084_s22 = scalar_select %p3015_p9, 1, 0 }
  0x12   : > { %p111_p11 = scmp.lt.s32.totalorder %s2927_s14, 3  ;;  %s124_s25 = sshll.u32 %s5068_s0, 4  ;;  %s125_s25 = int_to_ptr.vmem [resolvable:$true] %s124_s25 }
  0x13   : > { %p2712_p0 = scmp.lt.s32.totalorder %s2927_s14, 2  ;;  %s31_s29 = sadd.s32 1, %s2923_s13 }
  0x14   : > { %p3024_p12 = pnand %p2575_p10, %p111_p11  ;;  %p3045_p6 = scmp.ge.s32.totalorder %s31_s29, 2 }
  0x15   : > { %p3034_p2 = pnand %p2712_p0, %p3001_p5  ;;  %s135_s3 = sand.u32 1, %s2915_s11  }
  0x16   : > { %p2699_p1 = pneg %p3024_p12  ;;  %s2796_s4 = scalar_lea.vmem %s125_s25, 16 }
  0x17   : > { %p2797_p10 = scmp.ne.s32.totalorder %s125_s25, %s2796_s4  ;;  %p2804_p13 = scmp.lt.s32.totalorder %s125_s25, %s125_s25 }
  0x18   : > { %p3040_p4 = pnand %p2699_p1, %p2997_p3  ;;  %p2805_p9 = scmp.lt.s32.totalorder %s2796_s4, %s2796_s4 }
  0x1a   : > { %p2798_p11 = pneg %p3040_p4  ;;  %p2806_p8 = por %p2805_p9, %p2804_p13 }
  0x1c   : > { %p2799_p5 = pnand %p2798_p11, %p2797_p10 }
  0x1e   : > { %p2800_p0 = pneg %p2799_p5 }
  0x20   : > { %p2807_p1 = pnand %p2806_p8, %p2800_p0 }
  0x22   : > { %2810 = shalt.err (!%p2807_p1)
}
  0x23   : > { %s2929_s5 = smov [#allocation4]   ;;  %s5354_s29 = smov (%p3045_p6, %s31_s29), 0 }
  0x24   : > { %2702 = dma.vmem_to_smem (!%p3040_p4), %s125_s25, 16, %s2929_s5, [#allocation7]  }
  0x25   : > { %s2578_s6 = sshll.u32 %s135_s3, 6  ;;  %s56_s7 = ssub.s32 %s2923_s13, %s5354_s29 }
  0x26   : > { %p59_p9 = scmp.eq.s32.totalorder %s56_s7, 0  ;;  %s2689_s8 = sshll.u32 %s2923_s13, 10 }
  0x27   : > { %s3064_s19 = scalar_lea.hbm %s5069_s1, %s2689_s8  ;;  %s139_s23 = scalar_lea.vmem [#allocation8], %s2578_s6 }
  0x28   : > { %s149_s24 = sshll.u32 %s139_s23, 4  ;;  %s3073_s28 = scalar_lea.sflag [#allocation5], %s135_s3  ;;  %s3071_s24 = int_to_ptr.vmem [resolvable:$true] %s149_s24 }
  0x29   : > { %s3069_s25 = scalar_select %p59_p9, %s2915_s11, %s61_s17  }
  0x2a   : > { %s2811_s30 = scalar_lea.hbm %s3064_s19, 1024  ;;  %p2813_p13 = pneg %p3034_p2 }
  0x2b   : > { %p2812_p8 = scmp.ne.s32.totalorder %s3064_s19, %s2811_s30  ;;  %s2816_s6 = scalar_lea.hbm %s5069_s1, 2048 }
  0x2c   : > { %p2817_p10 = scmp.lt.u32.totalorder %s3064_s19, %s5069_s1  ;;  %p2818_p11 = scmp.lt.u32.totalorder %s2816_s6, %s2811_s30 }
  0x2d   : > { %p2814_p4 = pnand %p2813_p13, %p2812_p8  ;;  %p2820_p0 = scmp.lt.u32.totalorder %s2811_s30, %s3064_s19 }
  0x2e   : > { %p2819_p5 = por %p2818_p11, %p2817_p10 }
  0x2f   : > { %p2815_p6 = pneg %p2814_p4 }
  0x30   : > { %p2821_p1 = por %p2820_p0, %p2819_p5 }
  0x32   : > { %p2822_p9 = pnand %p2821_p1, %p2815_p6 }
  0x34   : > { %2825 = shalt.err (!%p2822_p9)
}
  0x35   : > { %s2826_s17 = scalar_lea.vmem %s3071_s24, 1024  ;;  %s2930_s3 = smov [#allocation8]  }
  0x36   : > { %p2827_p8 = scmp.ne.s32.totalorder %s3071_s24, %s2826_s17  ;;  %s2831_s15 = sshll.u32 %s2930_s3, 4  ;;  %s2832_s15 = int_to_ptr.vmem [resolvable:$false] %s2831_s15 }
  0x37   : > { %s2833_s16 = scalar_lea.vmem %s2832_s15, 2048  ;;  %p2834_p3 = scmp.lt.s32.totalorder %s3071_s24, %s2832_s15 }
  0x38   : > { %p2829_p4 = pnand %p2827_p8, %p2813_p13  ;;  %p2835_p10 = scmp.lt.s32.totalorder %s2833_s16, %s2826_s17 }
  0x3a   : > { %p2830_p7 = pneg %p2829_p4  ;;  %p2836_p11 = por %p2835_p10, %p2834_p3 }
  0x3c   : > { %p2837_p5 = pnand %p2836_p11, %p2830_p7 }
  0x3e   : > { %2840 = shalt.err (!%p2837_p5)
}
  0x3f   : > { %s2931_s23 = smov 128   ;;  %s2932_s30 = smov 8  }
  0x40   : > { %2706 = dma.hbm_to_vmem [thread:$0]  (!%p3034_p2), %s3064_s19, 1024, %s3071_s24, %s3073_s28, %s2931_s23, %s2931_s23, %s2932_s30  }
  0x41   : > { %161 = sbr.rel (%p3024_p12) target bundleno = 842 (0x34a), region = 28 }
  0x48   : > { %p5089_p13 = scmp.ne.s32.totalorder %s5080_s18, 0 }
  0x4a   : > { %2894 = dma.done.wait (%p5089_p13), [#allocation7], 16  }
  0x4b   : > { %2896 = vsyncadd (%p5089_p13), [#allocation7], 4294967280  ;;  %s3108_s4 = sand.u32 1, %s2911_s10   ;;  %p5090_p3 = scmp.ne.s32.totalorder %s5082_s20, 0 }
  0x4c   : > { %s2583_s5 = sshll.u32 %s3108_s4, 6  ;;  %s168_s6 = scalar_lea.sflag [#allocation5], %s3108_s4 }
  0x4d   : > { %s171_s7 = scalar_lea.vmem [#allocation8], %s2583_s5 }
  0x4e   : > { %2898 = dma.done.wait (%p5090_p3), %s168_s6, 1024  }
  0x4f   : > { %2900 = vsyncadd (%p5090_p3), %s168_s6, 4294966272 }
  0x50   : > { %176 = sfence }
  0x51   : > { %v194_v0 = vld [vmem:[%s171_s7] sm:$0xff]  ;;  %v196_v1 = vld [vmem:[%s171_s7 + $0x10] sm:$0xff]  ;;  %vm202_vm0 = vcmask 130048   ;;  %vm235_vm1 = vcmask 179200   ;;  %v195_v8 = vld [vmem:[%s171_s7 + $0x8] sm:$0xff]  ;;  %s2933_s18 = smov 3  }
  0x52   : > { %v198_v2 = vld [vmem:[%s171_s7 + $0x20] sm:$0xff]  ;;  %v200_v3 = vld [vmem:[%s171_s7 + $0x30] sm:$0xff]  ;;  %v217_v4 = vsel %vm202_vm0, %v194_v0, -inf  ;;  %v218_v5 = vsel %vm202_vm0, %v196_v1, -inf  ;;  %v203_v7 = vsel %vm202_vm0, %v194_v0, 0.0  ;;  %v204_v11 = vsel %vm202_vm0, %v196_v1, 0.0 }
  0x53   : > { %v219_v6 = vsel %vm202_vm0, %v198_v2, -inf  ;;  %v221_v10 = vsel %vm202_vm0, %v200_v3, -inf  ;;  %v206_v12 = vsel %vm202_vm0, %v198_v2, 0.0  ;;  %v197_v13 = vld [vmem:[%s171_s7 + $0x18] sm:$0xff]  ;;  %v199_v14 = vld [vmem:[%s171_s7 + $0x28] sm:$0xff]  ;;  %v205_v17 = vadd.f32 %v204_v11, %v203_v7  ;;  %s2599_s20 = sld [smem:[#allocation4 + $0x32]] }
  0x54   : > { %v220_v9 = vmax.f32 %v217_v4, %v219_v6  ;;  %v201_v15 = vld [vmem:[%s171_s7 + $0x38] sm:$0xff]  ;;  %v222_v16 = vmax.f32 %v218_v5, %v221_v10  ;;  %v208_v18 = vsel %vm202_vm0, %v200_v3, 0.0  ;;  %v224_v19 = vsel %vm202_vm0, %v195_v8, -inf  ;;  %s2601_s26 = sld [smem:[#allocation4 + $0x39]]  ;;  %s2603_s27 = sld [smem:[#allocation4 + $0x40]] }
  0x55   : > { %v225_v20 = vsel %vm202_vm0, %v197_v13, -inf  ;;  %v226_v21 = vsel %vm202_vm0, %v199_v14, -inf  ;;  %v228_v22 = vsel %vm202_vm0, %v201_v15, -inf  ;;  %v210_v23 = vsel %vm202_vm0, %v195_v8, 0.0  ;;  %s2605_s19 = sld [smem:[#allocation4 + $0x47]]  ;;  %s2935_s24 = smov 127  }
  0x56   : > { %v223_v24 = vmax.f32 %v220_v9, %v222_v16  ;;  %v207_v25 = vadd.f32 %v206_v12, %v205_v17  ;;  %v227_v26 = vmax.f32 %v224_v19, %v226_v21  ;;  %v229_v27 = vmax.f32 %v225_v20, %v228_v22  ;;  %s2607_s28 = sld [smem:[#allocation4 + $0x4e]]  ;;  %s2611_s8 = sld [smem:[#allocation4 + $0x5c]] }
  0x57   : > { %v211_v28 = vsel %vm202_vm0, %v197_v13, 0.0  ;;  %v213_v29 = vsel %vm202_vm0, %v199_v14, 0.0  ;;  %v2934_v33 = vmov 0.0   ;;  %v215_v34 = vsel %vm202_vm0, %v201_v15, 0.0  ;;  %s3169_s17 = sld [smem:[#allocation4 + $0x33]]  ;;  %s2609_s3 = sld [smem:[#allocation4 + $0x55]] }
  0x58   : > { %256 = vrot.lane.b32.xlu1 %v223_v24, %s2933_s18  ;;  %v209_v30 = vadd.f32 %v208_v18, %v207_v25  ;;  %v230_v31 = vmax.f32 %v227_v26, %v229_v27  ;;  %v212_v32 = vadd.f32 %v211_v28, %v210_v23  ;;  %240 = vst.msk [vmem:[#allocation3] sm:$0xff] %vm235_vm1, %v2934_v33  ;;  %241 = vst.msk [vmem:[#allocation3 + $0x8] sm:$0xff] %vm235_vm1, %v2934_v33  ;;  %vm238_vm2 = vcmask 177152   ;;  %s2615_s15 = sld [smem:[#allocation4 + $0x3a]]  ;;  %s2619_s16 = sld [smem:[#allocation4 + $0x48]] }
  0x59   : > { %236 = vst.msk [vmem:[#allocation2] sm:$0xff] %vm235_vm1, %v2934_v33  ;;  %237 = vst.msk [vmem:[#allocation2 + $0x8] sm:$0xff] %vm235_vm1, %v2934_v33  ;;  %vm251_vm3 = vcmask 154648   ;;  %v500_v41 = vstv %s2599_s20  ;;  %vm484_vm4 = vcmask 1042432   ;;  %vm529_vm5 = vcmask 1046528   ;;  %s2617_s23 = sld [smem:[#allocation4 + $0x41]] }
  0x5a   : > { %245 = vrot.lane.b32.xlu0 %v209_v30, %s2933_s18  ;;  %v214_v35 = vadd.f32 %v213_v29, %v212_v32  ;;  %242 = vst.msk [vmem:[#allocation3 + $0x10] sm:$0x3f] %vm238_vm2, %v2934_v33  ;;  %239 = vst.msk [vmem:[#allocation2 + $0x10] sm:$0x3f] %vm238_vm2, %v2934_v33  ;;  %v3143_v47 = vstv %s2601_s26  ;;  %v3151_v50 = vstv %s2603_s27  ;;  %s2936_s30 = smov 126   ;;  %s2621_s5 = sld [smem:[#allocation4 + $0x4f]] }
  0x5b   : > { %v3165_v57 = vstv %s2605_s19  ;;  %vm812_vm6 = vcmask 1041408   ;;  %s3265_s6 = sld [smem:[#allocation4 + $0x1]]  ;;  %vm907_vm7 = vcmask 1045504   ;;  %s2602_s7 = sld [smem:[#allocation4 + $0xf]]  ;;  %vm1140_vm8 = vcmask 1040384  }
  0x5c   : > { %258 = vrot.lane.b32.xlu1 %v230_v31, %s2933_s18  ;;  %v216_v36 = vadd.f32 %v215_v34, %v214_v35  ;;  %v3181_v0 = vstv %s2607_s28  ;;  %v3195_v6 = vstv %s2611_s8  ;;  %s2606_s20 = sld [smem:[#allocation4 + $0x1d]]  ;;  %s2610_s26 = sld [smem:[#allocation4 + $0x2b]]  ;;  %vm1285_vm9 = vcmask 1044480  }
  0x5d   : > { %v828_v9 = vstv %s3169_s17  ;;  %v3200_v10 = vstv %s2609_s3  ;;  %s3364_s27 = sld [smem:[#allocation4 + $0x2]]  ;;  %s2614_s19 = sld [smem:[#allocation4 + $0x9]]  ;;  %vm375_vm10 = vcmask 1043456  }
  0x5e   : > { %247 = vrot.lane.b32.xlu0 %v216_v36, %s2933_s18  ;;  %v3226_v23 = vstv %s2615_s15  ;;  %v3245_v30 = vstv %s2619_s16  ;;  %s2604_s18 = sld [smem:[#allocation4 + $0x16]]  ;;  %s2600_s28 = sld [smem:[#allocation4 + $0x8]] }
  0x5f   : > { %v3249_v33 = vstv %s2617_s23  ;;  %s2618_s8 = sld [smem:[#allocation4 + $0x17]]  ;;  %s2620_s17 = sld [smem:[#allocation4 + $0x1e]] }
  0x60   : > { %s2608_s3 = sld [smem:[#allocation4 + $0x24]]  ;;  %s2616_s15 = sld [smem:[#allocation4 + $0x10]] }
  0x61   : > { %s2622_s16 = sld [smem:[#allocation4 + $0x25]]  ;;  %s2623_s23 = sld [smem:[#allocation4 + $0x56]] }
  0x62   : > { %p5345_p12 = scmp.ne.s32.totalorder %s5083_s21, 0 }
  0xca   : > { %v257_v37 = vpop.permute.xlu1 %256 }
  0xcb   : > { %262 = vst.msk [vmem:[#allocation3 + $0x3] sm:$0xff] %vm251_vm3, %v257_v37  ;;  %v3259_v37 = vstv %s2621_s5  ;;  %s2625_s5 = sld [smem:[#allocation4 + $0x5d]] }
  0xcc   : > { %v246_v38 = vpop.permute.xlu0 %245 }
  0xcd   : > { %252 = vst.msk [vmem:[#allocation2 + $0x3] sm:$0xff] %vm251_vm3, %v246_v38 }
  0xce   : > { %v259_v39 = vpop.permute.xlu1 %258 }
  0xcf   : > { %263 = vst.msk [vmem:[#allocation3 + $0xb] sm:$0xff] %vm251_vm3, %v259_v39 }
  0xd0   : > { %v248_v40 = vpop.permute.xlu0 %247 }
  0xd1   : > { %253 = vst.msk [vmem:[#allocation2 + $0xb] sm:$0xff] %vm251_vm3, %v248_v40 }
  0xd2   : > { %v3136_v42 = vld [vmem:[#allocation3] sm:$0xff] }
  0xd3   : > { %v501_v43 = vmul.f32 %v500_v41, %v3136_v42  ;;  %v544_v53 = vmul.f32 %v3143_v47, %v3136_v42  ;;  %v829_v15 = vmul.f32 %v828_v9, %v3136_v42  ;;  %v736_v16 = vmul.f32 %v3200_v10, %v3136_v42 }
  0xd4   : > { %v875_v27 = vmul.f32 %v3226_v23, %v3136_v42  ;;  %v922_v40 = vmul.f32 %v3249_v33, %v3136_v42 }
  0xd5   : > { %v505_v44 = vrot.slane %v501_v43, 5  ;;  %v550_v59 = vrot.slane %v544_v53, 1  ;;  %v833_v20 = vrot.slane %v829_v15, 6  ;;  %v742_v21 = vrot.slane %v736_v16, 5 }
  0xd6   : > { %v3139_v45 = vld [vmem:[#allocation3 + $0x8] sm:$0xff]  ;;  %v3141_v46 = vld [vmem:[#allocation3 + $0x10] sm:$0x3f]  ;;  %v881_v31 = vrot.slane %v875_v27, 6  ;;  %v3330_v16 = vstv %s2602_s7  ;;  %s3607_s7 = sld [smem:[#allocation4 + $0x34]] }
  0xd7   : > { %508 = vrot.lane.b32.xlu1 %v505_v44, %s2935_s24  ;;  %v502_v48 = vmul.f32 %v500_v41, %v3139_v45  ;;  %v3149_v49 = vmul.f32 %v3143_v47, %v3139_v45  ;;  %v592_v52 = vmul.f32 %v3151_v50, %v3141_v46  ;;  %v3162_v56 = vmul.f32 %v3151_v50, %v3139_v45 }
  0xd8   : > { %v642_v60 = vmul.f32 %v3165_v57, %v3141_v46  ;;  %v3178_v63 = vmul.f32 %v3165_v57, %v3139_v45  ;;  %v692_v2 = vmul.f32 %v3181_v0, %v3141_v46  ;;  %v3192_v5 = vmul.f32 %v3181_v0, %v3139_v45 }
  0xd9   : > { %v506_v51 = vrot.slane %v502_v48, 5  ;;  %v551_v55 = vrot.slane %v3149_v49, 1  ;;  %v599_v58 = vrot.slane %v592_v52, 1  ;;  %v597_v62 = vrot.slane %v3162_v56, 1 }
  0xda   : > { %v649_v1 = vrot.slane %v642_v60, 1  ;;  %v647_v4 = vrot.slane %v3178_v63, 1  ;;  %v699_v7 = vrot.slane %v692_v2, 1  ;;  %v784_v8 = vmul.f32 %v3195_v6, %v3141_v46 }
  0xdb   : > { %512 = vrot.lane.b32.xlu1 %v506_v51, %s2935_s24  ;;  %v507_v54 = vsel %vm484_vm4, %v505_v44, %v506_v51  ;;  %v552_v61 = vsel %vm529_vm5, %v550_v59, %v551_v55  ;;  %v600_v3 = vsel %vm529_vm5, %v597_v62, %v599_v58  ;;  %v697_v12 = vrot.slane %v3192_v5, 1 }
  0xdc   : > { %510 = vrot.lane.b32.xlu0 %v507_v54, %s2935_s24  ;;  %v650_v11 = vsel %vm529_vm5, %v647_v4, %v649_v1  ;;  %v3209_v13 = vmul.f32 %v3200_v10, %v3139_v45  ;;  %v791_v14 = vrot.slane %v784_v8, 5  ;;  %v3222_v19 = vmul.f32 %v3195_v6, %v3139_v45 }
  0xdd   : > { %v700_v17 = vsel %vm529_vm5, %v697_v12, %v699_v7  ;;  %v830_v22 = vmul.f32 %v828_v9, %v3139_v45  ;;  %v3242_v29 = vmul.f32 %v3226_v23, %v3139_v45  ;;  %v970_v32 = vmul.f32 %v3245_v30, %v3141_v46 }
  0xde   : > { %v743_v18 = vrot.slane %v3209_v13, 5  ;;  %v789_v25 = vrot.slane %v3222_v19, 5  ;;  %v3256_v36 = vmul.f32 %v3249_v33, %v3139_v45  ;;  %v1020_v39 = vmul.f32 %v3259_v37, %v3141_v46 }
  0xdf   : > { %605 = vrot.lane.b32.xlu1 %v599_v58, %s2935_s24  ;;  %v834_v26 = vrot.slane %v830_v22, 6  ;;  %v882_v35 = vrot.slane %v3242_v29, 6  ;;  %v977_v38 = vrot.slane %v970_v32, 2  ;;  %v546_v41 = vmul.f32 %v3143_v47, %v3141_v46 }
  0xe0   : > { %555 = vrot.lane.b32.xlu0 %v552_v61, %s2935_s24  ;;  %v744_v24 = vsel %vm484_vm4, %v742_v21, %v743_v18  ;;  %v792_v28 = vsel %vm484_vm4, %v789_v25, %v791_v14  ;;  %v929_v44 = vrot.slane %v3256_v36, 2  ;;  %v3276_v48 = vmul.f32 %v3245_v30, %v3139_v45 }
  0xe1   : > { %v835_v34 = vsel %vm812_vm6, %v833_v20, %v834_v26  ;;  %v883_v43 = vsel %vm812_vm6, %v881_v31, %v882_v35  ;;  %v1027_v51 = vrot.slane %v1020_v39, 2  ;;  %v928_v52 = vrot.slane %v922_v40, 2 }
  0xe2   : > { %v553_v53 = vrot.slane %v546_v41, 1  ;;  %v975_v54 = vrot.slane %v3276_v48, 2  ;;  %v3286_v58 = vmul.f32 %v3259_v37, %v3139_v45  ;;  %v590_v59 = vmul.f32 %v3151_v50, %v3136_v42 }
  0xe3   : > { %655 = vrot.lane.b32.xlu1 %v649_v1, %s2935_s24  ;;  %v930_v47 = vsel %vm907_vm7, %v928_v52, %v929_v44  ;;  %v479_v60 = vstv %s3265_s6  ;;  %v3295_v1 = vld [vmem:[#allocation2] sm:$0xff]  ;;  %v640_v50 = vmul.f32 %v3165_v57, %v3136_v42  ;;  %v690_v57 = vmul.f32 %v3181_v0, %v3136_v42  ;;  %s3587_s6 = sld [smem:[#allocation4 + $0x3]] }
  0xe4   : > { %603 = vrot.lane.b32.xlu0 %v600_v3, %s2935_s24  ;;  %v554_v61 = vsel %vm529_vm5, %v551_v55, %v553_v53  ;;  %v978_v2 = vsel %vm907_vm7, %v975_v54, %v977_v38  ;;  %v1025_v3 = vrot.slane %v3286_v58, 2  ;;  %v3306_v49 = vmul.f32 %v479_v60, %v3295_v1 }
  0xe5   : > { %v646_v9 = vrot.slane %v640_v50, 1  ;;  %v738_v15 = vmul.f32 %v3200_v10, %v3141_v46  ;;  %v696_v0 = vrot.slane %v690_v57, 1  ;;  %v3346_v21 = vstv %s2604_s18  ;;  %s2628_s18 = sld [smem:[#allocation4 + $0xa]] }
  0xe6   : > { %v1028_v8 = vsel %vm907_vm7, %v1025_v3, %v1027_v51  ;;  %v782_v22 = vmul.f32 %v3195_v6, %v3136_v42  ;;  %v3351_v5 = vstv %s2606_s20  ;;  %v877_v27 = vmul.f32 %v3226_v23, %v3141_v46  ;;  %s2629_s20 = sld [smem:[#allocation4 + $0x3b]] }
  0xe7   : > { %705 = vrot.lane.b32.xlu1 %v699_v7, %s2935_s24  ;;  %v596_v7 = vrot.slane %v590_v59, 1  ;;  %v648_v56 = vsel %vm529_vm5, %v646_v9, %v647_v4  ;;  %v698_v63 = vsel %vm529_vm5, %v696_v0, %v697_v12  ;;  %v3380_v32 = vstv %s2610_s26  ;;  %s2937_s26 = smov 125  }
  0xe8   : > { %653 = vrot.lane.b32.xlu0 %v650_v11, %s2935_s24  ;;  %v485_v11 = vrot.slane %v3306_v49, 5  ;;  %v788_v6 = vrot.slane %v782_v22, 5  ;;  %v968_v29 = vmul.f32 %v3245_v30, %v3136_v42  ;;  %v1018_v30 = vmul.f32 %v3259_v37, %v3136_v42 }
  0xe9   : > { %v598_v55 = vsel %vm529_vm5, %v596_v7, %v597_v62  ;;  %v522_v52 = vstv %s2600_s28  ;;  %v715_v22 = vstv %s2608_s3  ;;  %s2633_s28 = sld [smem:[#allocation4 + $0x49]]  ;;  %s2636_s3 = sld [smem:[#allocation4 + $0x26]] }
  0xea   : > { %v974_v41 = vrot.slane %v968_v29, 2  ;;  %v1024_v37 = vrot.slane %v1018_v30, 2 }
  0xeb   : > { %797 = vrot.lane.b32.xlu1 %v791_v14, %s2935_s24  ;;  %v3319_v14 = vld [vmem:[#allocation2 + $0x8] sm:$0xff] }
  0xec   : > { %703 = vrot.lane.b32.xlu0 %v700_v17, %s2935_s24  ;;  %v3325_v62 = vmul.f32 %v479_v60, %v3319_v14  ;;  %v3335_v17 = vld [vmem:[#allocation2 + $0x10] sm:$0x3f]  ;;  %v976_v36 = vsel %vm907_vm7, %v974_v41, %v975_v54  ;;  %v1026_v53 = vsel %vm907_vm7, %v1024_v37, %v1025_v3  ;;  %v524_v54 = vmul.f32 %v522_v52, %v3319_v14 }
  0xed   : > { %v3343_v10 = vmul.f32 %v3330_v16, %v3335_v17  ;;  %v3371_v13 = vmul.f32 %v3351_v5, %v3335_v17  ;;  %v525_v59 = vmul.f32 %v522_v52, %v3335_v17  ;;  %v3437_v60 = vstv %s2618_s8  ;;  %s2634_s8 = sld [smem:[#allocation4 + $0x1f]] }
  0xee   : > { %v486_v4 = vrot.slane %v3325_v62, 5  ;;  %v531_v3 = vrot.slane %v524_v54, 1  ;;  %v3450_v50 = vmul.f32 %v3437_v60, %v3335_v17  ;;  %v617_v57 = vmul.f32 %v3346_v21, %v3319_v14 }
  0xef   : > { %836 = vrot.lane.b32.xlu1 %v833_v20, %s2936_s30  ;;  %v745_v20 = vrot.slane %v738_v15, 5  ;;  %v533_v7 = vrot.slane %v525_v59, 1  ;;  %v900_v37 = vstv %s2616_s15  ;;  %s2637_s15 = sld [smem:[#allocation4 + $0x57]] }
  0xf0   : > { %747 = vrot.lane.b32.xlu0 %v744_v24, %s2935_s24  ;;  %v575_v24 = vrot.slane %v3343_v10, 1  ;;  %v487_v58 = vsel %vm484_vm4, %v485_v11, %v486_v4  ;;  %v953_v9 = vrot.slane %v3450_v50, 2  ;;  %v623_v0 = vrot.slane %v617_v57, 1 }
  0xf1   : > { %v746_v12 = vsel %vm484_vm4, %v743_v18, %v745_v20  ;;  %v790_v18 = vsel %vm484_vm4, %v788_v6, %v789_v25  ;;  %v675_v25 = vrot.slane %v3371_v13, 1  ;;  %v566_v20 = vmul.f32 %v3330_v16, %v3295_v1 }
  0xf2   : > { %v903_v54 = vmul.f32 %v900_v37, %v3335_v17  ;;  %v1067_v50 = vstv %s2623_s23  ;;  %s2639_s23 = sld [smem:[#allocation4 + $0x5e]] }
  0xf3   : > { %840 = vrot.lane.b32.xlu1 %v834_v26, %s2936_s30  ;;  %v3359_v26 = vmul.f32 %v3346_v21, %v3335_v17 }
  0xf4   : > { %795 = vrot.lane.b32.xlu0 %v792_v28, %s2935_s24  ;;  %v884_v28 = vrot.slane %v877_v27, 6  ;;  %v718_v27 = vmul.f32 %v715_v22, %v3335_v17 }
  0xf5   : > { %v625_v23 = vrot.slane %v3359_v26, 1 }
  0xf6   : > { %v885_v19 = vsel %vm812_vm6, %v882_v35, %v884_v28  ;;  %v725_v28 = vrot.slane %v718_v27, 5 }
  0xf7   : > { %886 = vrot.lane.b32.xlu1 %v881_v31, %s2936_s30  ;;  %v924_v31 = vmul.f32 %v3249_v33, %v3141_v46  ;;  %v807_v33 = vstv %s3364_s27  ;;  %v626_v10 = vsel %vm529_vm5, %v623_v0, %v625_v23  ;;  %s2630_s27 = sld [smem:[#allocation4 + $0x11]] }
  0xf8   : > { %838 = vrot.lane.b32.xlu0 %v835_v34, %s2936_s30  ;;  %v3405_v40 = vmul.f32 %v807_v33, %v3295_v1 }
  0xf9   : > { %v931_v34 = vrot.slane %v924_v31, 2  ;;  %v759_v31 = vmul.f32 %v3380_v32, %v3319_v14 }
  0xfb   : > { %983 = vrot.lane.b32.xlu1 %v977_v38, %s2936_s30  ;;  %v3391_v38 = vmul.f32 %v3380_v32, %v3335_v17  ;;  %v932_v35 = vsel %vm907_vm7, %v929_v44, %v931_v34  ;;  %v3418_v44 = vmul.f32 %v807_v33, %v3319_v14  ;;  %v666_v33 = vmul.f32 %v3351_v5, %v3295_v1 }
  0xfc   : > { %888 = vrot.lane.b32.xlu0 %v883_v43, %s2936_s30  ;;  %v813_v43 = vrot.slane %v3405_v40, 6  ;;  %v765_v13 = vrot.slane %v759_v31, 5 }
  0xfd   : > { %v767_v39 = vrot.slane %v3391_v38, 5  ;;  %v672_v29 = vrot.slane %v666_v33, 1 }
  0xff   : > { %1033 = vrot.lane.b32.xlu1 %v1027_v51, %s2936_s30  ;;  %v3420_v51 = vstv %s2614_s19  ;;  %v768_v41 = vsel %vm484_vm4, %v765_v13, %v767_v39  ;;  %s2632_s19 = sld [smem:[#allocation4 + $0x18]] }
 0x100   : > { %933 = vrot.lane.b32.xlu0 %v930_v47, %s2936_s30  ;;  %v3428_v48 = vmul.f32 %v3420_v51, %v3295_v1  ;;  %v814_v47 = vrot.slane %v3418_v44, 6 }
 0x102   : > { %v815_v38 = vsel %vm812_vm6, %v813_v43, %v814_v47 }
 0x103   : > { %557 = vrot.lane.b32.xlu1 %v554_v61, %s2935_s24  ;;  %v857_v61 = vrot.slane %v3428_v48, 6 }
 0x104   : > { %981 = vrot.lane.b32.xlu0 %v978_v2, %s2936_s30  ;;  %v3446_v2 = vstv %s2620_s17  ;;  %s2635_s17 = sld [smem:[#allocation4 + $0x50]] }
 0x105   : > { %v3460_v49 = vmul.f32 %v3446_v2, %v3335_v17  ;;  %v995_v57 = vmul.f32 %v3446_v2, %v3319_v14 }
 0x107   : > { %601 = vrot.lane.b32.xlu1 %v598_v55, %s2935_s24  ;;  %v567_v55 = vmul.f32 %v3330_v16, %v3319_v14  ;;  %v1003_v15 = vrot.slane %v3460_v49, 2  ;;  %v616_v16 = vmul.f32 %v3346_v21, %v3295_v1 }
 0x108   : > { %1031 = vrot.lane.b32.xlu0 %v1028_v8, %s2936_s30  ;;  %v534_v8 = vsel %vm529_vm5, %v531_v3, %v533_v7 }
 0x109   : > { %v622_v34 = vrot.slane %v616_v16, 1 }
 0x10b   : > { %651 = vrot.lane.b32.xlu1 %v648_v56, %s2935_s24  ;;  %v523_v56 = vmul.f32 %v522_v52, %v3295_v1  ;;  %v758_v52 = vmul.f32 %v3380_v32, %v3295_v1  ;;  %v853_v32 = vmul.f32 %v3420_v51, %v3335_v17 }
 0x10c   : > { %488 = vrot.lane.b32.xlu0 %v485_v11, %s2935_s24  ;;  %v573_v11 = vrot.slane %v567_v55, 1 }
 0x10d   : > { %v860_v55 = vrot.slane %v853_v32, 6 }
 0x10e   : > { %v576_v62 = vsel %vm529_vm5, %v573_v11, %v575_v24 }
 0x10f   : > { %701 = vrot.lane.b32.xlu1 %v698_v63, %s2935_s24  ;;  %v667_v63 = vmul.f32 %v3351_v5, %v3319_v14  ;;  %v852_v5 = vmul.f32 %v3420_v51, %v3319_v14  ;;  %v901_v51 = vmul.f32 %v900_v37, %v3295_v1 }
 0x110   : > { %492 = vrot.lane.b32.xlu0 %v486_v4, %s2935_s24  ;;  %v530_v4 = vrot.slane %v523_v56, 1 }
 0x112   : > { %v532_v6 = vsel %vm529_vm5, %v530_v4, %v531_v3  ;;  %v945_v3 = vmul.f32 %v3437_v60, %v3319_v14 }
 0x113   : > { %749 = vrot.lane.b32.xlu1 %v746_v12, %s2935_s24  ;;  %v673_v12 = vrot.slane %v667_v63, 1  ;;  %v1043_v63 = vstv %s2622_s16  ;;  %s2638_s16 = sld [smem:[#allocation4 + $0x2d]] }
 0x114   : > { %581 = vrot.lane.b32.xlu0 %v575_v24, %s2935_s24  ;;  %v717_v24 = vmul.f32 %v715_v22, %v3319_v14 }
 0x115   : > { %v676_v26 = vsel %vm529_vm5, %v673_v12, %v675_v25  ;;  %v674_v30 = vsel %vm529_vm5, %v672_v29, %v673_v12  ;;  %v1045_v12 = vmul.f32 %v1043_v63, %v3319_v14 }
 0x117   : > { %793 = vrot.lane.b32.xlu1 %v790_v18, %s2935_s24  ;;  %v572_v18 = vrot.slane %v566_v20, 1 }
 0x118   : > { %631 = vrot.lane.b32.xlu0 %v625_v23, %s2935_s24  ;;  %v723_v23 = vrot.slane %v717_v24, 5  ;;  %v1046_v24 = vmul.f32 %v1043_v63, %v3335_v17 }
 0x11a   : > { %v726_v21 = vsel %vm484_vm4, %v723_v23, %v725_v28  ;;  %v1069_v28 = vmul.f32 %v1067_v50, %v3139_v45 }
 0x11b   : > { %890 = vrot.lane.b32.xlu1 %v885_v19, %s2936_s30  ;;  %v574_v19 = vsel %vm529_vm5, %v572_v18, %v573_v11  ;;  %v951_v11 = vrot.slane %v945_v3, 2  ;;  %v1135_v3 = vstv %s3587_s6  ;;  %s2642_s6 = sld [smem:[#allocation4 + $0xb]] }
 0x11c   : > { %681 = vrot.lane.b32.xlu0 %v675_v25, %s2935_s24  ;;  %v624_v25 = vsel %vm529_vm5, %v622_v34, %v623_v0  ;;  %v944_v0 = vmul.f32 %v3437_v60, %v3295_v1  ;;  %v1068_v34 = vmul.f32 %v1067_v50, %v3136_v42 }
 0x11e   : > { %v950_v27 = vrot.slane %v944_v0, 2 }
 0x11f   : > { %935 = vrot.lane.b32.xlu1 %v932_v35, %s2936_s30  ;;  %v716_v35 = vmul.f32 %v715_v22, %v3295_v1  ;;  %v954_v22 = vsel %vm907_vm7, %v951_v11, %v953_v9 }
 0x120   : > { %773 = vrot.lane.b32.xlu0 %v767_v39, %s2935_s24  ;;  %v858_v39 = vrot.slane %v852_v5, 6  ;;  %v1070_v5 = vmul.f32 %v1067_v50, %v3141_v46 }
 0x122   : > { %v859_v40 = vsel %vm812_vm6, %v857_v61, %v858_v39  ;;  %v861_v56 = vsel %vm812_vm6, %v858_v39, %v860_v55  ;;  %v1113_v39 = vstv %s2625_s5  ;;  %s2641_s5 = sld [smem:[#allocation4 + $0x35]] }
 0x123   : > { %979 = vrot.lane.b32.xlu1 %v976_v36, %s2936_s30  ;;  %v722_v36 = vrot.slane %v716_v35, 5  ;;  %v1074_v35 = vrot.slane %v1068_v34, 2 }
 0x124   : > { %816 = vrot.lane.b32.xlu0 %v813_v43, %s2936_s30 }
 0x125   : > { %v724_v59 = vsel %vm484_vm4, %v722_v36, %v723_v23  ;;  %v1053_v23 = vrot.slane %v1046_v24, 2 }
 0x127   : > { %1029 = vrot.lane.b32.xlu1 %v1026_v53, %s2936_s30  ;;  %v902_v53 = vmul.f32 %v900_v37, %v3319_v14 }
 0x128   : > { %820 = vrot.lane.b32.xlu0 %v814_v47, %s2936_s30  ;;  %v911_v47 = vrot.slane %v903_v54, 2  ;;  %v1077_v54 = vrot.slane %v1070_v5, 2 }
 0x129   : > { %v909_v43 = vrot.slane %v902_v53, 2 }
 0x12b   : > { %490 = vrot.lane.b32.xlu1 %v487_v58, %s2935_s24  ;;  %v764_v58 = vrot.slane %v758_v52, 5 }
 0x12c   : > { %862 = vrot.lane.b32.xlu0 %v857_v61, %s2936_s30  ;;  %v912_v61 = vsel %vm907_vm7, %v909_v43, %v911_v47 }
 0x12d   : > { %v766_v7 = vsel %vm484_vm4, %v764_v58, %v765_v13 }
 0x12f   : > { %537 = vrot.lane.b32.xlu1 %v534_v8, %s2935_s24 }
 0x130   : > { %959 = vrot.lane.b32.xlu0 %v953_v9, %s2936_s30 }
 0x133   : > { %579 = vrot.lane.b32.xlu1 %v576_v62, %s2935_s24  ;;  %v908_v62 = vrot.slane %v901_v51, 2 }
 0x134   : > { %1009 = vrot.lane.b32.xlu0 %v1003_v15, %s2936_s30 }
 0x135   : > { %v910_v60 = vsel %vm907_vm7, %v908_v62, %v909_v43  ;;  %v1116_v43 = vmul.f32 %v1113_v39, %v3141_v46 }
 0x137   : > { %629 = vrot.lane.b32.xlu1 %v626_v10, %s2935_s24  ;;  %v1001_v10 = vrot.slane %v995_v57, 2  ;;  %v1136_v57 = vmul.f32 %v1135_v3, %v3295_v1 }
 0x138   : > { %535 = vrot.lane.b32.xlu0 %v532_v6, %s2935_s24  ;;  %v994_v6 = vmul.f32 %v3446_v2, %v3295_v1  ;;  %v952_v2 = vsel %vm907_vm7, %v950_v27, %v951_v11  ;;  %v1123_v11 = vrot.slane %v1116_v43, 6  ;;  %v1156_v27 = vstv %s3607_s7  ;;  %s2643_s7 = sld [smem:[#allocation4 + $0x3c]] }
 0x139   : > { %v1004_v16 = vsel %vm907_vm7, %v1001_v10, %v1003_v15  ;;  %v1141_v24 = vrot.slane %v1136_v57, 7 }
 0x13a   : > { %v1000_v31 = vrot.slane %v994_v6, 2 }
 0x13b   : > { %679 = vrot.lane.b32.xlu1 %v676_v26, %s2935_s24  ;;  %v1051_v26 = vrot.slane %v1045_v12, 2 }
 0x13c   : > { %577 = vrot.lane.b32.xlu0 %v574_v19, %s2935_s24  ;;  %v1044_v19 = vmul.f32 %v1043_v63, %v3295_v1  ;;  %v1002_v13 = vsel %vm907_vm7, %v1000_v31, %v1001_v10  ;;  %v1178_v31 = vstv %s2628_s18  ;;  %s2938_s18 = smov 124  }
 0x13d   : > { %v1054_v15 = vsel %vm907_vm7, %v1051_v26, %v1053_v23 }
 0x13f   : > { %729 = vrot.lane.b32.xlu1 %v726_v21, %s2935_s24  ;;  %v1075_v21 = vrot.slane %v1069_v28, 2 }
 0x140   : > { %627 = vrot.lane.b32.xlu0 %v624_v25, %s2935_s24  ;;  %v1050_v25 = vrot.slane %v1044_v19, 2 }
 0x141   : > { %v1076_v36 = vsel %vm907_vm7, %v1074_v35, %v1075_v21  ;;  %v1078_v62 = vsel %vm907_vm7, %v1075_v21, %v1077_v54 }
 0x143   : > { %771 = vrot.lane.b32.xlu1 %v768_v41, %s2935_s24 }
 0x144   : > { %677 = vrot.lane.b32.xlu0 %v674_v30, %s2935_s24 }
 0x147   : > { %818 = vrot.lane.b32.xlu1 %v815_v38, %s2936_s30  ;;  %v1052_v38 = vsel %vm907_vm7, %v1050_v25, %v1051_v26  ;;  %v1157_v26 = vmul.f32 %v1156_v27, %v3136_v42  ;;  %v1180_v25 = vmul.f32 %v1178_v31, %v3319_v14 }
 0x148   : > { %727 = vrot.lane.b32.xlu0 %v724_v59, %s2935_s24  ;;  %v1115_v59 = vmul.f32 %v1113_v39, %v3139_v45 }
 0x149   : > { %v3530_v44 = vpop.permute.xlu1 %508  ;;  %v1161_v34 = vrot.slane %v1157_v26, 7 }
 0x14a   : > { %v1121_v55 = vrot.slane %v1115_v59, 6 }
 0x14b   : > { %864 = vrot.lane.b32.xlu1 %v859_v40, %s2936_s30 }
 0x14c   : > { %769 = vrot.lane.b32.xlu0 %v766_v7, %s2935_s24  ;;  %s2624_s24 = sld [smem:[#allocation4 + $0x2c]]  ;;  %v1124_v12 = vsel %vm812_vm6, %v1121_v55, %v1123_v11 }
 0x14d   : > { %v3541_v8 = vpop.permute.xlu1 %512 }
 0x14e   : > { %v3543_v48 = vpop.permute.xlu0 %510 }
 0x14f   : > { %5091 = vst [vmem:[#allocation13_spill] sm:$0xff] %v3543_v48  ;;  %915 = vrot.lane.b32.xlu1 %v912_v61, %s2936_s30 }
 0x150   : > { %866 = vrot.lane.b32.xlu0 %v861_v56, %s2936_s30  ;;  %v1137_v56 = vmul.f32 %v1135_v3, %v3319_v14  ;;  %v1228_v3 = vstv %s2630_s27  ;;  %s2646_s27 = sld [smem:[#allocation4 + $0x19]] }
 0x151   : > { %v3553_v4 = vpop.permute.xlu1 %605 }
 0x152   : > { %5092 = vst [vmem:[#allocation14_spill] sm:$0xff] %v3553_v4  ;;  %v3555_v20 = vpop.permute.xlu0 %555  ;;  %v1093_v29 = vstv %s2624_s24  ;;  %s3805_s24 = sld [smem:[#allocation4 + $0x4]] }
 0x153   : > { %5093 = vst [vmem:[#allocation15_spill] sm:$0xff] %v3555_v20  ;;  %957 = vrot.lane.b32.xlu1 %v954_v22, %s2936_s30  ;;  %v1095_v52 = vmul.f32 %v1093_v29, %v3319_v14  ;;  %v1096_v37 = vmul.f32 %v1093_v29, %v3335_v17  ;;  %v1094_v47 = vmul.f32 %v1093_v29, %v3295_v1 }
 0x154   : > { %913 = vrot.lane.b32.xlu0 %v910_v60, %s2936_s30  ;;  %v1114_v22 = vmul.f32 %v1113_v39, %v3136_v42  ;;  %v1142_v60 = vrot.slane %v1137_v56, 7 }
 0x155   : > { %v3567_v18 = vpop.permute.xlu1 %655  ;;  %v1101_v32 = vrot.slane %v1095_v52, 6  ;;  %v1103_v40 = vrot.slane %v1096_v37, 6  ;;  %v1100_v0 = vrot.slane %v1094_v47, 6  ;;  %v1186_v52 = vrot.slane %v1180_v25, 7 }
 0x156   : > { %5094 = vst [vmem:[#allocation16_spill] sm:$0xff] %v3567_v18  ;;  %v3569_v9 = vpop.permute.xlu0 %603  ;;  %v1143_v28 = vsel %vm1140_vm8, %v1141_v24, %v1142_v60  ;;  %v1202_v37 = vstv %s2629_s20  ;;  %v1181_v47 = vmul.f32 %v1178_v31, %v3335_v17  ;;  %s2644_s20 = sld [smem:[#allocation4 + $0x12]] }
 0x157   : > { %5095 = vst [vmem:[#allocation17_spill] sm:$0xff] %v3569_v9  ;;  %1007 = vrot.lane.b32.xlu1 %v1004_v16, %s2936_s30  ;;  %v1104_v61 = vsel %vm812_vm6, %v1101_v32, %v1103_v40  ;;  %v1102_v6 = vsel %vm812_vm6, %v1100_v0, %v1101_v32  ;;  %v1120_v16 = vrot.slane %v1114_v22, 6  ;;  %v1203_v39 = vmul.f32 %v1202_v37, %v3136_v42 }
 0x158   : > { %955 = vrot.lane.b32.xlu0 %v952_v2, %s2936_s30  ;;  %v1204_v32 = vmul.f32 %v1202_v37, %v3139_v45  ;;  %v1205_v40 = vmul.f32 %v1202_v37, %v3141_v46  ;;  %v1230_v0 = vmul.f32 %v1228_v3, %v3319_v14  ;;  %v1188_v22 = vrot.slane %v1181_v47, 7 }
 0x159   : > { %v3580_v33 = vpop.permute.xlu1 %705  ;;  %v1122_v2 = vsel %vm812_vm6, %v1120_v16, %v1121_v55 }
 0x15a   : > { %v3582_v49 = vpop.permute.xlu0 %653  ;;  %v1210_v57 = vrot.slane %v1204_v32, 7  ;;  %v1212_v56 = vrot.slane %v1205_v40, 7  ;;  %v1189_v26 = vsel %vm1140_vm8, %v1186_v52, %v1188_v22 }
 0x15b   : > { %5096 = vst [vmem:[#allocation18_spill] sm:$0xff] %v3582_v49  ;;  %1057 = vrot.lane.b32.xlu1 %v1054_v15, %s2936_s30  ;;  %v1158_v15 = vmul.f32 %v1156_v27, %v3139_v45 }
 0x15c   : > { %1005 = vrot.lane.b32.xlu0 %v1002_v13, %s2936_s30  ;;  %v1179_v13 = vmul.f32 %v1178_v31, %v3295_v1 }
 0x15d   : > { %v3590_v41 = vpop.permute.xlu1 %797  ;;  %v1162_v35 = vrot.slane %v1158_v15, 7 }
 0x15e   : > { %5097 = vst [vmem:[#allocation19_spill] sm:$0xff] %v3590_v41  ;;  %v3593_v30 = vpop.permute.xlu0 %703 }
 0x15f   : > { %5098 = vst [vmem:[#allocation20_spill] sm:$0xff] %v3593_v30  ;;  %1079 = vrot.lane.b32.xlu1 %v1076_v36, %s2936_s30  ;;  %v1185_v36 = vrot.slane %v1179_v13, 7  ;;  %v1163_v43 = vsel %vm1140_vm8, %v1161_v34, %v1162_v35 }
 0x160   : > { %1055 = vrot.lane.b32.xlu0 %v1052_v38, %s2936_s30 }
 0x161   : > { %v3601_v53 = vpop.permute.xlu1 %836  ;;  %v1187_v59 = vsel %vm1140_vm8, %v1185_v36, %v1186_v52 }
 0x162   : > { %5099 = vst [vmem:[#allocation21_spill] sm:$0xff] %v3601_v53  ;;  %v3604_v58 = vpop.permute.xlu0 %747 }
 0x163   : > { %5100 = vst [vmem:[#allocation22_spill] sm:$0xff] %v3604_v58  ;;  %1083 = vrot.lane.b32.xlu1 %v1077_v54, %s2936_s30 }
 0x164   : > { %1059 = vrot.lane.b32.xlu0 %v1053_v23, %s2936_s30 }
 0x165   : > { %v3613_v7 = vpop.permute.xlu1 %840 }
 0x166   : > { %5101 = vst [vmem:[#allocation23_spill] sm:$0xff] %v3613_v7  ;;  %v3615_v51 = vpop.permute.xlu0 %795  ;;  %v3780_v7 = vld [vmem:[#allocation3 + $0x10] sm:$0x3f] }
 0x167   : > { %5102 = vst [vmem:[#allocation24_spill] sm:$0xff] %v3615_v51  ;;  %1107 = vrot.lane.b32.xlu1 %v1104_v61, %s2936_s30  ;;  %v1209_v61 = vrot.slane %v1203_v39, 7 }
 0x168   : > { %1081 = vrot.lane.b32.xlu0 %v1078_v62, %s2936_s30  ;;  %v1229_v62 = vmul.f32 %v1228_v3, %v3295_v1 }
 0x169   : > { %v3623_v63 = vpop.permute.xlu1 %886  ;;  %v1211_v25 = vsel %vm1140_vm8, %v1209_v61, %v1210_v57 }
 0x16a   : > { %5103 = vst [vmem:[#allocation25_spill] sm:$0xff] %v3623_v63  ;;  %v3626_v10 = vpop.permute.xlu0 %838  ;;  %v1235_v27 = vrot.slane %v1229_v62, 7 }
 0x16b   : > { %5104 = vst [vmem:[#allocation26_spill] sm:$0xff] %v3626_v10  ;;  %1127 = vrot.lane.b32.xlu1 %v1124_v12, %s2936_s30 }
 0x16c   : > { %1105 = vrot.lane.b32.xlu0 %v1102_v6, %s2936_s30  ;;  %v1236_v6 = vrot.slane %v1230_v0, 7 }
 0x16d   : > { %v3633_v50 = vpop.permute.xlu1 %983 }
 0x16e   : > { %5105 = vst [vmem:[#allocation27_spill] sm:$0xff] %v3633_v50  ;;  %v3636_v23 = vpop.permute.xlu0 %888 }
 0x16f   : > { %5106 = vst [vmem:[#allocation28_spill] sm:$0xff] %v3636_v23  ;;  %1146 = vrot.lane.b32.xlu1 %v1143_v28, %s2937_s26 }
 0x170   : > { %1125 = vrot.lane.b32.xlu0 %v1122_v2, %s2936_s30  ;;  %s2631_s30 = sld [smem:[#allocation4 + $0x42]] }
 0x171   : > { %v3642_v19 = vpop.permute.xlu1 %1033 }
 0x172   : > { %5107 = vst [vmem:[#allocation29_spill] sm:$0xff] %v3642_v19  ;;  %v3645_v21 = vpop.permute.xlu0 %933 }
 0x173   : > { %5108 = vst [vmem:[#allocation30_spill] sm:$0xff] %v3645_v21  ;;  %1164 = vrot.lane.b32.xlu1 %v1161_v34, %s2937_s26  ;;  %v1237_v34 = vsel %vm1140_vm8, %v1235_v27, %v1236_v6 }
 0x174   : > { %1144 = vrot.lane.b32.xlu0 %v1141_v24, %s2937_s26 }
 0x175   : > { %v3651_v29 = vpop.permute.xlu1 %557 }
 0x176   : > { %5109 = vst [vmem:[#allocation31_spill] sm:$0xff] %v3651_v29  ;;  %v3653_v5 = vpop.permute.xlu0 %981  ;;  %v1252_v16 = vstv %s2631_s30  ;;  %s2647_s30 = sld [smem:[#allocation4 + $0x4a]] }
 0x177   : > { %5110 = vst [vmem:[#allocation32_spill] sm:$0xff] %v3653_v5  ;;  %1168 = vrot.lane.b32.xlu1 %v1162_v35, %s2937_s26  ;;  %v1253_v2 = vmul.f32 %v1252_v16, %v3136_v42  ;;  %v1254_v15 = vmul.f32 %v1252_v16, %v3139_v45  ;;  %v1255_v13 = vmul.f32 %v1252_v16, %v3141_v46 }
 0x178   : > { %1148 = vrot.lane.b32.xlu0 %v1142_v60, %s2937_s26  ;;  %v1213_v60 = vsel %vm1140_vm8, %v1210_v57, %v1212_v56  ;;  %v1231_v35 = vmul.f32 %v1228_v3, %v3335_v17  ;;  %v1299_v3 = vstv %s2633_s28  ;;  %s2649_s28 = sld [smem:[#allocation4 + $0x51]] }
 0x179   : > { %v3657_v38 = vpop.permute.xlu1 %601  ;;  %v1259_v37 = vrot.slane %v1253_v2, 7  ;;  %v1262_v32 = vrot.slane %v1255_v13, 7  ;;  %v1301_v57 = vmul.f32 %v1299_v3, %v3139_v45 }
 0x17a   : > { %5111 = vst [vmem:[#allocation33_spill] sm:$0xff] %v3657_v38  ;;  %v3660_v54 = vpop.permute.xlu0 %1031  ;;  %v1238_v47 = vrot.slane %v1231_v35, 7 }
 0x17b   : > { %5112 = vst [vmem:[#allocation34_spill] sm:$0xff] %v3660_v54  ;;  %1192 = vrot.lane.b32.xlu1 %v1187_v59, %s2937_s26  ;;  %v1260_v59 = vrot.slane %v1254_v15, 7 }
 0x17c   : > { %1166 = vrot.lane.b32.xlu0 %v1163_v43, %s2937_s26  ;;  %v1239_v16 = vsel %vm1140_vm8, %v1236_v6, %v1238_v47  ;;  %v1345_v47 = vstv %s2635_s17  ;;  %s2651_s17 = sld [smem:[#allocation4 + $0x58]] }
 0x17d   : > { %v3669_v55 = vpop.permute.xlu1 %651  ;;  %v1263_v62 = vsel %vm1140_vm8, %v1260_v59, %v1262_v32  ;;  %v1261_v6 = vsel %vm1140_vm8, %v1259_v37, %v1260_v59 }
 0x17e   : > { %5113 = vst [vmem:[#allocation35_spill] sm:$0xff] %v3669_v55  ;;  %v3671_v11 = vpop.permute.xlu0 %488  ;;  %v1579_v55 = vstv %s2646_s27  ;;  %s4018_s27 = sld [smem:[#allocation4 + $0x46]] }
 0x17f   : > { %1214 = vrot.lane.b32.xlu1 %v1209_v61, %s2937_s26 }
 0x180   : > { %1190 = vrot.lane.b32.xlu0 %v1185_v36, %s2937_s26  ;;  %v1278_v36 = vstv %s2632_s19  ;;  %s2648_s19 = sld [smem:[#allocation4 + $0x20]] }
 0x181   : > { %v3677_v12 = vpop.permute.xlu1 %701  ;;  %v1280_v40 = vmul.f32 %v1278_v36, %v3319_v14  ;;  %v1281_v43 = vmul.f32 %v1278_v36, %v3335_v17 }
 0x182   : > { %v3679_v24 = vpop.permute.xlu0 %492 }
 0x183   : > { %1218 = vrot.lane.b32.xlu1 %v1213_v60, %s2937_s26  ;;  %v1287_v0 = vrot.slane %v1280_v40, 3  ;;  %v1289_v22 = vrot.slane %v1281_v43, 3  ;;  %v1302_v60 = vmul.f32 %v1299_v3, %v3141_v46  ;;  %v1300_v43 = vmul.f32 %v1299_v3, %v3136_v42 }
 0x184   : > { %1194 = vrot.lane.b32.xlu0 %v1189_v26, %s2937_s26  ;;  %v1321_v26 = vstv %s2634_s8  ;;  %s2650_s8 = sld [smem:[#allocation4 + $0x27]]  ;;  %v359_v4 = vstv %s4018_s27  ;;  %s4379_s27 = sld [smem:[#allocation4 + $0xd]] }
 0x185   : > { %v3685_v28 = vpop.permute.xlu1 %749  ;;  %v1290_v13 = vsel %vm1285_vm9, %v1287_v0, %v1289_v22  ;;  %v1323_v35 = vmul.f32 %v1321_v26, %v3319_v14  ;;  %v1324_v32 = vmul.f32 %v1321_v26, %v3335_v17  ;;  %v1322_v59 = vmul.f32 %v1321_v26, %v3295_v1 }
 0x186   : > { %5114 = vst [vmem:[#allocation36_spill] sm:$0xff] %v3685_v28  ;;  %v3688_v31 = vpop.permute.xlu0 %581  ;;  %v362_v20 = vmul.f32 %v3780_v7, %v359_v4 }
 0x187   : > { %5115 = vst [vmem:[#allocation37_spill] sm:$0xff] %v3688_v31  ;;  %1242 = vrot.lane.b32.xlu1 %v1237_v34, %s2937_s26  ;;  %v1307_v34 = vrot.slane %v1301_v57, 3  ;;  %v1329_v22 = vrot.slane %v1323_v35, 3 }
 0x188   : > { %1216 = vrot.lane.b32.xlu0 %v1211_v25, %s2937_s26  ;;  %v1309_v25 = vrot.slane %v1302_v60, 3  ;;  %v1331_v60 = vrot.slane %v1324_v32, 3  ;;  %v1371_v32 = vstv %s2636_s3  ;;  %s2652_s3 = sld [smem:[#allocation4 + $0x2e]] }
 0x189   : > { %v3697_v52 = vpop.permute.xlu1 %793 }
 0x18a   : > { %5116 = vst [vmem:[#allocation38_spill] sm:$0xff] %v3697_v52  ;;  %v3699_v39 = vpop.permute.xlu0 %631 }
 0x18b   : > { %5117 = vst [vmem:[#allocation39_spill] sm:$0xff] %v3699_v39  ;;  %1264 = vrot.lane.b32.xlu1 %v1259_v37, %s2937_s26 }
 0x18c   : > { %1240 = vrot.lane.b32.xlu0 %v1235_v27, %s2937_s26  ;;  %v1279_v27 = vmul.f32 %v1278_v36, %v3295_v1 }
 0x18d   : > { %v3705_v61 = vpop.permute.xlu1 %890 }
 0x18e   : > { %5118 = vst [vmem:[#allocation40_spill] sm:$0xff] %v3705_v61  ;;  %v3708_v56 = vpop.permute.xlu0 %681  ;;  %v1286_v36 = vrot.slane %v1279_v27, 3  ;;  %v1346_v27 = vmul.f32 %v1345_v47, %v3136_v42  ;;  %v1348_v42 = vmul.f32 %v1345_v47, %v3141_v46 }
 0x18f   : > { %1268 = vrot.lane.b32.xlu1 %v1263_v62, %s2937_s26  ;;  %v1310_v62 = vsel %vm1285_vm9, %v1307_v34, %v1309_v25  ;;  %v1332_v25 = vsel %vm1285_vm9, %v1329_v22, %v1331_v60 }
 0x190   : > { %1244 = vrot.lane.b32.xlu0 %v1239_v16, %s2937_s26  ;;  %v1347_v16 = vmul.f32 %v1345_v47, %v3139_v45  ;;  %v1288_v37 = vsel %vm1285_vm9, %v1286_v36, %v1287_v0  ;;  %v1328_v0 = vrot.slane %v1322_v59, 3  ;;  %v1352_v26 = vrot.slane %v1346_v27, 3 }
 0x191   : > { %v3716_v2 = vpop.permute.xlu1 %935  ;;  %v1355_v27 = vrot.slane %v1348_v42, 3 }
 0x192   : > { %5119 = vst [vmem:[#allocation41_spill] sm:$0xff] %v3716_v2  ;;  %v3718_v15 = vpop.permute.xlu0 %773  ;;  %v1353_v35 = vrot.slane %v1347_v16, 3  ;;  %v1374_v16 = vmul.f32 %v1371_v32, %v3335_v17 }
 0x193   : > { %5120 = vst [vmem:[#allocation42_spill] sm:$0xff] %v3718_v15  ;;  %1293 = vrot.lane.b32.xlu1 %v1290_v13, %s2937_s26  ;;  %v1306_v13 = vrot.slane %v1300_v43, 3 }
 0x194   : > { %1266 = vrot.lane.b32.xlu0 %v1261_v6, %s2937_s26  ;;  %v1356_v19 = vsel %vm1285_vm9, %v1353_v35, %v1355_v27 }
 0x195   : > { %v3726_v40 = vpop.permute.xlu1 %979  ;;  %v1308_v45 = vsel %vm1285_vm9, %v1306_v13, %v1307_v34  ;;  %v1330_v34 = vsel %vm1285_vm9, %v1328_v0, %v1329_v22  ;;  %v1395_v13 = vstv %s2637_s15  ;;  %v3767_v22 = vld [vmem:[#allocation3] sm:$0xff]  ;;  %s2653_s15 = sld [smem:[#allocation4 + $0x5f]] }
 0x196   : > { %5121 = vst [vmem:[#allocation43_spill] sm:$0xff] %v3726_v40  ;;  %v3729_v57 = vpop.permute.xlu0 %816  ;;  %v1396_v0 = vmul.f32 %v3767_v22, %v1395_v13  ;;  %v1398_v10 = vmul.f32 %v3780_v7, %v1395_v13 }
 0x197   : > { %5122 = vst [vmem:[#allocation44_spill] sm:$0xff] %v3729_v57  ;;  %1313 = vrot.lane.b32.xlu1 %v1310_v62, %s2937_s26  ;;  %v1354_v62 = vsel %vm1285_vm9, %v1352_v26, %v1353_v35 }
 0x198   : > { %1291 = vrot.lane.b32.xlu0 %v1288_v37, %s2937_s26  ;;  %v1373_v37 = vmul.f32 %v1371_v32, %v3319_v14 }
 0x199   : > { %v3738_v3 = vpop.permute.xlu1 %1029 }
 0x19a   : > { %5123 = vst [vmem:[#allocation45_spill] sm:$0xff] %v3738_v3  ;;  %v3740_v6 = vpop.permute.xlu0 %820  ;;  %v1379_v47 = vrot.slane %v1373_v37, 3 }
 0x19b   : > { %5124 = vst [vmem:[#allocation46_spill] sm:$0xff] %v3740_v6  ;;  %1335 = vrot.lane.b32.xlu1 %v1332_v25, %s2937_s26  ;;  %v1381_v25 = vrot.slane %v1374_v16, 3 }
 0x19c   : > { %1311 = vrot.lane.b32.xlu0 %v1308_v45, %s2937_s26  ;;  %v3761_v45 = vld [vmem:[#allocation3 + $0x8] sm:$0xff] }
 0x19d   : > { %v3746_v36 = vpop.permute.xlu1 %490  ;;  %v1397_v26 = vmul.f32 %v3761_v45, %v1395_v13  ;;  %v1382_v37 = vsel %vm1285_vm9, %v1379_v47, %v1381_v25 }
 0x19e   : > { %v3749_v43 = vpop.permute.xlu0 %862 }
 0x19f   : > { %1357 = vrot.lane.b32.xlu1 %v1354_v62, %s2937_s26  ;;  %v1372_v62 = vmul.f32 %v1371_v32, %v3295_v1  ;;  %v1403_v16 = vrot.slane %v1397_v26, 3  ;;  %v1421_v32 = vstv %s2638_s16  ;;  %s3967_s16 = sld [smem:[#allocation4 + $0x5]] }
 0x1a0   : > { %1333 = vrot.lane.b32.xlu0 %v1330_v34, %s2937_s26  ;;  %v1423_v26 = vmul.f32 %v1421_v32, %v3319_v14  ;;  %v1422_v6 = vmul.f32 %v1421_v32, %v3295_v1 }
 0x1a1   : > { %v3757_v59 = vpop.permute.xlu1 %537  ;;  %v1378_v54 = vrot.slane %v1372_v62, 3  ;;  %v1445_v62 = vstv %s2639_s23  ;;  %s3982_s23 = sld [smem:[#allocation4 + $0x23]] }
 0x1a2   : > { %v3759_v46 = vpop.permute.xlu0 %959  ;;  %v1429_v13 = vrot.slane %v1423_v26, 3  ;;  %v1448_v5 = vmul.f32 %v3780_v7, %v1445_v62 }
 0x1a3   : > { %5125 = vst [vmem:[#allocation47_spill] sm:$0xff] %v3759_v46  ;;  %1361 = vrot.lane.b32.xlu1 %v1355_v27, %s2937_s26  ;;  %v1380_v35 = vsel %vm1285_vm9, %v1378_v54, %v1379_v47  ;;  %v1405_v27 = vrot.slane %v1398_v10, 3  ;;  %v1446_v54 = vmul.f32 %v3767_v22, %v1445_v62 }
 0x1a4   : > { %1337 = vrot.lane.b32.xlu0 %v1331_v60, %s2937_s26  ;;  %v1402_v60 = vrot.slane %v1396_v0, 3 }
 0x1a5   : > { %v3770_v42 = vpop.permute.xlu1 %579  ;;  %v1406_v26 = vsel %vm1285_vm9, %v1403_v16, %v1405_v27 }
 0x1a6   : > { %5126 = vst [vmem:[#allocation48_spill] sm:$0xff] %v3770_v42  ;;  %v3772_v34 = vpop.permute.xlu0 %1009 }
 0x1a7   : > { %5127 = vst [vmem:[#allocation49_spill] sm:$0xff] %v3772_v34  ;;  %1385 = vrot.lane.b32.xlu1 %v1382_v37, %s2937_s26  ;;  %v1404_v34 = vsel %vm1285_vm9, %v1402_v60, %v1403_v16  ;;  %v1424_v37 = vmul.f32 %v1421_v32, %v3335_v17  ;;  %v1447_v60 = vmul.f32 %v3761_v45, %v1445_v62 }
 0x1a8   : > { %1359 = vrot.lane.b32.xlu0 %v1356_v19, %s2937_s26 }
 0x1a9   : > { %v3778_v3 = vpop.permute.xlu1 %629  ;;  %v1431_v50 = vrot.slane %v1424_v37, 3  ;;  %v1428_v37 = vrot.slane %v1422_v6, 3  ;;  %v1455_v6 = vrot.slane %v1448_v5, 3 }
 0x1aa   : > { %5128 = vst [vmem:[#allocation50_spill] sm:$0xff] %v3778_v3  ;;  %v3783_v53 = vpop.permute.xlu0 %535 }
 0x1ab   : > { %5129 = vst [vmem:[#allocation51_spill] sm:$0xff] %v3783_v53  ;;  %1407 = vrot.lane.b32.xlu1 %v1404_v34, %s2937_s26  ;;  %v1432_v10 = vsel %vm1285_vm9, %v1429_v13, %v1431_v50 }
 0x1ac   : > { %1383 = vrot.lane.b32.xlu0 %v1380_v35, %s2937_s26  ;;  %v1453_v35 = vrot.slane %v1447_v60, 3  ;;  %v1430_v60 = vsel %vm1285_vm9, %v1428_v37, %v1429_v13  ;;  %v1484_v13 = vstv %s2641_s5  ;;  %s3992_s5 = sld [smem:[#allocation4 + $0x36]] }
 0x1ad   : > { %v3791_v19 = vpop.permute.xlu1 %679  ;;  %v1486_v37 = vmul.f32 %v3761_v45, %v1484_v13 }
 0x1ae   : > { %5130 = vst [vmem:[#allocation52_spill] sm:$0xff] %v3791_v19  ;;  %v3793_v0 = vpop.permute.xlu0 %577  ;;  %v1456_v5 = vsel %vm1285_vm9, %v1453_v35, %v1455_v6 }
 0x1af   : > { %5131 = vst [vmem:[#allocation53_spill] sm:$0xff] %v3793_v0  ;;  %1411 = vrot.lane.b32.xlu1 %v1405_v27, %s2937_s26 }
 0x1b0   : > { %1387 = vrot.lane.b32.xlu0 %v1381_v25, %s2937_s26  ;;  %v1452_v25 = vrot.slane %v1446_v54, 3  ;;  %v1471_v54 = vstv %s3805_s24  ;;  %s3986_s24 = sld [smem:[#allocation4 + $0x2a]] }
 0x1b1   : > { %v3800_v47 = vpop.permute.xlu1 %729 }
 0x1b2   : > { %5132 = vst [vmem:[#allocation54_spill] sm:$0xff] %v3800_v47  ;;  %v3802_v34 = vpop.permute.xlu0 %627  ;;  %v1454_v49 = vsel %vm1285_vm9, %v1452_v25, %v1453_v35  ;;  %v1472_v25 = vmul.f32 %v1471_v54, %v3295_v1 }
 0x1b3   : > { %5133 = vst [vmem:[#allocation55_spill] sm:$0xff] %v3802_v34  ;;  %1435 = vrot.lane.b32.xlu1 %v1432_v10, %s2937_s26 }
 0x1b4   : > { %1409 = vrot.lane.b32.xlu0 %v1406_v26, %s2937_s26 }
 0x1b5   : > { %v3810_v32 = vpop.permute.xlu1 %771 }
 0x1b6   : > { %5134 = vst [vmem:[#allocation56_spill] sm:$0xff] %v3810_v32  ;;  %v3813_v57 = vpop.permute.xlu0 %677 }
 0x1b7   : > { %1457 = vrot.lane.b32.xlu1 %v1454_v49, %s2937_s26  ;;  %v1473_v49 = vmul.f32 %v1471_v54, %v3319_v14 }
 0x1b8   : > { %1433 = vrot.lane.b32.xlu0 %v1430_v60, %s2937_s26  ;;  %v1499_v60 = vstv %s2642_s6  ;;  %s3994_s6 = sld [smem:[#allocation4 + $0x7]] }
 0x1b9   : > { %v3819_v16 = vpop.permute.xlu1 %818  ;;  %v1501_v35 = vmul.f32 %v1499_v60, %v3319_v14 }
 0x1ba   : > { %5135 = vst [vmem:[#allocation57_spill] sm:$0xff] %v3819_v16  ;;  %v3821_v27 = vpop.permute.xlu0 %727 }
 0x1bb   : > { %5136 = vst [vmem:[#allocation58_spill] sm:$0xff] %v3821_v27  ;;  %1461 = vrot.lane.b32.xlu1 %v1455_v6, %s2937_s26 }
 0x1bc   : > { %1437 = vrot.lane.b32.xlu0 %v1431_v50, %s2937_s26 }
 0x1bd   : > { %v3826_v62 = vpop.permute.xlu1 %864 }
 0x1be   : > { %5137 = vst [vmem:[#allocation59_spill] sm:$0xff] %v3826_v62  ;;  %v3829_v10 = vpop.permute.xlu0 %769 }
 0x1bf   : > { %5138 = vst [vmem:[#allocation60_spill] sm:$0xff] %v3829_v10  ;;  %1478 = vrot.lane.b32.xlu1 %v1473_v49, %s2938_s18  ;;  %v1485_v49 = vmul.f32 %v3767_v22, %v1484_v13 }
 0x1c0   : > { %1459 = vrot.lane.b32.xlu0 %v1456_v5, %s2937_s26  ;;  %v1518_v5 = vstv %s2643_s7  ;;  %s2645_s26 = sld [smem:[#allocation4 + $0x43]]  ;;  %s3999_s7 = sld [smem:[#allocation4 + $0xe]] }
 0x1c1   : > { %v3834_v26 = vpop.permute.xlu1 %915  ;;  %v1521_v46 = vmul.f32 %v3780_v7, %v1518_v5 }
 0x1c2   : > { %5139 = vst [vmem:[#allocation61_spill] sm:$0xff] %v3834_v26  ;;  %v3837_v50 = vpop.permute.xlu0 %866 }
 0x1c3   : > { %5140 = vst [vmem:[#allocation62_spill] sm:$0xff] %v3837_v50  ;;  %1491 = vrot.lane.b32.xlu1 %v1486_v37, %s2938_s18  ;;  %v1519_v37 = vmul.f32 %v3767_v22, %v1518_v5 }
 0x1c4   : > { %1476 = vrot.lane.b32.xlu0 %v1472_v25, %s2938_s18  ;;  %v1500_v25 = vmul.f32 %v1499_v60, %v3295_v1 }
 0x1c5   : > { %v3842_v16 = vpop.permute.xlu1 %957 }
 0x1c6   : > { %5141 = vst [vmem:[#allocation63_spill] sm:$0xff] %v3842_v16  ;;  %v3845_v6 = vpop.permute.xlu0 %913  ;;  %v1558_v21 = vstv %s2645_s26  ;;  %s4007_s26 = sld [smem:[#allocation4 + $0x3f]] }
 0x1c7   : > { %5142 = vst [vmem:[#allocation64_spill] sm:$0xff] %v3845_v6  ;;  %1508 = vrot.lane.b32.xlu1 %v1501_v35, %s2938_s18 }
 0x1c8   : > { %1489 = vrot.lane.b32.xlu0 %v1485_v49, %s2938_s18  ;;  %v1502_v49 = vmul.f32 %v1499_v60, %v3335_v17 }
 0x1c9   : > { %v3850_v54 = vpop.permute.xlu1 %1007 }
 0x1ca   : > { %5143 = vst [vmem:[#allocation65_spill] sm:$0xff] %v3850_v54  ;;  %v3853_v40 = vpop.permute.xlu0 %955  ;;  %v1539_v54 = vstv %s2644_s20  ;;  %s4002_s20 = sld [smem:[#allocation4 + $0x38]] }
 0x1cb   : > { %5144 = vst [vmem:[#allocation66_spill] sm:$0xff] %v3853_v40  ;;  %1525 = vrot.lane.b32.xlu1 %v1519_v37, %s2938_s18  ;;  %v1541_v1 = vmul.f32 %v1539_v54, %v3319_v14  ;;  %v1542_v16 = vmul.f32 %v1539_v54, %v3335_v17  ;;  %v1598_v40 = vstv %s2647_s30  ;;  %v1619_v17 = vstv %s2648_s19  ;;  %s4022_s30 = sld [smem:[#allocation4 + $0xc]]  ;;  %s4024_s19 = sld [smem:[#allocation4 + $0x15]] }
 0x1cc   : > { %1506 = vrot.lane.b32.xlu0 %v1500_v25, %s2938_s18  ;;  %v1520_v25 = vmul.f32 %v3761_v45, %v1518_v5  ;;  %v1600_v52 = vmul.f32 %v3761_v45, %v1598_v40 }
 0x1cd   : > { %v3858_v13 = vpop.permute.xlu1 %1057 }
 0x1ce   : > { %5145 = vst [vmem:[#allocation67_spill] sm:$0xff] %v3858_v13  ;;  %v3861_v35 = vpop.permute.xlu0 %1005 }
 0x1cf   : > { %5146 = vst [vmem:[#allocation68_spill] sm:$0xff] %v3861_v35  ;;  %1529 = vrot.lane.b32.xlu1 %v1521_v46, %s2938_s18  ;;  %v1559_v46 = vmul.f32 %v3767_v22, %v1558_v21 }
 0x1d0   : > { %1510 = vrot.lane.b32.xlu0 %v1502_v49, %s2938_s18  ;;  %v3879_v49 = vld [vmem:[#allocation2] sm:$0xff] }
 0x1d1   : > { %v3866_v18 = vpop.permute.xlu1 %1079  ;;  %v1540_v14 = vmul.f32 %v3879_v49, %v1539_v54  ;;  %v1803_v26 = vstv %s4022_s30  ;;  %v352_v10 = vstv %s4024_s19  ;;  %s4387_s30 = sld [smem:[#allocation4 + $0x28]]  ;;  %s4409_s19 = sld [smem:[#allocation4 + $0x3e]] }
 0x1d2   : > { %5147 = vst [vmem:[#allocation69_spill] sm:$0xff] %v3866_v18  ;;  %v3869_v37 = vpop.permute.xlu0 %1055 }
 0x1d3   : > { %5148 = vst [vmem:[#allocation70_spill] sm:$0xff] %v3869_v37  ;;  %1548 = vrot.lane.b32.xlu1 %v1541_v1, %s2938_s18  ;;  %v1561_v1 = vmul.f32 %v3780_v7, %v1558_v21 }
 0x1d4   : > { %1527 = vrot.lane.b32.xlu0 %v1520_v25, %s2938_s18 }
 0x1d5   : > { %v3874_v60 = vpop.permute.xlu1 %1083 }
 0x1d6   : > { %5149 = vst [vmem:[#allocation71_spill] sm:$0xff] %v3874_v60  ;;  %v3877_v35 = vpop.permute.xlu0 %1059 }
 0x1d7   : > { %5150 = vst [vmem:[#allocation72_spill] sm:$0xff] %v3877_v35  ;;  %1565 = vrot.lane.b32.xlu1 %v1559_v46, %s2938_s18  ;;  %v3894_v46 = vld [vmem:[#allocation2 + $0x8] sm:$0xff] }
 0x1d8   : > { %1546 = vrot.lane.b32.xlu0 %v1540_v14, %s2938_s18  ;;  %v1581_v14 = vmul.f32 %v3894_v46, %v1579_v55  ;;  %v4118_v27 = vmul.f32 %v3894_v46, %v1803_v26 }
 0x1d9   : > { %v3884_v5 = vpop.permute.xlu1 %1107 }
 0x1da   : > { %5151 = vst [vmem:[#allocation73_spill] sm:$0xff] %v3884_v5  ;;  %v3887_v25 = vpop.permute.xlu0 %1081  ;;  %v1560_v5 = vmul.f32 %v3761_v45, %v1558_v21  ;;  %v1811_v42 = vrot.slane %v4118_v27, 1 }
 0x1db   : > { %5152 = vst [vmem:[#allocation74_spill] sm:$0xff] %v3887_v25  ;;  %1569 = vrot.lane.b32.xlu1 %v1561_v1, %s2938_s18  ;;  %v1621_v25 = vmul.f32 %v3894_v46, %v1619_v17 }
 0x1dc   : > { %1550 = vrot.lane.b32.xlu0 %v1542_v16, %s2938_s18  ;;  %v1599_v16 = vmul.f32 %v3767_v22, %v1598_v40 }
 0x1dd   : > { %v3892_v41 = vpop.permute.xlu1 %1127  ;;  %v1627_v13 = vrot.slane %v1621_v25, 4 }
 0x1de   : > { %5153 = vst [vmem:[#allocation75_spill] sm:$0xff] %v3892_v41  ;;  %v3897_v3 = vpop.permute.xlu0 %1105  ;;  %v1580_v41 = vmul.f32 %v3879_v49, %v1579_v55 }
 0x1df   : > { %5154 = vst [vmem:[#allocation76_spill] sm:$0xff] %v3897_v3  ;;  %1588 = vrot.lane.b32.xlu1 %v1581_v14, %s2938_s18  ;;  %v3909_v3 = vld [vmem:[#allocation2 + $0x10] sm:$0x3f]  ;;  %v1639_v14 = vstv %s2649_s28  ;;  %s4026_s28 = sld [smem:[#allocation4 + $0x54]] }
 0x1e0   : > { %1567 = vrot.lane.b32.xlu0 %v1560_v5, %s2938_s18  ;;  %v1622_v21 = vmul.f32 %v3909_v3, %v1619_v17  ;;  %v1641_v51 = vmul.f32 %v3761_v45, %v1639_v14  ;;  %v1582_v39 = vmul.f32 %v3909_v3, %v1579_v55  ;;  %v1642_v2 = vmul.f32 %v3780_v7, %v1639_v14 }
 0x1e1   : > { %v3902_v54 = vpop.permute.xlu1 %1146 }
 0x1e2   : > { %5155 = vst [vmem:[#allocation77_spill] sm:$0xff] %v3902_v54  ;;  %v3905_v1 = vpop.permute.xlu0 %1125  ;;  %v1601_v54 = vmul.f32 %v3780_v7, %v1598_v40  ;;  %v1629_v6 = vrot.slane %v1622_v21, 4  ;;  %v1647_v34 = vrot.slane %v1641_v51, 4  ;;  %v1649_v25 = vrot.slane %v1642_v2, 4 }
 0x1e3   : > { %5156 = vst [vmem:[#allocation78_spill] sm:$0xff] %v3905_v1  ;;  %1605 = vrot.lane.b32.xlu1 %v1599_v16, %s2938_s18  ;;  %v1661_v16 = vstv %s2650_s8  ;;  %v1640_v40 = vmul.f32 %v3767_v22, %v1639_v14  ;;  %v1685_v51 = vstv %s2651_s17  ;;  %s4034_s8 = sld [smem:[#allocation4 + $0x5b]]  ;;  %s4039_s17 = sld [smem:[#allocation4 + $0x31]] }
 0x1e4   : > { %1586 = vrot.lane.b32.xlu0 %v1580_v41, %s2938_s18  ;;  %v1620_v41 = vmul.f32 %v3879_v49, %v1619_v17  ;;  %v1630_v55 = vsel %vm375_vm10, %v1627_v13, %v1629_v6  ;;  %v1663_v21 = vmul.f32 %v3894_v46, %v1661_v16  ;;  %v1650_v6 = vsel %vm375_vm10, %v1647_v34, %v1649_v25 }
 0x1e5   : > { %v3914_v5 = vpop.permute.xlu1 %1164  ;;  %v1687_v15 = vmul.f32 %v3761_v45, %v1685_v51 }
 0x1e6   : > { %5157 = vst [vmem:[#allocation79_spill] sm:$0xff] %v3914_v5  ;;  %v3918_v1 = vpop.permute.xlu0 %1144  ;;  %v1626_v17 = vrot.slane %v1620_v41, 4  ;;  %v1669_v2 = vrot.slane %v1663_v21, 4 }
 0x1e7   : > { %5158 = vst [vmem:[#allocation80_spill] sm:$0xff] %v3918_v1  ;;  %1609 = vrot.lane.b32.xlu1 %v1601_v54, %s2938_s18  ;;  %v1664_v54 = vmul.f32 %v3909_v3, %v1661_v16  ;;  %v1693_v21 = vrot.slane %v1687_v15, 4 }
 0x1e8   : > { %1590 = vrot.lane.b32.xlu0 %v1582_v39, %s2938_s18  ;;  %v1628_v41 = vsel %vm375_vm10, %v1626_v17, %v1627_v13  ;;  %v1711_v17 = vstv %s2652_s3  ;;  %s4049_s3 = sld [smem:[#allocation4]] }
 0x1e9   : > { %v3925_v5 = vpop.permute.xlu1 %1168  ;;  %v3963_v15 = vmul.f32 %v3909_v3, %v1711_v17 }
 0x1ea   : > { %5159 = vst [vmem:[#allocation81_spill] sm:$0xff] %v3925_v5  ;;  %v3928_v1 = vpop.permute.xlu0 %1148 }
 0x1eb   : > { %5160 = vst [vmem:[#allocation82_spill] sm:$0xff] %v3928_v1  ;;  %1633 = vrot.lane.b32.xlu1 %v1630_v55, %s2938_s18  ;;  %v1671_v1 = vrot.slane %v1664_v54, 4  ;;  %v1662_v55 = vmul.f32 %v3879_v49, %v1661_v16 }
 0x1ec   : > { %1607 = vrot.lane.b32.xlu0 %v1600_v52, %s2938_s18  ;;  %v1686_v52 = vmul.f32 %v3767_v22, %v1685_v51 }
 0x1ed   : > { %v3935_v39 = vpop.permute.xlu1 %1192  ;;  %v1672_v25 = vsel %vm375_vm10, %v1669_v2, %v1671_v1  ;;  %v1668_v13 = vrot.slane %v1662_v55, 4  ;;  %v1735_v55 = vstv %s2653_s15  ;;  %s4051_s15 = sld [smem:[#allocation4 + $0x4d]] }
 0x1ee   : > { %5161 = vst [vmem:[#allocation83_spill] sm:$0xff] %v3935_v39  ;;  %v3938_v5 = vpop.permute.xlu0 %1166  ;;  %v1646_v39 = vrot.slane %v1640_v40, 4  ;;  %v1692_v16 = vrot.slane %v1686_v52, 4 }
 0x1ef   : > { %5162 = vst [vmem:[#allocation84_spill] sm:$0xff] %v3938_v5  ;;  %1653 = vrot.lane.b32.xlu1 %v1650_v6, %s2938_s18 }
 0x1f0   : > { %1631 = vrot.lane.b32.xlu0 %v1628_v41, %s2938_s18  ;;  %v1648_v54 = vsel %vm375_vm10, %v1646_v39, %v1647_v34  ;;  %v1688_v41 = vmul.f32 %v3780_v7, %v1685_v51  ;;  %v1670_v34 = vsel %vm375_vm10, %v1668_v13, %v1669_v2  ;;  %v1712_v2 = vmul.f32 %v3879_v49, %v1711_v17 }
 0x1f1   : > { %v3947_v14 = vpop.permute.xlu1 %1214 }
 0x1f2   : > { %5163 = vst [vmem:[#allocation85_spill] sm:$0xff] %v3947_v14  ;;  %v3949_v5 = vpop.permute.xlu0 %1190  ;;  %v1694_v14 = vsel %vm375_vm10, %v1692_v16, %v1693_v21  ;;  %v1695_v51 = vrot.slane %v1688_v41, 4  ;;  %v3976_v16 = vmul.f32 %v3761_v45, %v1735_v55 }
 0x1f3   : > { %5164 = vst [vmem:[#allocation86_spill] sm:$0xff] %v3949_v5  ;;  %1675 = vrot.lane.b32.xlu1 %v1672_v25, %s2938_s18  ;;  %v1713_v5 = vmul.f32 %v3894_v46, %v1711_v17  ;;  %v1718_v17 = vrot.slane %v1712_v2, 4 }
 0x1f4   : > { %1651 = vrot.lane.b32.xlu0 %v1648_v54, %s2938_s18  ;;  %v1721_v54 = vrot.slane %v3963_v15, 4  ;;  %v1743_v15 = vrot.slane %v3976_v16, 4  ;;  %v1738_v16 = vmul.f32 %v3780_v7, %v1735_v55 }
 0x1f5   : > { %v3955_v6 = vpop.permute.xlu1 %1218  ;;  %v1719_v25 = vrot.slane %v1713_v5, 4 }
 0x1f6   : > { %5165 = vst [vmem:[#allocation87_spill] sm:$0xff] %v3955_v6  ;;  %v3958_v40 = vpop.permute.xlu0 %1194 }
 0x1f7   : > { %5166 = vst [vmem:[#allocation88_spill] sm:$0xff] %v3958_v40  ;;  %1697 = vrot.lane.b32.xlu1 %v1694_v14, %s2938_s18  ;;  %v1736_v14 = vmul.f32 %v3767_v22, %v1735_v55  ;;  %v1722_v41 = vsel %vm375_vm10, %v1719_v25, %v1721_v54  ;;  %v1720_v55 = vsel %vm375_vm10, %v1718_v17, %v1719_v25 }
 0x1f8   : > { %1673 = vrot.lane.b32.xlu0 %v1670_v34, %s2938_s18  ;;  %v1761_v34 = vstv %s3967_s16  ;;  %s4064_s16 = sld [smem:[#allocation4 + $0x3d]] }
 0x1f9   : > { %v3970_v39 = vpop.permute.xlu1 %1242  ;;  %v1742_v6 = vrot.slane %v1736_v14, 4  ;;  %v4016_v2 = vmul.f32 %v3894_v46, %v1761_v34 }
 0x1fa   : > { %5167 = vst [vmem:[#allocation89_spill] sm:$0xff] %v3970_v39  ;;  %v3972_v52 = vpop.permute.xlu0 %1216 }
 0x1fb   : > { %5168 = vst [vmem:[#allocation90_spill] sm:$0xff] %v3972_v52  ;;  %1701 = vrot.lane.b32.xlu1 %v1695_v51, %s2938_s18  ;;  %v4047_v52 = vstv %s3994_s6  ;;  %v5177_v58 = vrot.slane %v4016_v2, 5  ;;  %v5184_v27 = vrot.slane %v4016_v2, 5  ;;  %s4200_s6 = sld [smem:[#allocation4 + $0x1a]] }
 0x1fc   : > { %1677 = vrot.lane.b32.xlu0 %v1671_v1, %s2938_s18  ;;  %v1696_v1 = vsel %vm375_vm10, %v1693_v21, %v1695_v51  ;;  %v1744_v21 = vsel %vm375_vm10, %v1742_v6, %v1743_v15  ;;  %v4013_v51 = vmul.f32 %v3879_v49, %v1761_v34  ;;  %v4030_v6 = vstv %s3982_s23  ;;  %s2939_s23 = smov 123  }
 0x1fd   : > { %v3984_v13 = vpop.permute.xlu1 %1264  ;;  %v4037_v34 = vstv %s3986_s24  ;;  %s4096_s24 = sld [smem:[#allocation4 + $0x13]]  ;;  %v404_v48 = vmul.f32 %v3879_v49, %v4030_v6 }
 0x1fe   : > { %5169 = vst [vmem:[#allocation91_spill] sm:$0xff] %v3984_v13  ;;  %v3988_v5 = vpop.permute.xlu0 %1240  ;;  %v1766_v17 = vrot.slane %v4013_v51, 5  ;;  %v4061_v51 = vstv %s3999_s7  ;;  %v4073_v39 = vmul.f32 %v3909_v3, %v4037_v34  ;;  %s4249_s7 = sld [smem:[#allocation4 + $0x4b]] }
 0x1ff   : > { %5170 = vst [vmem:[#allocation92_spill] sm:$0xff] %v3988_v5  ;;  %1725 = vrot.lane.b32.xlu1 %v1722_v41, %s2938_s18 }
 0x200   : > { %1699 = vrot.lane.b32.xlu0 %v1696_v1, %s2938_s18  ;;  %v1745_v1 = vrot.slane %v1738_v16, 4  ;;  %v323_v16 = vmul.f32 %v3909_v3, %v4047_v52  ;;  %v1768_v32 = vsel %vm484_vm4, %v1766_v17, %v5177_v58  ;;  %v4101_v58 = vstv %s4026_s28  ;;  %s4433_s28 = sld [smem:[#allocation4 + $0x2f]] }
 0x201   : > { %v4004_v40 = vpop.permute.xlu1 %1268  ;;  %v5181_v31 = vrot.slane %v4073_v39, 4  ;;  %v1895_v29 = vstv %s4200_s6  ;;  %s4843_s6 = sld [smem:[#allocation4 + $0x1b]] }
 0x202   : > { %5171 = vst [vmem:[#allocation93_spill] sm:$0xff] %v4004_v40  ;;  %v4009_v41 = vpop.permute.xlu0 %1244 }
 0x203   : > { %5172 = vst [vmem:[#allocation94_spill] sm:$0xff] %v4009_v41  ;;  %1747 = vrot.lane.b32.xlu1 %v1744_v21, %s2938_s18  ;;  %v4067_v21 = vstv %s4002_s20  ;;  %v4083_v41 = vstv %s4007_s26  ;;  %s4306_s20 = sld [smem:[#allocation4 + $0x21]]  ;;  %s4350_s26 = sld [smem:[#allocation4 + $0x52]] }
 0x204   : > { %1723 = vrot.lane.b32.xlu0 %v1720_v55, %s2938_s18  ;;  %v1781_v55 = vstv %s3992_s5  ;;  %v346_v60 = vmul.f32 %v3780_v7, %v4083_v41  ;;  %s4103_s5 = sld [smem:[#allocation4 + $0x1c]] }
 0x205   : > { %v4032_v14 = vpop.permute.xlu1 %1293  ;;  %v4078_v13 = vmul.f32 %v3767_v22, %v1781_v55 }
 0x206   : > { %5173 = vst [vmem:[#allocation95_spill] sm:$0xff] %v4032_v14  ;;  %v4041_v25 = vpop.permute.xlu0 %1266  ;;  %v339_v14 = vmul.f32 %v3909_v3, %v4061_v51 }
 0x207   : > { %5174 = vst [vmem:[#allocation96_spill] sm:$0xff] %v4041_v25  ;;  %1751 = vrot.lane.b32.xlu1 %v1745_v1, %s2938_s18  ;;  %v4058_v25 = vmul.f32 %v3909_v3, %v4030_v6 }
 0x208   : > { %1727 = vrot.lane.b32.xlu0 %v1721_v54, %s2938_s18  ;;  %v330_v54 = vmul.f32 %v3780_v7, %v4067_v21  ;;  %v349_v5 = vadd.f32 %v346_v60, %v339_v14  ;;  %v4123_v60 = vmul.f32 %v3780_v7, %v4101_v58 }
 0x209   : > { %v4075_v40 = vpop.permute.xlu1 %1313  ;;  %v5180_v28 = vrot.slane %v4058_v25, 4  ;;  %v5196_v50 = vrot.slane %v4058_v25, 4 }
 0x20a   : > { %5175 = vst [vmem:[#allocation97_spill] sm:$0xff] %v4075_v40  ;;  %v4085_v23 = vpop.permute.xlu0 %1291  ;;  %v1746_v40 = vsel %vm375_vm10, %v1743_v15, %v1745_v1  ;;  %v1786_v15 = vrot.slane %v4078_v13, 5  ;;  %v1783_v1 = vmul.f32 %v3761_v45, %v1781_v55  ;;  %v4131_v55 = vstv %s4051_s15  ;;  %s4511_s15 = sld [smem:[#allocation4 + $0x60]] }
 0x20b   : > { %5176 = vst [vmem:[#allocation98_spill] sm:$0xff] %v4085_v23  ;;  %1771 = vrot.lane.b32.xlu1 %v1768_v32, %s2939_s23  ;;  %v333_v23 = vadd.f32 %v330_v54, %v323_v16  ;;  %v4112_v16 = vstv %s4034_s8  ;;  %v353_v54 = vmul.f32 %v3879_v49, %v352_v10  ;;  %v360_v32 = vmul.f32 %v3767_v22, %v359_v4  ;;  %s4473_s8 = sld [smem:[#allocation4 + $0x6]] }
 0x20c   : > { %1749 = vrot.lane.b32.xlu0 %v1746_v40, %s2938_s18  ;;  %v1806_v40 = vmul.f32 %v3909_v3, %v1803_v26  ;;  %v4127_v13 = vmul.f32 %v3780_v7, %v4112_v16  ;;  %v458_v14 = vadd.f32 %v5181_v31, %v349_v5  ;;  %v1787_v35 = vrot.slane %v1783_v1, 5  ;;  %s4148_s18 = sld [smem:[#allocation4 + $0x44]] }
 0x20d   : > { %v4107_v62 = vpop.permute.xlu1 %1335  ;;  %v420_v38 = vadd.f32 %v5180_v28, %v333_v23  ;;  %v5076_v28 = vrot.slane %v4123_v60, 4  ;;  %v1804_v5 = vmul.f32 %v3879_v49, %v1803_v26  ;;  %v1845_v1 = vstv %s4096_s24  ;;  %s4752_s24 = sld [smem:[#allocation4 + $0x37]] }
 0x20e   : > { %5178 = vst [vmem:[#allocation99_spill] sm:$0xff] %v4107_v62  ;;  %v4115_v9 = vpop.permute.xlu0 %1311  ;;  %v355_v62 = vmul.f32 %v3909_v3, %v352_v10  ;;  %v1813_v61 = vrot.slane %v1806_v40, 1  ;;  %v5075_v31 = vrot.slane %v4127_v13, 4  ;;  %v4166_v0 = vstv %s4103_s5  ;;  %s4763_s5 = sld [smem:[#allocation4 + $0x14]] }
 0x20f   : > { %5179 = vst [vmem:[#allocation100_spill] sm:$0xff] %v4115_v9  ;;  %1789 = vrot.lane.b32.xlu1 %v1786_v15, %s2939_s23  ;;  %v1823_v9 = vstv %s4064_s16  ;;  %v4173_v40 = vadd.f32 %v5076_v28, %v420_v38  ;;  %v4187_v38 = vmul.f32 %v3894_v46, %v1845_v1  ;;  %s2940_s16 = smov 122  }
 0x210   : > { %1769 = vrot.lane.b32.xlu0 %v1766_v17, %s2939_s23  ;;  %v4146_v30 = vmul.f32 %v3761_v45, %v1823_v9  ;;  %v1826_v23 = vmul.f32 %v3780_v7, %v1823_v9  ;;  %v4162_v47 = vadd.f32 %v362_v20, %v355_v62  ;;  %v4177_v26 = vadd.f32 %v5075_v31, %v458_v14 }
 0x211   : > { %v4143_v18 = vpop.permute.xlu1 %1357  ;;  %5185 = vst [vmem:[#allocation103_spill] sm:$0xff] %v4173_v40  ;;  %v361_v20 = vmul.f32 %v3761_v45, %v359_v4  ;;  %v1814_v2 = vsel %vm529_vm5, %v1811_v42, %v1813_v61  ;;  %v371_v4 = vmul.f32 %v3909_v3, %v4166_v0  ;;  %v4196_v14 = vmul.f32 %v3894_v46, %v4166_v0 }
 0x212   : > { %5182 = vst [vmem:[#allocation101_spill] sm:$0xff] %v4143_v18  ;;  %v4151_v17 = vpop.permute.xlu0 %1333  ;;  %v4160_v18 = vadd.f32 %v360_v32, %v353_v54  ;;  %5186 = vst [vmem:[#allocation104_spill] sm:$0xff] %v4177_v26  ;;  %v1833_v54 = vrot.slane %v1826_v23, 1  ;;  %v1810_v61 = vrot.slane %v1804_v5, 1  ;;  %v5189_v31 = vstv %s4039_s17 }
 0x213   : > { %5183 = vst [vmem:[#allocation102_spill] sm:$0xff] %v4151_v17  ;;  %1793 = vrot.lane.b32.xlu1 %v1787_v35, %s2939_s23  ;;  %v354_v17 = vmul.f32 %v3894_v46, %v352_v10  ;;  %v1831_v10 = vrot.slane %v4146_v30, 1  ;;  %v1788_v30 = vsel %vm484_vm4, %v1786_v15, %v1787_v35  ;;  %v315_v28 = vmul.f32 %v3761_v45, %v5189_v31 }
 0x214   : > { %1773 = vrot.lane.b32.xlu0 %v5184_v27, %s2939_s23  ;;  %v4190_v27 = vmul.f32 %v3909_v3, %v1845_v1  ;;  %v4219_v15 = vmul.f32 %v3894_v46, %v4030_v6  ;;  %v1824_v31 = vmul.f32 %v3767_v22, %v1823_v9  ;;  %v1869_v5 = vstv %s4148_s18  ;;  %s4803_s18 = sld [smem:[#allocation4 + $0x5a]] }
 0x215   : > { %v4180_v62 = vpop.permute.xlu1 %1361  ;;  %v4202_v23 = vadd.f32 %v361_v20, %v354_v17  ;;  %v1834_v26 = vsel %vm529_vm5, %v1831_v10, %v1833_v54  ;;  %v1853_v40 = vrot.slane %v4187_v38, 1  ;;  %v4231_v37 = vmul.f32 %v3761_v45, %v1869_v5 }
 0x216   : > { %5187 = vst [vmem:[#allocation105_spill] sm:$0xff] %v4180_v62  ;;  %v4183_v32 = vpop.permute.xlu0 %1337  ;;  %v4209_v62 = vmul.f32 %v3761_v45, %v4131_v55  ;;  %v1846_v9 = vmul.f32 %v3879_v49, %v1845_v1  ;;  %v322_v54 = vmul.f32 %v3894_v46, %v4047_v52  ;;  %v1870_v38 = vmul.f32 %v3767_v22, %v1869_v5 }
 0x217   : > { %5188 = vst [vmem:[#allocation106_spill] sm:$0xff] %v4183_v32  ;;  %1817 = vrot.lane.b32.xlu1 %v1814_v2, %s2939_s23  ;;  %v388_v32 = vmul.f32 %v3780_v7, %v4131_v55  ;;  %v5190_v2 = vstv %s4049_s3  ;;  %v1830_v1 = vrot.slane %v1824_v31, 1  ;;  %v5200_v25 = vrot.slane %v4231_v37, 1 }
 0x218   : > { %1791 = vrot.lane.b32.xlu0 %v1788_v30, %s2939_s23  ;;  %v310_v35 = vmul.f32 %v3894_v46, %v5190_v2  ;;  %v5077_v30 = vrot.slane %v4190_v27, 1  ;;  %v379_v2 = vrot.slane %v371_v4, 4 }
 0x219   : > { %v4221_v17 = vpop.permute.xlu1 %1385  ;;  %v395_v53 = vrot.slane %v388_v32, 4  ;;  %v329_v32 = vmul.f32 %v3761_v45, %v4067_v21  ;;  %v1832_v19 = vsel %vm529_vm5, %v1830_v1, %v1831_v10  ;;  %v345_v10 = vmul.f32 %v3761_v45, %v4083_v41 }
 0x21a   : > { %5191 = vst [vmem:[#allocation107_spill] sm:$0xff] %v4221_v17  ;;  %v4225_v20 = vpop.permute.xlu0 %1359  ;;  %v1812_v17 = vsel %vm529_vm5, %v1810_v61, %v1811_v42  ;;  %v317_v4 = vadd.f32 %v315_v28, %v310_v35  ;;  %v4255_v61 = vmul.f32 %v3761_v45, %v4101_v58  ;;  %v1856_v28 = vsel %vm529_vm5, %v1853_v40, %v5077_v30 }
 0x21b   : > { %5192 = vst [vmem:[#allocation108_spill] sm:$0xff] %v4225_v20  ;;  %1837 = vrot.lane.b32.xlu1 %v1834_v26, %s2939_s23  ;;  %v4245_v26 = vmul.f32 %v3894_v46, %v4037_v34  ;;  %v5195_v20 = vrot.slane %v4196_v14, 4  ;;  %v332_v63 = vadd.f32 %v329_v32, %v322_v54  ;;  %v338_v30 = vmul.f32 %v3894_v46, %v4061_v51 }
 0x21c   : > { %1815 = vrot.lane.b32.xlu0 %v1812_v17, %s2939_s23  ;;  %v1876_v35 = vrot.slane %v1870_v38, 1  ;;  %v1872_v1 = vmul.f32 %v3780_v7, %v1869_v5  ;;  %v369_v32 = vmul.f32 %v3879_v49, %v4166_v0  ;;  %v5078_v0 = vrot.slane %v4255_v61, 4 }
 0x21d   : > { %v4247_v42 = vpop.permute.xlu1 %1407  ;;  %v380_v31 = vsel %vm375_vm10, %v5195_v20, %v379_v2  ;;  %v5197_v20 = vrot.slane %v4219_v15, 4 }
 0x21e   : > { %5193 = vst [vmem:[#allocation109_spill] sm:$0xff] %v4247_v42  ;;  %v4257_v17 = vpop.permute.xlu0 %1383  ;;  %v1852_v42 = vrot.slane %v1846_v9, 1  ;;  %v1878_v38 = vsel %vm529_vm5, %v1876_v35, %v5200_v25  ;;  %v384_v9 = vadd.f32 %v380_v31, %v317_v4  ;;  %v5203_v4 = vrot.slane %v4245_v26, 4 }
 0x21f   : > { %5194 = vst [vmem:[#allocation110_spill] sm:$0xff] %v4257_v17  ;;  %1859 = vrot.lane.b32.xlu1 %v1856_v28, %s2939_s23  ;;  %v4271_v17 = vmul.f32 %v3761_v45, %v4112_v16  ;;  %v414_v2 = vsel %vm375_vm10, %v5197_v20, %v5196_v50  ;;  %v4295_v50 = vmul.f32 %v3894_v46, %v1895_v29  ;;  %v5201_v20 = vrot.slane %v4209_v62, 4 }
 0x220   : > { %1835 = vrot.lane.b32.xlu0 %v1832_v19, %s2939_s23  ;;  %v4298_v28 = vmul.f32 %v3909_v3, %v1895_v29  ;;  %v419_v35 = vadd.f32 %v414_v2, %v332_v63  ;;  %v1879_v63 = vrot.slane %v1872_v1, 1  ;;  %v1919_v2 = vstv %s4249_s7  ;;  %s2676_s7 = sld [smem:[#allocation4 + $0x22]] }
 0x221   : > { %v4284_v54 = vpop.permute.xlu1 %1411  ;;  %v396_v5 = vsel %vm375_vm10, %v5201_v20, %v395_v53  ;;  %v467_v25 = vrot.slane %v4271_v17, 4  ;;  %v5202_v53 = vrot.slane %v4073_v39, 4  ;;  %v376_v20 = vrot.slane %v369_v32, 4 }
 0x222   : > { %5198 = vst [vmem:[#allocation111_spill] sm:$0xff] %v4284_v54  ;;  %v4289_v19 = vpop.permute.xlu0 %1387  ;;  %v1854_v54 = vsel %vm529_vm5, %v1852_v42, %v1853_v40  ;;  %v1903_v6 = vrot.slane %v4295_v50, 1  ;;  %v4328_v39 = vmul.f32 %v3761_v45, %v1919_v2  ;;  %v5206_v1 = vstv %s4039_s17  ;;  %s4496_s17 = sld [smem:[#allocation4 + $0x59]] }
 0x223   : > { %5199 = vst [vmem:[#allocation112_spill] sm:$0xff] %v4289_v19  ;;  %1881 = vrot.lane.b32.xlu1 %v1878_v38, %s2939_s23  ;;  %v348_v19 = vadd.f32 %v345_v10, %v338_v30  ;;  %v452_v31 = vsel %vm375_vm10, %v5203_v4, %v5202_v53  ;;  %v5204_v38 = vstv %s4049_s3  ;;  %v5205_v53 = vrot.slane %v4123_v60, 4  ;;  %s4505_s3 = sld [smem:[#allocation4 + $0x29]] }
 0x224   : > { %1857 = vrot.lane.b32.xlu0 %v1854_v54, %s2939_s23  ;;  %v309_v40 = vmul.f32 %v3879_v49, %v5204_v38  ;;  %v4330_v54 = vadd.f32 %v396_v5, %v384_v9  ;;  %v314_v32 = vmul.f32 %v3767_v22, %v5206_v1  ;;  %v1896_v50 = vmul.f32 %v3879_v49, %v1895_v29 }
 0x225   : > { %v4320_v42 = vpop.permute.xlu1 %1435  ;;  %v432_v4 = vsel %vm375_vm10, %v5078_v0, %v5205_v53  ;;  %v386_v10 = vmul.f32 %v3767_v22, %v4131_v55  ;;  %v410_v9 = vrot.slane %v404_v48, 4  ;;  %v5207_v60 = vrot.slane %v4190_v27, 1 }
 0x226   : > { %v4323_v30 = vpop.permute.xlu0 %1409  ;;  %v4342_v38 = vadd.f32 %v432_v4, %v419_v35  ;;  %v1920_v5 = vmul.f32 %v3767_v22, %v1919_v2  ;;  %v5208_v53 = vrot.slane %v4127_v13, 4  ;;  %v457_v35 = vadd.f32 %v452_v31, %v348_v19 }
 0x227   : > { %1885 = vrot.lane.b32.xlu1 %v1879_v63, %s2939_s23  ;;  %v316_v4 = vadd.f32 %v314_v32, %v309_v40  ;;  %v321_v48 = vmul.f32 %v3879_v49, %v4047_v52  ;;  %v5209_v27 = vrot.slane %v4196_v14, 4  ;;  %v5210_v13 = vrot.slane %v4298_v28, 1 }
 0x228   : > { %1861 = vrot.lane.b32.xlu0 %v5207_v60, %s2939_s23  ;;  %v470_v29 = vsel %vm375_vm10, %v467_v25, %v5208_v53  ;;  %v328_v60 = vmul.f32 %v3767_v22, %v4067_v21  ;;  %v1927_v19 = vrot.slane %v4328_v39, 1  ;;  %v422_v52 = vmul.f32 %v3767_v22, %v4101_v58 }
 0x229   : > { %v4359_v55 = vpop.permute.xlu1 %1457  ;;  %v378_v1 = vsel %vm375_vm10, %v376_v20, %v5209_v27  ;;  %v1906_v53 = vsel %vm529_vm5, %v1903_v6, %v5210_v13  ;;  %v5211_v14 = vrot.slane %v4231_v37, 1  ;;  %v1902_v40 = vrot.slane %v1896_v50, 1 }
 0x22a   : > { %v4366_v0 = vpop.permute.xlu0 %1433  ;;  %v1945_v20 = vstv %s4306_s20  ;;  %v392_v21 = vrot.slane %v386_v10, 4  ;;  %v5212_v32 = vrot.slane %v4219_v15, 4  ;;  %v442_v39 = vmul.f32 %v3879_v49, %v4037_v34  ;;  %s2675_s20 = sld [smem:[#allocation4 + $0x4c]] }
 0x22b   : > { %1909 = vrot.lane.b32.xlu1 %v1906_v53, %s2939_s23  ;;  %v1880_v31 = vsel %vm529_vm5, %v5211_v14, %v1879_v63  ;;  %v1926_v58 = vrot.slane %v1920_v5, 1  ;;  %v4389_v37 = vadd.f32 %v470_v29, %v457_v35  ;;  %v383_v63 = vadd.f32 %v378_v1, %v316_v4 }
 0x22c   : > { %v412_v27 = vsel %vm375_vm10, %v410_v9, %v5212_v32  ;;  %1883 = vrot.lane.b32.xlu0 %v1880_v31, %s2939_s23  ;;  %v331_v50 = vadd.f32 %v328_v60, %v321_v48  ;;  %v1922_v10 = vmul.f32 %v3780_v7, %v1919_v2  ;;  %v460_v15 = vmul.f32 %v3767_v22, %v4112_v16 }
 0x22d   : > { %v4391_v13 = vpop.permute.xlu1 %1461  ;;  %v1928_v34 = vsel %vm529_vm5, %v1926_v58, %v1927_v19  ;;  %v4400_v5 = vmul.f32 %v3894_v46, %v1945_v20  ;;  %v4403_v29 = vmul.f32 %v3909_v3, %v1945_v20  ;;  %v428_v4 = vrot.slane %v422_v52, 4 }
 0x22e   : > { %v4396_v9 = vpop.permute.xlu0 %1437  ;;  %v418_v35 = vadd.f32 %v412_v27, %v331_v50  ;;  %v337_v48 = vmul.f32 %v3879_v49, %v4061_v51  ;;  %v1904_v2 = vsel %vm529_vm5, %v1902_v40, %v1903_v6  ;;  %v5213_v16 = vrot.slane %v4209_v62, 4 }
 0x22f   : > { %1931 = vrot.lane.b32.xlu1 %v1928_v34, %s2939_s23  ;;  %v344_v60 = vmul.f32 %v3767_v22, %v4083_v41  ;;  %v448_v53 = vrot.slane %v442_v39, 4  ;;  %v1969_v52 = vstv %s4350_s26  ;;  %v497_v51 = vadd.f32 %v3671_v11, %v4160_v18  ;;  %s2677_s26 = sld [smem:[#allocation4 + $0x53]] }
 0x230   : > { %v394_v1 = vsel %vm375_vm10, %v392_v21, %v5213_v16  ;;  %1907 = vrot.lane.b32.xlu0 %v1904_v2, %s2939_s23  ;;  %v5214_v14 = vrot.slane %v4255_v61, 4  ;;  %v1929_v62 = vrot.slane %v1922_v10, 1  ;;  %v4426_v40 = vmul.f32 %v3761_v45, %v1969_v52 }
 0x231   : > { %v4423_v31 = vpop.permute.xlu1 %1478  ;;  %v466_v41 = vrot.slane %v460_v15, 4  ;;  %v1953_v32 = vrot.slane %v4400_v5, 1  ;;  %v1955_v27 = vrot.slane %v4403_v29, 1  ;;  %v1946_v18 = vmul.f32 %v3879_v49, %v1945_v20 }
 0x232   : > { %v430_v6 = vsel %vm375_vm10, %v428_v4, %v5214_v14  ;;  %v4428_v21 = vpop.permute.xlu0 %1459  ;;  %v4435_v11 = vadd.f32 %v394_v1, %v383_v63  ;;  %v347_v39 = vadd.f32 %v344_v60, %v337_v48  ;;  %v2129_v45 = vstv %s4379_s27  ;;  %s2680_s27 = sld [smem:[#allocation4 + $0x30]] }
 0x233   : > { %v4437_v61 = vadd.f32 %v430_v6, %v418_v35  ;;  %1935 = vrot.lane.b32.xlu1 %v1929_v62, %s2939_s23  ;;  %v5215_v58 = vrot.slane %v4245_v26, 4  ;;  %v468_v10 = vsel %vm375_vm10, %v466_v41, %v467_v25  ;;  %v5216_v20 = vrot.slane %v4298_v28, 1 }
 0x234   : > { %v1970_v63 = vmul.f32 %v3767_v22, %v1969_v52  ;;  %v1995_v15 = vstv %s4387_s30  ;;  %v517_v34 = vadd.f32 %v3530_v44, %v497_v51  ;;  %v1930_v26 = vsel %vm529_vm5, %v1927_v19, %v1929_v62  ;;  %s2681_s30 = sld [smem:[#allocation4 + $0x61]] }
 0x235   : > { %v450_v50 = vsel %vm375_vm10, %v448_v53, %v5215_v58  ;;  %1911 = vrot.lane.b32.xlu0 %v5216_v20, %s2939_s23  ;;  %v4453_v5 = vpop.permute.xlu1 %1491  ;;  %v1977_v35 = vrot.slane %v4426_v40, 1  ;;  %v1972_v17 = vmul.f32 %v3780_v7, %v1969_v52  ;;  %v1956_v28 = vsel %vm529_vm5, %v1953_v32, %v1955_v27  ;;  %v4478_v52 = vld [vmem:[#allocation3 + $0x8] sm:$0xff] }
 0x236   : > { %v4458_v4 = vpop.permute.xlu0 %1476  ;;  %v1952_v25 = vrot.slane %v1946_v18, 1  ;;  %v4464_v22 = vmul.f32 %v3879_v49, %v2129_v45  ;;  %v2131_v44 = vmul.f32 %v3894_v46, %v2129_v45  ;;  %v499_v48 = vadd.f32 %v3679_v24, %v4162_v47 }
 0x237   : > { %v686_v19 = vadd.f32 %v3813_v57, %v517_v34  ;;  %1959 = vrot.lane.b32.xlu1 %v1956_v28, %s2939_s23  ;;  %v1996_v2 = vmul.f32 %v3879_v49, %v1995_v15  ;;  %v2153_v16 = vstv %s4409_s19  ;;  %v1976_v1 = vrot.slane %v1970_v63, 1  ;;  %v4499_v63 = vld [vmem:[#allocation3] sm:$0xff]  ;;  %s2584_s19 = sshll.u32 %s3108_s4, 4 }
 0x238   : > { %v1997_v60 = vmul.f32 %v3894_v46, %v1995_v15  ;;  %v2132_v53 = vmul.f32 %v3909_v3, %v2129_v45  ;;  %v4481_v24 = vmul.f32 %v4478_v52, %v2153_v16  ;;  %v456_v57 = vadd.f32 %v450_v50, %v347_v39 }
 0x239   : > { %1933 = vrot.lane.b32.xlu0 %v1930_v26, %s2939_s23  ;;  %v4483_v47 = vpop.permute.xlu1 %1508  ;;  %v1979_v51 = vrot.slane %v1972_v17, 1  ;;  %v2156_v14 = vmul.f32 %v3780_v7, %v2153_v16  ;;  %v1998_v6 = vmul.f32 %v3909_v3, %v1995_v15  ;;  %v1978_v40 = vsel %vm529_vm5, %v1976_v1, %v1977_v35 }
 0x23a   : > { %v4487_v62 = vpop.permute.xlu0 %1489  ;;  %v1954_v41 = vsel %vm529_vm5, %v1952_v25, %v1953_v32  ;;  %v2136_v18 = vrot.slane %v4464_v22, 6  ;;  %v2037_v45 = vstv %s4433_s28  ;;  %v519_v58 = vadd.f32 %v3541_v8, %v499_v48  ;;  %s2690_s28 = sshll.u32 %s2919_s12, 8  ;;  %s2941_s12 = smov [#allocation9]  }
 0x23b   : > { %v710_v39 = vadd.f32 %v3677_v12, %v686_v19  ;;  %1981 = vrot.lane.b32.xlu1 %v1978_v40, %s2939_s23  ;;  %v2137_v50 = vrot.slane %v2131_v44, 6  ;;  %v2002_v20 = vrot.slane %v1996_v2, 5  ;;  %v2003_v7 = vrot.slane %v1997_v60, 5  ;;  %v5219_v40 = vld [vmem:[#allocation62_spill] sm:$0xff] }
 0x23c   : > { %v4502_v32 = vmul.f32 %v4499_v63, %v2153_v16  ;;  %v2139_v15 = vrot.slane %v2132_v53, 6  ;;  %v2161_v34 = vrot.slane %v4481_v24, 6  ;;  %v688_v8 = vadd.f32 %v3708_v56, %v519_v58 }
 0x23d   : > { %1957 = vrot.lane.b32.xlu0 %v1954_v41, %s2939_s23  ;;  %v4508_v12 = vpop.permute.xlu1 %1525  ;;  %v2163_v26 = vrot.slane %v2156_v14, 6  ;;  %v2005_v17 = vrot.slane %v1998_v6, 5  ;;  %v2039_v28 = vmul.f32 %v3894_v46, %v2037_v45  ;;  %v4513_v25 = vadd.f32 %v468_v10, %v456_v57  ;;  %v5218_v14 = vld [vmem:[#allocation13_spill] sm:$0xff] }
 0x23e   : > { %v4515_v44 = vpop.permute.xlu0 %1506  ;;  %v1980_v48 = vsel %vm529_vm5, %v1977_v35, %v1979_v51  ;;  %v4519_v19 = vmul.f32 %v3909_v3, %v2037_v45  ;;  %v2038_v2 = vmul.f32 %v3879_v49, %v2037_v45  ;;  %v498_v56 = vadd.f32 %v3746_v36, %v4202_v23  ;;  %v5220_v45 = vld [vmem:[#allocation25_spill] sm:$0xff] }
 0x23f   : > { %v871_v16 = vadd.f32 %v3749_v43, %v710_v39  ;;  %1985 = vrot.lane.b32.xlu1 %v1979_v51, %s2939_s23  ;;  %v2138_v10 = vsel %vm812_vm6, %v2136_v18, %v2137_v50  ;;  %v2087_v1 = vstv %s4473_s8  ;;  %v542_v35 = vadd.f32 %v3757_v59, %v4330_v54  ;;  %s192_s8 = scalar_lea.vmem [#allocation9], %s2584_s19 }
 0x240   : > { %v2004_v60 = vsel %vm484_vm4, %v2002_v20, %v2003_v7  ;;  %v2160_v36 = vrot.slane %v4502_v32, 6  ;;  %v2140_v43 = vsel %vm812_vm6, %v2137_v50, %v2139_v15  ;;  %v712_v23 = vadd.f32 %v3580_v33, %v688_v8  ;;  %v5221_v50 = vld [vmem:[#allocation31_spill] sm:$0xff] }
 0x241   : > { %1961 = vrot.lane.b32.xlu0 %v1955_v27, %s2939_s23  ;;  %v4539_v53 = vpop.permute.xlu1 %1529  ;;  %v4542_v24 = vsel %vm812_vm6, %v2161_v34, %v2163_v26  ;;  %v4545_v59 = vsel %vm484_vm4, %v2003_v7, %v2005_v17  ;;  %v2045_v54 = vrot.slane %v2039_v28, 5  ;;  %v5079_v27 = vrot.slane %v4519_v19, 5  ;;  %v5222_v15 = vld [vmem:[#allocation51_spill] sm:$0xff]  ;;  %v5223_v26 = vld [vmem:[#allocation52_spill] sm:$0xff]  ;;  %v5224_v28 = vld [vmem:[#allocation70_spill] sm:$0xff] }
 0x242   : > { %5217 = vst [vmem:[#allocation113_spill] sm:$0xff] %v4539_v53  ;;  %v4547_v29 = vpop.permute.xlu0 %1510  ;;  %v4551_v57 = vmul.f32 %v3879_v49, %v2087_v1  ;;  %v2044_v51 = vrot.slane %v2038_v2, 5  ;;  %v4554_v33 = vmul.f32 %v3894_v46, %v2087_v1  ;;  %v518_v6 = vadd.f32 %v5218_v14, %v498_v56  ;;  %v5228_v14 = vld [vmem:[#allocation40_spill] sm:$0xff] }
 0x243   : > { %v873_v41 = vadd.f32 %v5219_v40, %v712_v23  ;;  %v895_v58 = vadd.f32 %v5220_v45, %v871_v16  ;;  %2143 = vrot.lane.b32.xlu1 %v2138_v10, %s2940_s16  ;;  %v2015_v39 = vstv %s4496_s17  ;;  %v562_v20 = vadd.f32 %v5221_v50, %v542_v35  ;;  %v5227_v10 = vld [vmem:[#allocation54_spill] sm:$0xff]  ;;  %v4598_v45 = vld [vmem:[#allocation3 + $0x10] sm:$0x3f]  ;;  %s2477_s17 = sshll.u32 %s192_s8, 4  ;;  %s5018_s17 = int_to_ptr.vmem [resolvable:$true] %s2477_s17 }
 0x244   : > { %v4564_v49 = vsel %vm812_vm6, %v2160_v36, %v2161_v34  ;;  %v4567_v7 = vmul.f32 %v4478_v52, %v2015_v39  ;;  %v4570_v32 = vstv %s4505_s3  ;;  %v541_v8 = vadd.f32 %v5222_v15, %v4435_v11  ;;  %v5229_v50 = vld [vmem:[#allocation48_spill] sm:$0xff] }
 0x245   : > { %1983 = vrot.lane.b32.xlu0 %v1980_v48, %s2939_s23  ;;  %v687_v17 = vadd.f32 %v5223_v26, %v518_v6  ;;  %v1064_v2 = vadd.f32 %v5224_v28, %v895_v58  ;;  %v4576_v56 = vpop.permute.xlu1 %1548  ;;  %v4579_v16 = vstv %s4511_s15  ;;  %v5226_v48 = vld [vmem:[#allocation53_spill] sm:$0xff]  ;;  %v734_v1 = vadd.f32 %v5227_v10, %v562_v20  ;;  %v5231_v26 = vld [vmem:[#allocation20_spill] sm:$0xff] }
 0x246   : > { %5225 = vst [vmem:[#allocation13_spill] sm:$0xff] %v4576_v56  ;;  %v586_v34 = vadd.f32 %v5226_v48, %v4437_v61  ;;  %v4584_v35 = vpop.permute.xlu0 %1527  ;;  %v4589_v23 = vsel %vm484_vm4, %v2045_v54, %v5079_v27  ;;  %v897_v6 = vadd.f32 %v5228_v14, %v873_v41  ;;  %v4595_v40 = vsel %vm484_vm4, %v2044_v51, %v2045_v54  ;;  %v5230_v51 = vld [vmem:[#allocation15_spill] sm:$0xff]  ;;  %v5232_v48 = vld [vmem:[#allocation72_spill] sm:$0xff]  ;;  %v5233_v10 = vld [vmem:[#allocation69_spill] sm:$0xff] }
 0x247   : > { %2007 = vrot.lane.b32.xlu1 %v2004_v60, %s2939_s23  ;;  %v4601_v58 = vmul.f32 %v4598_v45, %v2015_v39  ;;  %v587_v20 = vadd.f32 %v5229_v50, %v4342_v38  ;;  %v4611_v60 = vmul.f32 %v3894_v46, %v4570_v32  ;;  %v4615_v54 = vmul.f32 %v3909_v3, %v4570_v32  ;;  %v5236_v50 = vld [vmem:[#allocation37_spill] sm:$0xff]  ;;  %v5238_v11 = vld [vmem:[#allocation36_spill] sm:$0xff] }
 0x248   : > { %v561_v15 = vadd.f32 %v5230_v51, %v541_v8  ;;  %v711_v28 = vadd.f32 %v5231_v26, %v687_v17  ;;  %v1066_v38 = vadd.f32 %v5232_v48, %v897_v6  ;;  %v1088_v14 = vadd.f32 %v5233_v10, %v1064_v2  ;;  %v5237_v27 = vld [vmem:[#allocation33_spill] sm:$0xff]  ;;  %v5240_v8 = vld [vmem:[#allocation58_spill] sm:$0xff]  ;;  %v5241_v51 = vld [vmem:[#allocation59_spill] sm:$0xff] }
 0x249   : > { %2141 = vrot.lane.b32.xlu0 %v2136_v18, %s2940_s16  ;;  %v4621_v22 = vpop.permute.xlu1 %1565  ;;  %v5235_v18 = vld [vmem:[#allocation103_spill] sm:$0xff]  ;;  %v610_v46 = vadd.f32 %v5237_v27, %v586_v34  ;;  %v754_v61 = vadd.f32 %v5238_v11, %v734_v1  ;;  %v4630_v3 = vmul.f32 %v4499_v63, %v2015_v39  ;;  %v5242_v26 = vld [vmem:[#allocation92_spill] sm:$0xff]  ;;  %v4638_v48 = vmul.f32 %v4499_v63, %v4579_v16  ;;  %v5243_v27 = vld [vmem:[#allocation17_spill] sm:$0xff] }
 0x24a   : > { %5234 = vst [vmem:[#allocation62_spill] sm:$0xff] %v4621_v22  ;;  %v588_v41 = vadd.f32 %v5236_v50, %v5235_v18  ;;  %v4627_v56 = vpop.permute.xlu0 %1546  ;;  %v733_v17 = vadd.f32 %v5240_v8, %v561_v15  ;;  %v872_v6 = vadd.f32 %v5241_v51, %v711_v28  ;;  %v1249_v2 = vadd.f32 %v5242_v26, %v1088_v14  ;;  %v5244_v1 = vld [vmem:[#allocation60_spill] sm:$0xff]  ;;  %v5245_v10 = vld [vmem:[#allocation61_spill] sm:$0xff]  ;;  %v5246_v15 = vld [vmem:[#allocation71_spill] sm:$0xff] }
 0x24b   : > { %5239 = vst [vmem:[#allocation25_spill] sm:$0xff] %v4627_v56  ;;  %2165 = vrot.lane.b32.xlu1 %v2160_v36, %s2940_s16  ;;  %v611_v34 = vadd.f32 %v5243_v27, %v587_v20  ;;  %v778_v11 = vadd.f32 %v5244_v1, %v610_v46  ;;  %v920_v18 = vadd.f32 %v5245_v10, %v754_v61  ;;  %v5248_v50 = vrot.slane %v4554_v33, 6  ;;  %v5251_v51 = vld [vmem:[#allocation56_spill] sm:$0xff]  ;;  %v5253_v10 = vld [vmem:[#allocation22_spill] sm:$0xff] }
 0x24c   : > { %v4646_v39 = vmul.f32 %v4478_v52, %v4579_v16  ;;  %v1090_v28 = vadd.f32 %v5246_v15, %v1066_v38  ;;  %v5249_v20 = vrot.slane %v4551_v57, 6  ;;  %v753_v15 = vadd.f32 %v5253_v10, %v733_v17  ;;  %v5254_v36 = vld [vmem:[#allocation28_spill] sm:$0xff]  ;;  %v5255_v22 = vld [vmem:[#allocation94_spill] sm:$0xff]  ;;  %v5264_v10 = vld [vmem:[#allocation39_spill] sm:$0xff] }
 0x24d   : > { %2145 = vrot.lane.b32.xlu0 %v2140_v43, %s2940_s16  ;;  %v4649_v14 = vpop.permute.xlu1 %1569  ;;  %v5250_v43 = vld [vmem:[#allocation14_spill] sm:$0xff]  ;;  %v779_v26 = vadd.f32 %v5251_v51, %v611_v34  ;;  %v5258_v34 = vld [vmem:[#allocation55_spill] sm:$0xff]  ;;  %v5261_v17 = vld [vmem:[#allocation64_spill] sm:$0xff] }
 0x24e   : > { %5247 = vst [vmem:[#allocation31_spill] sm:$0xff] %v4649_v14  ;;  %v4657_v46 = vsel %vm812_vm6, %v5249_v20, %v5248_v50  ;;  %v612_v8 = vadd.f32 %v5250_v43, %v588_v41  ;;  %v4662_v27 = vpop.permute.xlu0 %1550  ;;  %v896_v14 = vadd.f32 %v5254_v36, %v872_v6  ;;  %v1251_v56 = vadd.f32 %v5255_v22, %v1090_v28  ;;  %v5256_v50 = vld [vmem:[#allocation91_spill] sm:$0xff]  ;;  %v5257_v41 = vld [vmem:[#allocation42_spill] sm:$0xff]  ;;  %v5283_v53 = vld [vmem:[#allocation76_spill] sm:$0xff] }
 0x24f   : > { %5252 = vst [vmem:[#allocation51_spill] sm:$0xff] %v4662_v27  ;;  %v1273_v20 = vadd.f32 %v5256_v50, %v1249_v2  ;;  %2169 = vrot.lane.b32.xlu1 %v4542_v24, %s2940_s16  ;;  %v636_v51 = vadd.f32 %v5258_v34, %v4513_v25  ;;  %v5259_v61 = vld [vmem:[#allocation38_spill] sm:$0xff]  ;;  %v5260_v27 = vld [vmem:[#allocation41_spill] sm:$0xff]  ;;  %v919_v6 = vadd.f32 %v5261_v17, %v753_v15  ;;  %v5262_v22 = vld [vmem:[#allocation67_spill] sm:$0xff] }
 0x250   : > { %v780_v43 = vadd.f32 %v5257_v41, %v612_v8  ;;  %v802_v38 = vadd.f32 %v5259_v61, %v778_v11  ;;  %v940_v1 = vadd.f32 %v5260_v27, %v920_v18  ;;  %v1065_v28 = vadd.f32 %v5262_v22, %v896_v14  ;;  %v5263_v8 = vld [vmem:[#allocation104_spill] sm:$0xff]  ;;  %v5266_v11 = vld [vmem:[#allocation66_spill] sm:$0xff]  ;;  %v5267_v18 = vld [vmem:[#allocation73_spill] sm:$0xff] }
 0x251   : > { %2009 = vrot.lane.b32.xlu0 %v4545_v59, %s2939_s23  ;;  %v1442_v2 = vadd.f32 %v4366_v0, %v1273_v20  ;;  %v1589_v36 = vpop.permute.xlu1 %1588  ;;  %v638_v50 = vadd.f32 %v5264_v10, %v5263_v8  ;;  %v5265_v25 = vld [vmem:[#allocation24_spill] sm:$0xff]  ;;  %v5269_v59 = vld [vmem:[#allocation50_spill] sm:$0xff]  ;;  %v5271_v0 = vld [vmem:[#allocation93_spill] sm:$0xff] }
 0x252   : > { %v803_v41 = vadd.f32 %v5265_v25, %v779_v26  ;;  %v964_v61 = vadd.f32 %v5266_v11, %v802_v38  ;;  %v1112_v27 = vadd.f32 %v5267_v18, %v940_v1  ;;  %v4688_v34 = vpop.permute.xlu0 %1567  ;;  %v637_v15 = vadd.f32 %v5269_v59, %v4389_v37  ;;  %v5270_v14 = vld [vmem:[#allocation74_spill] sm:$0xff]  ;;  %v4696_v22 = vld [vmem:[#allocation2] sm:$0xff]  ;;  %v5278_v24 = vld [vmem:[#allocation16_spill] sm:$0xff] }
 0x253   : > { %5268 = vst [vmem:[#allocation52_spill] sm:$0xff] %v4688_v34  ;;  %v1089_v17 = vadd.f32 %v5270_v14, %v1065_v28  ;;  %v1275_v20 = vadd.f32 %v5271_v0, %v1251_v56  ;;  %2051 = vrot.lane.b32.xlu1 %v4589_v23, %s2939_s23  ;;  %v4700_v26 = vmul.f32 %v4696_v22, %v4570_v32  ;;  %v5272_v38 = vld [vmem:[#allocation19_spill] sm:$0xff]  ;;  %v5276_v56 = vld [vmem:[#allocation30_spill] sm:$0xff]  ;;  %v5277_v23 = vld [vmem:[#allocation89_spill] sm:$0xff] }
 0x254   : > { %v804_v1 = vadd.f32 %v5272_v38, %v780_v43  ;;  %v5273_v8 = vld [vmem:[#allocation35_spill] sm:$0xff]  ;;  %v939_v28 = vadd.f32 %v5276_v56, %v919_v6  ;;  %v1466_v32 = vadd.f32 %v4359_v55, %v1442_v2  ;;  %v662_v43 = vadd.f32 %v5278_v24, %v638_v50  ;;  %v5282_v34 = vld [vmem:[#allocation18_spill] sm:$0xff]  ;;  %v5284_v56 = vld [vmem:[#allocation96_spill] sm:$0xff] }
 0x255   : > { %v660_v10 = vadd.f32 %v5273_v8, %v636_v51  ;;  %v5274_v25 = vld [vmem:[#allocation63_spill] sm:$0xff]  ;;  %2167 = vrot.lane.b32.xlu0 %v4564_v49, %s2940_s16  ;;  %v1250_v59 = vadd.f32 %v5277_v23, %v1089_v17  ;;  %v1444_v14 = vadd.f32 %v4396_v9, %v1275_v20  ;;  %v1606_v0 = vpop.permute.xlu1 %1605  ;;  %v661_v49 = vadd.f32 %v5282_v34, %v637_v15  ;;  %v5286_v55 = vld [vmem:[#allocation44_spill] sm:$0xff]  ;;  %v5290_v34 = vld [vmem:[#allocation78_spill] sm:$0xff] }
 0x256   : > { %v965_v11 = vadd.f32 %v5274_v25, %v803_v41  ;;  %v5275_v37 = vld [vmem:[#allocation75_spill] sm:$0xff]  ;;  %v1111_v6 = vadd.f32 %v5283_v53, %v939_v28  ;;  %v5285_v9 = vrot.slane %v4551_v57, 6  ;;  %v5287_v24 = vld [vmem:[#allocation32_spill] sm:$0xff] }
 0x257   : > { %v1132_v18 = vadd.f32 %v5275_v37, %v1112_v27  ;;  %v5279_v38 = vld [vmem:[#allocation47_spill] sm:$0xff]  ;;  %v1587_v37 = vpop.permute.xlu0 %1586  ;;  %v1274_v17 = vadd.f32 %v5284_v56, %v1250_v59  ;;  %v825_v2 = vadd.f32 %v5286_v55, %v660_v10  ;;  %v5288_v20 = vld [vmem:[#allocation80_spill] sm:$0xff]  ;;  %v1468_v59 = vadd.f32 %v4391_v13, %v1444_v14  ;;  %v5295_v56 = vld [vmem:[#allocation98_spill] sm:$0xff] }
 0x258   : > { %v966_v51 = vadd.f32 %v5279_v38, %v804_v1  ;;  %v5280_v8 = vld [vmem:[#allocation43_spill] sm:$0xff]  ;;  %v1595_v23 = vadd.f32 %v1587_v37, %v1466_v32  ;;  %2095 = vrot.lane.b32.xlu1 %v5285_v9, %s2940_s16  ;;  %v989_v50 = vadd.f32 %v5287_v24, %v965_v11  ;;  %v5289_v1 = vld [vmem:[#allocation97_spill] sm:$0xff]  ;;  %v1131_v53 = vadd.f32 %v5290_v34, %v1111_v6  ;;  %v5291_v32 = vld [vmem:[#allocation46_spill] sm:$0xff] }
 0x259   : > { %v988_v41 = vadd.f32 %v5280_v8, %v964_v61  ;;  %v5281_v25 = vld [vmem:[#allocation95_spill] sm:$0xff]  ;;  %2049 = vrot.lane.b32.xlu0 %v4595_v40, %s2939_s23  ;;  %v1443_v15 = vadd.f32 %v4320_v42, %v1274_v17  ;;  %v1610_v28 = vpop.permute.xlu1 %1609  ;;  %v827_v10 = vadd.f32 %v5291_v32, %v662_v43  ;;  %v5292_v38 = vld [vmem:[#allocation57_spill] sm:$0xff]  ;;  %v5296_v13 = vrot.slane %v4554_v33, 6  ;;  %v5298_v43 = vld [vmem:[#allocation84_spill] sm:$0xff] }
 0x25a   : > { %v1298_v27 = vadd.f32 %v5281_v25, %v1132_v18  ;;  %v4731_v57 = vadd.f32 %v1606_v0, %v1595_v23  ;;  %v826_v11 = vadd.f32 %v5292_v38, %v661_v49  ;;  %v5293_v8 = vld [vmem:[#allocation77_spill] sm:$0xff]  ;;  %v5294_v37 = vld [vmem:[#allocation27_spill] sm:$0xff]  ;;  %v1297_v6 = vadd.f32 %v5295_v56, %v1131_v53  ;;  %v5301_v55 = vld [vmem:[#allocation82_spill] sm:$0xff] }
 0x25b   : > { %v1153_v61 = vadd.f32 %v5288_v20, %v988_v41  ;;  %v1154_v41 = vadd.f32 %v5293_v8, %v989_v50  ;;  %v990_v40 = vadd.f32 %v5294_v37, %v966_v51  ;;  %v1467_v42 = vadd.f32 %v4428_v21, %v1443_v15  ;;  %v5297_v14 = vld [vmem:[#allocation21_spill] sm:$0xff]  ;;  %v5299_v23 = vld [vmem:[#allocation79_spill] sm:$0xff]  ;;  %v5302_v21 = vld [vmem:[#allocation100_spill] sm:$0xff] }
 0x25c   : > { %v1318_v18 = vadd.f32 %v5289_v1, %v1298_v27  ;;  %v1591_v27 = vpop.permute.xlu0 %1590  ;;  %2099 = vrot.lane.b32.xlu1 %v5296_v13, %s2940_s16  ;;  %v845_v0 = vadd.f32 %v5297_v14, %v825_v2  ;;  %v5300_v51 = vrot.slane %v4519_v19, 5  ;;  %v1317_v50 = vadd.f32 %v5302_v21, %v1297_v6  ;;  %v5303_v2 = vld [vmem:[#allocation26_spill] sm:$0xff]  ;;  %v5304_v34 = vld [vmem:[#allocation99_spill] sm:$0xff]  ;;  %v5311_v37 = vld [vmem:[#allocation108_spill] sm:$0xff] }
 0x25d   : > { %v1597_v17 = vadd.f32 %v1591_v27, %v1468_v59  ;;  %v1174_v49 = vadd.f32 %v5298_v43, %v1154_v41  ;;  %v1173_v9 = vadd.f32 %v5299_v23, %v1153_v61  ;;  %v1155_v24 = vadd.f32 %v5301_v55, %v990_v40  ;;  %v1634_v1 = vpop.permute.xlu1 %1633  ;;  %v5308_v38 = vld [vmem:[#allocation102_spill] sm:$0xff]  ;;  %v5310_v27 = vld [vmem:[#allocation65_spill] sm:$0xff] }
 0x25e   : > { %v1483_v25 = vadd.f32 %v4423_v31, %v1318_v18  ;;  %2053 = vrot.lane.b32.xlu0 %v5300_v51, %s2939_s23  ;;  %v1596_v20 = vadd.f32 %v1589_v36, %v1467_v42  ;;  %v846_v18 = vadd.f32 %v5303_v2, %v826_v11  ;;  %v5305_v15 = vrot.slane %v4601_v58, 5  ;;  %v5307_v36 = vld [vmem:[#allocation68_spill] sm:$0xff]  ;;  %v5309_v11 = vld [vmem:[#allocation23_spill] sm:$0xff]  ;;  %v5312_v6 = vld [vmem:[#allocation81_spill] sm:$0xff] }
 0x25f   : > { %v4754_v33 = vadd.f32 %v1610_v28, %v1597_v17  ;;  %v1343_v61 = vadd.f32 %v5304_v34, %v1174_v49  ;;  %v5306_v19 = vrot.slane %v4567_v7, 5  ;;  %v1014_v32 = vadd.f32 %v5307_v36, %v845_v0  ;;  %v5318_v55 = vld [vmem:[#allocation45_spill] sm:$0xff]  ;;  %v5319_v21 = vld [vmem:[#allocation106_spill] sm:$0xff] }
 0x260   : > { %v1496_v31 = vadd.f32 %v4453_v5, %v1483_v25  ;;  %v1608_v5 = vpop.permute.xlu0 %1607  ;;  %v1342_v8 = vadd.f32 %v5308_v38, %v1173_v9  ;;  %v1482_v28 = vadd.f32 %v4458_v4, %v1317_v50  ;;  %v847_v25 = vadd.f32 %v5309_v11, %v827_v10  ;;  %v5326_v11 = vld [vmem:[#allocation105_spill] sm:$0xff] }
 0x261   : > { %v2026_v59 = vsel %vm484_vm4, %v5306_v19, %v5305_v15  ;;  %v4768_v41 = vadd.f32 %v1608_v5, %v1596_v20  ;;  %v1015_v58 = vadd.f32 %v5310_v27, %v846_v18  ;;  %v1367_v40 = vadd.f32 %v5311_v37, %v1343_v61  ;;  %v1654_v4 = vpop.permute.xlu1 %1653  ;;  %v5320_v20 = vld [vmem:[#allocation101_spill] sm:$0xff] }
 0x262   : > { %v1638_v53 = vadd.f32 %v1634_v1, %v1496_v31  ;;  %2029 = vrot.lane.b32.xlu1 %v2026_v59, %s2939_s23  ;;  %2097 = vrot.lane.b32.xlu0 %v4657_v46, %s2940_s16  ;;  %v2069_v56 = vrot.slane %v4646_v39, 5  ;;  %v1175_v42 = vadd.f32 %v5312_v6, %v1155_v24  ;;  %v1495_v17 = vadd.f32 %v4487_v62, %v1482_v28  ;;  %v5317_v46 = vld [vmem:[#allocation49_spill] sm:$0xff] }
 0x263   : > { %v5313_v13 = vrot.slane %v4615_v54, 2  ;;  %v5314_v14 = vrot.slane %v4611_v60, 2  ;;  %v5315_v0 = vmov %v5306_v19  ;;  %v5316_v43 = vrot.slane %v4630_v3, 5  ;;  %v5321_v3 = vld [vmem:[#allocation34_spill] sm:$0xff]  ;;  %v5331_v60 = vld [vmem:[#allocation107_spill] sm:$0xff] }
 0x264   : > { %v1016_v23 = vadd.f32 %v5317_v46, %v847_v25  ;;  %v1516_v9 = vadd.f32 %v4483_v47, %v1367_v40  ;;  %v4791_v31 = vadd.f32 %v1654_v4, %v1638_v53  ;;  %v1632_v62 = vpop.permute.xlu0 %1631  ;;  %v2328_v51 = vrot.slane %v4700_v26, 2  ;;  %v5322_v26 = vld [vmem:[#allocation86_spill] sm:$0xff]  ;;  %v5330_v4 = vld [vmem:[#allocation85_spill] sm:$0xff] }
 0x265   : > { %v2332_v10 = vsel %vm907_vm7, %v5314_v14, %v5313_v13  ;;  %v2024_v49 = vsel %vm484_vm4, %v5316_v43, %v5315_v0  ;;  %v1038_v24 = vadd.f32 %v5318_v55, %v1014_v32  ;;  %v1344_v50 = vadd.f32 %v5319_v21, %v1175_v42  ;;  %v1676_v53 = vpop.permute.xlu1 %1675  ;;  %v5329_v42 = vld [vmem:[#allocation88_spill] sm:$0xff] }
 0x266   : > { %v1366_v7 = vadd.f32 %v5320_v20, %v1342_v8  ;;  %v1637_v1 = vadd.f32 %v1632_v62, %v1495_v17  ;;  %2335 = vrot.lane.b32.xlu1 %v2332_v10, %s2940_s16  ;;  %v1039_v2 = vadd.f32 %v5321_v3, %v1015_v58  ;;  %v1535_v47 = vadd.f32 %v4584_v35, %v1516_v9  ;;  %v5324_v35 = vld [vmem:[#allocation83_spill] sm:$0xff]  ;;  %v5325_v8 = vld [vmem:[#allocation29_spill] sm:$0xff]  ;;  %v5328_v58 = vld [vmem:[#allocation90_spill] sm:$0xff] }
 0x267   : > { %2027 = vrot.lane.b32.xlu0 %v2024_v49, %s2939_s23  ;;  %v2064_v18 = vmul.f32 %v4598_v45, %v4579_v16  ;;  %v1199_v34 = vadd.f32 %v5322_v26, %v1038_v24  ;;  %v5323_v5 = vrot.slane %v4638_v48, 5  ;;  %v2107_v19 = vstv %s4752_s24  ;;  %v4836_v9 = vld [vmem:[#allocation2 + $0x8] sm:$0xff]  ;;  %v5334_v20 = vld [vmem:[#allocation87_spill] sm:$0xff]  ;;  %v5335_v3 = vld [vmem:[#allocation113_spill] sm:$0xff]  ;;  %s2464_s24 = scalar_lea.sflag [#allocation6], %s3108_s4 }
 0x268   : > { %v1515_v61 = vadd.f32 %v4515_v44, %v1366_v7  ;;  %v1200_v59 = vadd.f32 %v5324_v35, %v1039_v2  ;;  %v1683_v36 = vadd.f32 %v1676_v53, %v1535_v47  ;;  %v1652_v32 = vpop.permute.xlu0 %1651  ;;  %v4815_v16 = vmul.f32 %v4478_v52, %v2107_v19  ;;  %v5336_v26 = vld [vmem:[#allocation13_spill] sm:$0xff] }
 0x269   : > { %v2070_v15 = vsel %vm484_vm4, %v5323_v5, %v2069_v56  ;;  %v2179_v38 = vstv %s4763_s5  ;;  %v1040_v28 = vadd.f32 %v5325_v8, %v1016_v23  ;;  %v1368_v44 = vadd.f32 %v5326_v11, %v1344_v50  ;;  %v1698_v10 = vpop.permute.xlu1 %1697  ;;  %v5337_v5 = vld [vmem:[#allocation112_spill] sm:$0xff]  ;;  %v5340_v11 = vld [vmem:[#allocation25_spill] sm:$0xff]  ;;  %s2841_s5 = scalar_lea.vmem %s5018_s17, 256 }
 0x26a   : > { %v4820_v25 = vadd.f32 %v1652_v32, %v1637_v1  ;;  %2073 = vrot.lane.b32.xlu1 %v2070_v15, %s2939_s23  ;;  %v5327_v48 = vmov %v5314_v14  ;;  %v1224_v37 = vadd.f32 %v5328_v58, %v1200_v59  ;;  %v2071_v40 = vrot.slane %v2064_v18, 5  ;;  %p2842_p7 = scmp.ne.s32.totalorder %s5018_s17, %s2841_s5 }
 0x26b   : > { %v2330_v27 = vsel %vm907_vm7, %v2328_v51, %v5327_v48  ;;  %v2108_v6 = vmul.f32 %v4499_v63, %v2107_v19  ;;  %v1201_v17 = vadd.f32 %v5329_v42, %v1040_v28  ;;  %v1223_v13 = vadd.f32 %v5330_v4, %v1199_v34  ;;  %v5332_v51 = vld [vmem:[#allocation110_spill] sm:$0xff]  ;;  %v5338_v19 = vld [vmem:[#allocation109_spill] sm:$0xff] }
 0x26c   : > { %2333 = vrot.lane.b32.xlu0 %v2330_v27, %s2940_s16  ;;  %v1517_v14 = vadd.f32 %v4547_v29, %v1368_v44  ;;  %v1534_v0 = vadd.f32 %v4508_v12, %v1515_v61  ;;  %v1393_v43 = vadd.f32 %v5331_v60, %v1224_v37  ;;  %v1674_v49 = vpop.permute.xlu0 %1673  ;;  %v2113_v46 = vrot.slane %v4815_v16, 6  ;;  %v5339_v16 = vld [vmem:[#allocation52_spill] sm:$0xff]  ;;  %p2843_p2 = pnand %p2842_p7, %p5345_p12 }
 0x26d   : > { %v2180_v23 = vmul.f32 %v4696_v22, %v2179_v38  ;;  %v4839_v62 = vmul.f32 %v4836_v9, %v2179_v38  ;;  %v1392_v55 = vadd.f32 %v5332_v51, %v1223_v13  ;;  %v5333_v29 = vrot.slane %v4615_v54, 2  ;;  %v1702_v1 = vpop.permute.xlu1 %1701 }
 0x26e   : > { %v1682_v24 = vadd.f32 %v1674_v49, %v1534_v0  ;;  %2077 = vrot.lane.b32.xlu1 %v2071_v40, %s2939_s23  ;;  %v1417_v12 = vadd.f32 %v4323_v30, %v1393_v43  ;;  %v2112_v21 = vrot.slane %v2108_v6, 6  ;;  %v2345_v50 = vstv %s4803_s18  ;;  %v5343_v43 = vld [vmem:[#allocation62_spill] sm:$0xff]  ;;  %p2844_p6 = pneg %p2843_p2  ;;  %s2845_s18 = sshll.u32 %s2941_s12, 4  ;;  %s2846_s18 = int_to_ptr.vmem [resolvable:$false] %s2845_s18 }
 0x26f   : > { %v1225_v7 = vadd.f32 %v5334_v20, %v1201_v17  ;;  %v1536_v2 = vadd.f32 %v5335_v3, %v1517_v14  ;;  %v4853_v47 = vmul.f32 %v4478_v52, %v2345_v50  ;;  %v2186_v53 = vrot.slane %v2180_v23, 2  ;;  %v4878_v17 = vld [vmem:[#allocation2 + $0x10] sm:$0x3f]  ;;  %p2848_p0 = scmp.lt.s32.totalorder %s5018_s17, %s2846_s18 }
 0x270   : > { %2337 = vrot.lane.b32.xlu0 %v5333_v29, %s2940_s16  ;;  %v4855_v18 = vadd.f32 %v1698_v10, %v1682_v24  ;;  %v1556_v34 = vadd.f32 %v5336_v26, %v1417_v12  ;;  %v1678_v61 = vpop.permute.xlu0 %1677  ;;  %v2114_v30 = vsel %vm812_vm6, %v2112_v21, %v2113_v46  ;;  %v2187_v54 = vrot.slane %v4839_v62, 2  ;;  %v5342_v10 = vld [vmem:[#allocation51_spill] sm:$0xff] }
 0x271   : > { %v1394_v15 = vadd.f32 %v5337_v5, %v1225_v7  ;;  %v1416_v35 = vadd.f32 %v5338_v19, %v1392_v55  ;;  %v1684_v59 = vadd.f32 %v1678_v61, %v1536_v2  ;;  %v2072_v32 = vsel %vm484_vm4, %v2069_v56, %v2071_v40  ;;  %v1726_v48 = vpop.permute.xlu1 %1725  ;;  %v5341_v56 = vld [vmem:[#allocation111_spill] sm:$0xff] }
 0x272   : > { %2117 = vrot.lane.b32.xlu1 %v2114_v30, %s2940_s16  ;;  %v1575_v8 = vadd.f32 %v5339_v16, %v1556_v34  ;;  %v2346_v28 = vmul.f32 %v4499_v63, %v2345_v50  ;;  %v2188_v6 = vsel %vm907_vm7, %v2186_v53, %v2187_v54  ;;  %v2353_v39 = vrot.slane %v4853_v47, 2 }
 0x273   : > { %v1555_v44 = vadd.f32 %v5340_v11, %v1416_v35  ;;  %v4870_v27 = vadd.f32 %v1702_v1, %v1684_v59  ;;  %v1418_v40 = vadd.f32 %v5341_v56, %v1394_v15  ;;  %v2182_v4 = vmul.f32 %v4878_v17, %v2179_v38 }
 0x274   : > { %2075 = vrot.lane.b32.xlu0 %v2072_v32, %s2939_s23  ;;  %v1733_v58 = vadd.f32 %v1726_v48, %v1575_v8  ;;  %v1700_v37 = vpop.permute.xlu0 %1699  ;;  %v2221_v13 = vstv %s4843_s6  ;;  %v2352_v14 = vrot.slane %v2346_v28, 2  ;;  %v2348_v23 = vmul.f32 %v4598_v45, %v2345_v50  ;;  %s2673_s23 = sld [smem:[#allocation4 + $0x45]]  ;;  %s2847_s6 = scalar_lea.vmem %s2846_s18, 512 }
 0x275   : > { %v4875_v42 = vadd.f32 %v1700_v37, %v1683_v36  ;;  %v1557_v0 = vadd.f32 %v5342_v10, %v1418_v40  ;;  %v1748_v60 = vpop.permute.xlu1 %1747  ;;  %v1574_v49 = vadd.f32 %v5343_v43, %v1555_v44  ;;  %v2223_v51 = vmul.f32 %v4836_v9, %v2221_v13  ;;  %p2849_p1 = scmp.lt.s32.totalorder %s2847_s6, %s2841_s5 }
 0x276   : > { %2191 = vrot.lane.b32.xlu1 %v2188_v6, %s2940_s16  ;;  %v2354_v36 = vsel %vm907_vm7, %v2352_v14, %v2353_v39  ;;  %v2224_v55 = vmul.f32 %v4878_v17, %v2221_v13  ;;  %v2189_v38 = vrot.slane %v2182_v4, 2  ;;  %v2271_v12 = vstv %s2676_s7 }
 0x277   : > { %v2355_v7 = vrot.slane %v2348_v23, 2  ;;  %v2229_v3 = vrot.slane %v2223_v51, 2  ;;  %v2272_v47 = vmul.f32 %v4696_v22, %v2271_v12  ;;  %v2273_v26 = vmul.f32 %v4836_v9, %v2271_v12  ;;  %p2850_p9 = por %p2849_p1, %p2848_p0 }
 0x278   : > { %2115 = vrot.lane.b32.xlu0 %v2112_v21, %s2940_s16  ;;  %v1724_v62 = vpop.permute.xlu0 %1723  ;;  %v5344_v21 = vld [vmem:[#allocation31_spill] sm:$0xff]  ;;  %v2231_v2 = vrot.slane %v2224_v55, 2  ;;  %v2190_v61 = vsel %vm907_vm7, %v2187_v54, %v2189_v38  ;;  %v2274_v28 = vmul.f32 %v4878_v17, %v2271_v12 }
 0x279   : > { %v1732_v24 = vadd.f32 %v1724_v62, %v1574_v49  ;;  %v1752_v29 = vpop.permute.xlu1 %1751  ;;  %v1576_v20 = vadd.f32 %v5344_v21, %v1557_v0  ;;  %v2278_v35 = vrot.slane %v2272_v47, 2  ;;  %v2279_v59 = vrot.slane %v2273_v26, 2  ;;  %p2851_p8 = pnand %p2850_p9, %p2844_p6 }
 0x27a   : > { %2357 = vrot.lane.b32.xlu1 %v2354_v36, %s2940_s16  ;;  %v2232_v19 = vsel %vm907_vm7, %v2229_v3, %v2231_v2  ;;  %v2356_v54 = vsel %vm907_vm7, %v2353_v39, %v2355_v7  ;;  %v2199_v11 = vstv %s2673_s23  ;;  %v2245_v39 = vstv %s2675_s20 }
 0x27b   : > { %v4892_v50 = vadd.f32 %v1748_v60, %v1732_v24  ;;  %v2280_v44 = vsel %vm907_vm7, %v2278_v35, %v2279_v59  ;;  %v2201_v48 = vmul.f32 %v4478_v52, %v2199_v11  ;;  %v2281_v40 = vrot.slane %v2274_v28, 2 }
 0x27c   : > { %2119 = vrot.lane.b32.xlu0 %v2113_v46, %s2940_s16  ;;  %v1728_v1 = vpop.permute.xlu0 %1727  ;;  %v2222_v46 = vmul.f32 %v4696_v22, %v2221_v13  ;;  %v2247_v4 = vmul.f32 %v4478_v52, %v2245_v39  ;;  %v2248_v60 = vmul.f32 %v4598_v45, %v2245_v39  ;;  %v2200_v23 = vmul.f32 %v4499_v63, %v2199_v11 }
 0x27d   : > { %v1734_v34 = vadd.f32 %v1728_v1, %v1576_v20  ;;  %v1772_v30 = vpop.permute.xlu1 %1771  ;;  %v2207_v10 = vrot.slane %v2201_v48, 2  ;;  %v2295_v62 = vstv %s2677_s26 }
 0x27e   : > { %2361 = vrot.lane.b32.xlu1 %v2355_v7, %s2940_s16  ;;  %v1779_v5 = vadd.f32 %v1772_v30, %v4768_v41  ;;  %v2228_v16 = vrot.slane %v2222_v46, 2  ;;  %v2253_v49 = vrot.slane %v2247_v4, 2  ;;  %v2255_v38 = vrot.slane %v2248_v60, 2 }
 0x27f   : > { %v4900_v53 = vadd.f32 %v1752_v29, %v1734_v34  ;;  %v2282_v29 = vsel %vm907_vm7, %v2279_v59, %v2281_v40  ;;  %v2296_v21 = vmul.f32 %v4499_v63, %v2295_v62  ;;  %v2206_v7 = vrot.slane %v2200_v23, 2 }
 0x280   : > { %2193 = vrot.lane.b32.xlu0 %v2190_v61, %s2940_s16  ;;  %v1750_v15 = vpop.permute.xlu0 %1749  ;;  %v2230_v6 = vsel %vm907_vm7, %v2228_v16, %v2229_v3  ;;  %v2371_v61 = vstv %s2680_s27 }
 0x281   : > { %v4904_v32 = vadd.f32 %v1750_v15, %v1733_v58  ;;  %v1790_v8 = vpop.permute.xlu1 %1789  ;;  %v2202_v58 = vmul.f32 %v4598_v45, %v2199_v11  ;;  %v2208_v34 = vsel %vm907_vm7, %v2206_v7, %v2207_v10  ;;  %v2302_v46 = vrot.slane %v2296_v21, 2 }
 0x282   : > { %2235 = vrot.lane.b32.xlu1 %v2232_v19, %s2940_s16  ;;  %v2298_v15 = vmul.f32 %v4598_v45, %v2295_v62 }
 0x283   : > { %v2209_v0 = vrot.slane %v2202_v58, 2 }
 0x284   : > { %2359 = vrot.lane.b32.xlu0 %v2356_v54, %s2940_s16  ;;  %v1770_v41 = vpop.permute.xlu0 %1769  ;;  %v2373_v54 = vmul.f32 %v4836_v9, %v2371_v61  ;;  %v2305_v11 = vrot.slane %v2298_v15, 2 }
 0x285   : > { %v1778_v37 = vadd.f32 %v1770_v41, %v4731_v57  ;;  %v1794_v56 = vpop.permute.xlu1 %1793  ;;  %v2210_v24 = vsel %vm907_vm7, %v2207_v10, %v2209_v0  ;;  %v2391_v41 = vstv %s2681_s30 }
 0x286   : > { %2283 = vrot.lane.b32.xlu1 %v2280_v44, %s2940_s16  ;;  %v2393_v58 = vmul.f32 %v4478_v52, %v2391_v41  ;;  %v2394_v9 = vmul.f32 %v4598_v45, %v2391_v41  ;;  %v2392_v10 = vmul.f32 %v4499_v63, %v2391_v41 }
 0x287   : > { %v4918_v13 = vadd.f32 %v1790_v8, %v1778_v37  ;;  %v2372_v37 = vmul.f32 %v4696_v22, %v2371_v61 }
 0x288   : > { %2233 = vrot.lane.b32.xlu0 %v2230_v6, %s2940_s16  ;;  %v1774_v14 = vpop.permute.xlu0 %1773  ;;  %v2399_v4 = vrot.slane %v2393_v58, 6 }
 0x289   : > { %v1780_v57 = vadd.f32 %v1774_v14, %v4754_v33  ;;  %v1818_v43 = vpop.permute.xlu1 %1817  ;;  %v2297_v33 = vmul.f32 %v4478_v52, %v2295_v62  ;;  %v2401_v14 = vrot.slane %v2394_v9, 6  ;;  %v2398_v62 = vrot.slane %v2392_v10, 6 }
 0x28a   : > { %2287 = vrot.lane.b32.xlu1 %v2281_v40, %s2940_s16  ;;  %v1822_v51 = vadd.f32 %v1818_v43, %v4791_v31  ;;  %v2246_v31 = vmul.f32 %v4499_v63, %v2245_v39 }
 0x28b   : > { %v4925_v36 = vadd.f32 %v1794_v56, %v1780_v57  ;;  %v2303_v47 = vrot.slane %v2297_v33, 2  ;;  %v2402_v43 = vsel %vm812_vm6, %v2399_v4, %v2401_v14  ;;  %v2400_v63 = vsel %vm812_vm6, %v2398_v62, %v2399_v4 }
 0x28c   : > { %2237 = vrot.lane.b32.xlu0 %v2231_v2, %s2940_s16  ;;  %v1792_v55 = vpop.permute.xlu0 %1791  ;;  %v2256_v2 = vsel %vm907_vm7, %v2253_v49, %v2255_v38 }
 0x28d   : > { %v4930_v12 = vadd.f32 %v1792_v55, %v1779_v5  ;;  %v1838_v20 = vpop.permute.xlu1 %1837  ;;  %v2252_v5 = vrot.slane %v2246_v31, 2  ;;  %v2304_v59 = vsel %vm907_vm7, %v2302_v46, %v2303_v47  ;;  %v2306_v45 = vsel %vm907_vm7, %v2303_v47, %v2305_v11 }
 0x28e   : > { %2213 = vrot.lane.b32.xlu1 %v2210_v24, %s2940_s16  ;;  %v4937_v1 = vadd.f32 %v1838_v20, %v1822_v51 }
 0x28f   : > { %v2254_v8 = vsel %vm907_vm7, %v2252_v5, %v2253_v49 }
 0x290   : > { %2285 = vrot.lane.b32.xlu0 %v2282_v29, %s2940_s16  ;;  %v1816_v3 = vpop.permute.xlu0 %1815 }
 0x291   : > { %v1821_v26 = vadd.f32 %v1816_v3, %v4820_v25  ;;  %v1860_v30 = vpop.permute.xlu1 %1859  ;;  %v2374_v25 = vmul.f32 %v4878_v17, %v2371_v61 }
 0x292   : > { %2259 = vrot.lane.b32.xlu1 %v2256_v2, %s2940_s16  ;;  %v1867_v19 = vadd.f32 %v1860_v30, %v4875_v42  ;;  %v2379_v42 = vrot.slane %v2373_v54, 6 }
 0x293   : > { %v2381_v48 = vrot.slane %v2374_v25, 6 }
 0x294   : > { %2211 = vrot.lane.b32.xlu0 %v2208_v34, %s2940_s16  ;;  %v1836_v35 = vpop.permute.xlu0 %1835 }
 0x295   : > { %v4949_v16 = vadd.f32 %v1836_v35, %v1821_v26  ;;  %v1882_v28 = vpop.permute.xlu1 %1881  ;;  %v2382_v40 = vsel %vm812_vm6, %v2379_v42, %v2381_v48 }
 0x296   : > { %2307 = vrot.lane.b32.xlu1 %v2304_v59, %s2940_s16 }
 0x298   : > { %2257 = vrot.lane.b32.xlu0 %v2254_v8, %s2940_s16  ;;  %v1858_v44 = vpop.permute.xlu0 %1857 }
 0x299   : > { %v1866_v17 = vadd.f32 %v1858_v44, %v4855_v18  ;;  %v1886_v6 = vpop.permute.xlu1 %1885  ;;  %v2378_v18 = vrot.slane %v2372_v37, 6 }
 0x29a   : > { %2311 = vrot.lane.b32.xlu1 %v2305_v11, %s2940_s16 }
 0x29b   : > { %v4960_v39 = vadd.f32 %v1882_v28, %v1866_v17 }
 0x29c   : > { %2261 = vrot.lane.b32.xlu0 %v2255_v38, %s2940_s16  ;;  %v1862_v56 = vpop.permute.xlu0 %1861 }
 0x29d   : > { %v1868_v52 = vadd.f32 %v1862_v56, %v4870_v27  ;;  %v1910_v22 = vpop.permute.xlu1 %1909  ;;  %v2380_v27 = vsel %vm812_vm6, %v2378_v18, %v2379_v42 }
 0x29e   : > { %2385 = vrot.lane.b32.xlu1 %v2382_v40, %s2940_s16  ;;  %v1917_v60 = vadd.f32 %v1910_v22, %v4904_v32 }
 0x29f   : > { %v4968_v0 = vadd.f32 %v1886_v6, %v1868_v52 }
 0x2a0   : > { %2309 = vrot.lane.b32.xlu0 %v2306_v45, %s2940_s16  ;;  %v1884_v57 = vpop.permute.xlu0 %1883 }
 0x2a1   : > { %v1891_v49 = vadd.f32 %v1884_v57, %v1867_v19  ;;  %v1932_v23 = vpop.permute.xlu1 %1931 }
 0x2a2   : > { %2405 = vrot.lane.b32.xlu1 %v2402_v43, %s2940_s16 }
 0x2a4   : > { %2383 = vrot.lane.b32.xlu0 %v2380_v27, %s2940_s16  ;;  %v1908_v51 = vpop.permute.xlu0 %1907 }
 0x2a5   : > { %v1916_v55 = vadd.f32 %v1908_v51, %v4892_v50  ;;  %v1936_v32 = vpop.permute.xlu1 %1935 }
 0x2a7   : > { %v1940_v24 = vadd.f32 %v1932_v23, %v1916_v55 }
 0x2a8   : > { %2403 = vrot.lane.b32.xlu0 %v2400_v63, %s2940_s16  ;;  %v1912_v38 = vpop.permute.xlu0 %1911  ;;  %s5016_s16 = scalar_lea.hbm %s5070_s2, %s2690_s28 }
 0x2a9   : > { %v1918_v33 = vadd.f32 %v1912_v38, %v4900_v53  ;;  %v1960_v29 = vpop.permute.xlu1 %1959 }
 0x2aa   : > { %v1967_v20 = vadd.f32 %v1960_v29, %v4930_v12 }
 0x2ab   : > { %v4979_v21 = vadd.f32 %v1936_v32, %v1918_v33 }
 0x2ac   : > { %v1934_v7 = vpop.permute.xlu0 %1933 }
 0x2ad   : > { %v4982_v31 = vadd.f32 %v1934_v7, %v1917_v60  ;;  %v1982_v3 = vpop.permute.xlu1 %1981 }
 0x2b0   : > { %v1958_v2 = vpop.permute.xlu0 %1957 }
 0x2b1   : > { %v1966_v50 = vadd.f32 %v1958_v2, %v4918_v13  ;;  %v1986_v47 = vpop.permute.xlu1 %1985 }
 0x2b3   : > { %v1990_v26 = vadd.f32 %v1982_v3, %v1966_v50 }
 0x2b4   : > { %v1962_v34 = vpop.permute.xlu0 %1961 }
 0x2b5   : > { %v1968_v61 = vadd.f32 %v1962_v34, %v4925_v36  ;;  %v2144_v46 = vpop.permute.xlu1 %2143 }
 0x2b7   : > { %v1992_v30 = vadd.f32 %v1986_v47, %v1968_v61 }
 0x2b8   : > { %v1984_v53 = vpop.permute.xlu0 %1983 }
 0x2b9   : > { %v1991_v5 = vadd.f32 %v1984_v53, %v1967_v20  ;;  %v2008_v15 = vpop.permute.xlu1 %2007 }
 0x2ba   : > { %v4987_v12 = vadd.f32 %v2008_v15, %v4949_v16 }
 0x2bb   : > { %v2151_v19 = vadd.f32 %v2144_v46, %v1991_v5 }
 0x2bc   : > { %v2142_v35 = vpop.permute.xlu0 %2141 }
 0x2bd   : > { %v2150_v59 = vadd.f32 %v2142_v35, %v1990_v26  ;;  %v2166_v54 = vpop.permute.xlu1 %2165 }
 0x2bf   : > { %v2174_v25 = vadd.f32 %v2166_v54, %v2150_v59 }
 0x2c0   : > { %v2146_v8 = vpop.permute.xlu0 %2145 }
 0x2c1   : > { %v2152_v13 = vadd.f32 %v2146_v8, %v1992_v30  ;;  %v2170_v28 = vpop.permute.xlu1 %2169 }
 0x2c3   : > { %v2176_v11 = vadd.f32 %v2170_v28, %v2152_v13 }
 0x2c4   : > { %v2010_v41 = vpop.permute.xlu0 %2009 }
 0x2c5   : > { %v4990_v36 = vadd.f32 %v2010_v41, %v4937_v1  ;;  %v2052_v44 = vpop.permute.xlu1 %2051 }
 0x2c6   : > { %v2059_v42 = vadd.f32 %v2052_v44, %v1891_v49 }
 0x2c8   : > { %v2168_v48 = vpop.permute.xlu0 %2167 }
 0x2c9   : > { %v2175_v58 = vadd.f32 %v2168_v48, %v2151_v19 }
 0x2ca   : > { %v2096_v9 = vpop.permute.xlu1 %2095 }
 0x2cb   : > { %v2104_v17 = vadd.f32 %v2096_v9, %v1940_v24 }
 0x2cc   : > { %v2050_v16 = vpop.permute.xlu0 %2049 }
 0x2cd   : > { %v2058_v37 = vadd.f32 %v2050_v16, %v4960_v39 }
 0x2ce   : > { %v2100_v6 = vpop.permute.xlu1 %2099 }
 0x2cf   : > { %v2106_v59 = vadd.f32 %v2100_v6, %v4979_v21 }
 0x2d0   : > { %v2054_v56 = vpop.permute.xlu0 %2053 }
 0x2d4   : > { %v2030_v40 = vpop.permute.xlu1 %2029  ;;  %v2098_v4 = vpop.permute.xlu0 %2097 }
 0x2d5   : > { %v2034_v21 = vadd.f32 %v2030_v40, %v4990_v36 }
 0x2d8   : > { %v2336_v14 = vpop.permute.xlu1 %2335 }
 0x2d9   : > { %v4993_v52 = vpop.permute.xlu0 %2027  ;;  %v2343_v55 = vadd.f32 %v2336_v14, %v2175_v58 }
 0x2dc   : > { %v2074_v45 = vpop.permute.xlu1 %2073 }
 0x2dd   : > { %v2082_v19 = vadd.f32 %v2074_v45, %v2058_v37 }
 0x2de   : > { %v2334_v18 = vpop.permute.xlu0 %2333 }
 0x2df   : > { %v2342_v62 = vadd.f32 %v2334_v18, %v2174_v25  ;;  %v2060_v25 = vadd.f32 %v2054_v56, %v4968_v0 }
 0x2e0   : > { %v2078_v1 = vpop.permute.xlu1 %2077 }
 0x2e1   : > { %v2084_v48 = vadd.f32 %v2078_v1, %v2060_v25 }
 0x2e2   : > { %v2338_v22 = vpop.permute.xlu0 %2337 }
 0x2e3   : > { %v2344_v51 = vadd.f32 %v2338_v22, %v2176_v11 }
 0x2e4   : > { %v2118_v10 = vpop.permute.xlu1 %2117 }
 0x2e6   : > { %v2076_v60 = vpop.permute.xlu0 %2075 }
 0x2e7   : > { %v2083_v30 = vadd.f32 %v2076_v60, %v2059_v42 }
 0x2e8   : > { %v4995_v57 = vpop.permute.xlu1 %2191 }
 0x2ea   : > { %v2116_v43 = vpop.permute.xlu0 %2115 }
 0x2eb   : > { %v2124_v5 = vadd.f32 %v2116_v43, %v2104_v17  ;;  %v2105_v17 = vadd.f32 %v2098_v4, %v4982_v31  ;;  %v2033_v31 = vadd.f32 %v4993_v52, %v4987_v12 }
 0x2ec   : > { %v2358_v49 = vpop.permute.xlu1 %2357 }
 0x2ed   : > { %v2366_v63 = vadd.f32 %v2358_v49, %v2342_v62  ;;  %v2125_v56 = vadd.f32 %v2118_v10, %v2105_v17  ;;  %v2197_v40 = vadd.f32 %v4995_v57, %v2033_v31 }
 0x2ee   : > { %v2120_v27 = vpop.permute.xlu0 %2119 }
 0x2ef   : > { %v2426_v29 = vrot.slane %v2366_v63, 1  ;;  %v2126_v11 = vadd.f32 %v2120_v27, %v2106_v59 }
 0x2f0   : > { %v2362_v23 = vpop.permute.xlu1 %2361 }
 0x2f1   : > { %v2368_v32 = vadd.f32 %v2362_v23, %v2344_v51 }
 0x2f2   : > { %v2194_v39 = vpop.permute.xlu0 %2193 }
 0x2f3   : > { %v2429_v20 = vrot.slane %v2368_v32, 1  ;;  %v2198_v60 = vadd.f32 %v2194_v39, %v2034_v21 }
 0x2f4   : > { %v2236_v24 = vpop.permute.xlu1 %2235 }
 0x2f5   : > { %v2243_v35 = vadd.f32 %v2236_v24, %v2083_v30 }
 0x2f6   : > { %v2360_v38 = vpop.permute.xlu0 %2359 }
 0x2f7   : > { %v2367_v33 = vadd.f32 %v2360_v38, %v2343_v55 }
 0x2f8   : > { %v2284_v3 = vpop.permute.xlu1 %2283 }
 0x2f9   : > { %v2427_v7 = vrot.slane %v2367_v33, 1  ;;  %v2292_v54 = vadd.f32 %v2284_v3, %v2124_v5 }
 0x2fa   : > { %v2234_v2 = vpop.permute.xlu0 %2233 }
 0x2fb   : > { %v2428_v50 = vsel %vm529_vm5, %v2426_v29, %v2427_v7  ;;  %v2430_v47 = vsel %vm529_vm5, %v2427_v7, %v2429_v20  ;;  %v2242_v8 = vadd.f32 %v2234_v2, %v2082_v19 }
 0x2fc   : > { %v2288_v26 = vpop.permute.xlu1 %2287 }
 0x2fd   : > { %v2294_v9 = vadd.f32 %v2288_v26, %v2126_v11 }
 0x2fe   : > { %v2238_v34 = vpop.permute.xlu0 %2237 }
 0x2ff   : > { %v2244_v16 = vadd.f32 %v2238_v34, %v2084_v48 }
 0x300   : > { %v2214_v61 = vpop.permute.xlu1 %2213 }
 0x301   : > { %v2218_v23 = vadd.f32 %v2214_v61, %v2198_v60 }
 0x302   : > { %v2286_v46 = vpop.permute.xlu0 %2285 }
 0x303   : > { %v2293_v1 = vadd.f32 %v2286_v46, %v2125_v56 }
 0x304   : > { %v2260_v53 = vpop.permute.xlu1 %2259 }
 0x305   : > { %v2267_v13 = vadd.f32 %v2260_v53, %v2243_v35 }
 0x306   : > { %v2212_v15 = vpop.permute.xlu0 %2211 }
 0x307   : > { %v2415_v37 = vrot.slane %v2267_v13, 1  ;;  %v2217_v39 = vadd.f32 %v2212_v15, %v2197_v40 }
 0x308   : > { %v2308_v28 = vpop.permute.xlu1 %2307 }
 0x309   : > { %v2316_v41 = vadd.f32 %v2308_v28, %v2292_v54 }
 0x30a   : > { %v2258_v44 = vpop.permute.xlu0 %2257 }
 0x30b   : > { %v2266_v58 = vadd.f32 %v2258_v44, %v2242_v8  ;;  %v2434_v42 = vadd.f32 %v2428_v50, %v2316_v41 }
 0x30c   : > { %v2312_v45 = vpop.permute.xlu1 %2311 }
 0x30d   : > { %v2414_v14 = vrot.slane %v2266_v58, 1  ;;  %v2318_v6 = vadd.f32 %v2312_v45, %v2294_v9  ;;  %v2440_v24 = vrot.slane %v2434_v42, 2 }
 0x30e   : > { %v2262_v0 = vpop.permute.xlu0 %2261 }
 0x30f   : > { %v2268_v18 = vadd.f32 %v2262_v0, %v2244_v16  ;;  %v2416_v22 = vsel %vm529_vm5, %v2414_v14, %v2415_v37  ;;  %v2436_v43 = vadd.f32 %v2429_v20, %v2318_v6 }
 0x310   : > { %v2386_v27 = vpop.permute.xlu1 %2385 }
 0x311   : > { %v2417_v49 = vrot.slane %v2268_v18, 1  ;;  %v2390_v36 = vadd.f32 %v2386_v27, %v2218_v23  ;;  %v2443_v38 = vrot.slane %v2436_v43, 2 }
 0x312   : > { %v2310_v62 = vpop.permute.xlu0 %2309 }
 0x313   : > { %v2317_v4 = vadd.f32 %v2310_v62, %v2293_v1  ;;  %v2418_v51 = vsel %vm529_vm5, %v2415_v37, %v2417_v49 }
 0x314   : > { %v2406_v55 = vpop.permute.xlu1 %2405 }
 0x315   : > { %v2435_v10 = vadd.f32 %v2430_v47, %v2317_v4  ;;  %v2410_v63 = vadd.f32 %v2406_v55, %v2390_v36 }
 0x316   : > { %v2384_v32 = vpop.permute.xlu0 %2383 }
 0x317   : > { %v2441_v33 = vrot.slane %v2435_v10, 2  ;;  %v2422_v29 = vadd.f32 %v2418_v51, %v2410_v63  ;;  %v2389_v7 = vadd.f32 %v2384_v32, %v2217_v39 }
 0x319   : > { %v2444_v20 = vsel %vm907_vm7, %v2441_v33, %v2443_v38  ;;  %v2442_v12 = vsel %vm907_vm7, %v2440_v24, %v2441_v33 }
 0x31a   : > { %v2448_v52 = vadd.f32 %v2444_v20, %v2422_v29  ;;  %v2404_v3 = vpop.permute.xlu0 %2403 }
 0x31b   : > { %v2409_v2 = vadd.f32 %v2404_v3, %v2389_v7 }
 0x31c   : > { %v2683_v57 = vmul.f32 -1.442695, %v2448_v52 }
 0x31d   : > { %v2421_v50 = vadd.f32 %v2416_v22, %v2409_v2 }
 0x31e   : > { %2776 = vpow2.f32 %v2683_v57 }
 0x31f   : > { %v2447_v47 = vadd.f32 %v2442_v12, %v2421_v50 }
 0x321   : > { %v2682_v26 = vmul.f32 -1.442695, %v2447_v47 }
 0x323   : > { %2778 = vpow2.f32 %v2682_v26 }
 0x328   : > { %v2777_v34 = vpop.eup %2776 }
 0x329   : > { %v2456_v61 = vadd.f32 1.0, %v2777_v34 }
 0x32b   : > { %2780 = vrcp.f32 %v2456_v61 }
 0x32d   : > { %v2779_v46 = vpop.eup %2778 }
 0x32e   : > { %v2455_v30 = vadd.f32 1.0, %v2779_v46 }
 0x330   : > { %2782 = vrcp.f32 %v2455_v30 }
 0x335   : > { %v2781_v53 = vpop.eup %2780 }
 0x336   : > { %2462 = vst.msk [vmem:[%s192_s8 + $0x8] sm:$0xff] %vm202_vm0, %v2781_v53 }
 0x33a   : > { %v2783_v5 = vpop.eup %2782 }
 0x33b   : > { %2461 = vst.msk [vmem:[%s192_s8] sm:$0xff] %vm202_vm0, %v2783_v5 }
 0x33c   : > { %2854 = shalt.err (!%p2851_p8)
}
 0x33d   : > { %s2855_s7 = scalar_lea.hbm %s5016_s16, 256  ;;  %s2859_s26 = scalar_lea.hbm %s5070_s2, 512 }
 0x33e   : > { %p2856_p4 = scmp.ne.s32.totalorder %s5016_s16, %s2855_s7  ;;  %p2860_p5 = scmp.lt.u32.totalorder %s5016_s16, %s5070_s2 }
 0x33f   : > { %p2861_p13 = scmp.lt.u32.totalorder %s2859_s26, %s2855_s7  ;;  %p2863_p7 = scmp.lt.u32.totalorder %s2855_s7, %s5016_s16 }
 0x340   : > { %p2857_p10 = pnand %p2856_p4, %p5345_p12 }
 0x341   : > { %p2862_p3 = por %p2861_p13, %p2860_p5 }
 0x342   : > { %p2858_p11 = pneg %p2857_p10 }
 0x343   : > { %p2864_p2 = por %p2863_p7, %p2862_p3 }
 0x345   : > { %p2865_p6 = pnand %p2864_p2, %p2858_p11 }
 0x347   : > { %2868 = shalt.err (!%p2865_p6)
}
 0x348   : > { %s2942_s19 = smov 128   ;;  %s2943_s28 = smov 8  }
 0x349   : > { %2697 = dma.vmem_to_hbm [thread:$0]  (%p5345_p12), %s5018_s17, 256, %s5016_s16, %s2464_s24, %s2942_s19, %s2942_s19, %s2943_s28  }
 0x34a PF: > { %s2492_s8 = sand.u32 1, %s2907_s9   ;;  %p5346_p0 = scmp.ne.s32.totalorder %s5084_s22, 0 }
 0x34b   : > { %p5347_p1 = scmp.ge.s32.totalorder %s2927_s14, 2  ;;  %s2493_s3 = scalar_lea.sflag [#allocation6], %s2492_s8 }
 0x34d   : > { %p2708_p9 = pnand %p5347_p1, %p5346_p0 }
 0x34f   : > { %2902 = dma.done.wait (!%p2708_p9), %s2493_s3, 256  }
 0x350   : > { %2904 = vsyncadd (!%p2708_p9), %s2493_s3, 4294967040  ;;  %s19_s14 = sadd.s32 1, %s2927_s14   ;;  %s5348_s9 = smov %s2911_s10 }
 0x351   : > { %p16_p8 = scmp.ge.s32.totalorder %s19_s14, 4   ;;  %s5349_s10 = smov %s2915_s11 }
 0x352   : > { %s5350_s11 = smov %s3069_s25  ;;  %s5351_s12 = smov %s2923_s13 }
 0x353   : > { %s5352_s13 = smov %s5354_s29  ;;  %18 = sbr.rel (!%p16_p8) target bundleno = 7 (0x7), region = 90 }
 0x35a   :  { %2498 = vsyncpa [#allocation5], 1 }
 0x35b   :  { %2500 = vsyncpa [#allocation5 + $0x1], 1 }
 0x35c   :  { %2501 = vsyncpa [#allocation6], 1 }
 0x35d   :  { %2503 = vsyncpa [#allocation6 + $0x1], 1 }
 0x35e   :  { %2504 = vsyncpa [#allocation7], 1 }
 0x35f   :  { %2506 = vsyncpa [#allocation7 + $0x1], 1 }

</bundles_post_ra>
